<compile_context>
chip_gen: v6e
topology: v6e:2x2x1
jax: 0.10.0
libtpu: 0.0.40
codegen_flags: <defaults>
</compile_context>

<pallas_src>
import functools

import jax
import jax.numpy as jnp
from jax.experimental import pallas as pl
from jax.experimental.pallas import tpu as pltpu

LN_EPS = 1e-5  # PyTorch nn.LayerNorm default
_SQRT_2_OVER_PI = 0.7978845608028654


def _layernorm(x, gamma, beta):
    mu = jnp.mean(x, axis=-1, keepdims=True)
    xc = x - mu
    var = jnp.mean(xc * xc, axis=-1, keepdims=True)  # biased var, like PyTorch
    return xc * jax.lax.rsqrt(var + LN_EPS) * gamma + beta


def _gelu_tanh(x):
    # tanh-based GELU (EUP tanh); approximates PyTorch nn.GELU() (exact erf).
    return 0.5 * x * (1.0 + jnp.tanh(_SQRT_2_OVER_PI * (x + 0.044715 * x * x * x)))


# ---------------------------------------------------------------------------
# Main Pallas kernel: one (batch-block, layer) grid step
# ---------------------------------------------------------------------------
def vit_layer_kernel(x_ref,
                     ln1_g_ref, ln1_b_ref, wqkv_ref, wout_ref, bout_ref,
                     ln2_g_ref, ln2_b_ref, wff1_ref, bff1_ref,
                     wff2_ref, bff2_ref,
                     out_ref, x_scr, attn_scr,
                     *, heads, dim_head, seq_len, approx_recip):
    l = pl.program_id(1)
    last_l = pl.num_programs(1) - 1
    R, D = x_scr.shape                      # R = Bt * N token-major rows
    N = seq_len
    Bt = R // N
    inner = heads * dim_head
    scale = dim_head ** -0.5
    bf16, f32 = jnp.bfloat16, jnp.float32

    # -------- first layer: initialise the residual-stream carry --------
    # (pos embedding is already added in the wrapper)
    # NOTE: x_scr layer-carry requires depth to be the innermost, sequential
    # ("arbitrary") grid axis with batch outer/"parallel".  Do not reorder.
    @pl.when(l == 0)
    def _():
        x_scr[...] = x_ref[...]

    x = x_scr[...]                                              # (R, D) f32

    # -------- Attention (pre-LN) + residual --------
    xn = _layernorm(x, ln1_g_ref[...], ln1_b_ref[...])
    # single fused QKV GEMM (bf16 operands, f32 MXU accumulation)
    qkv = jnp.dot(xn.astype(bf16), wqkv_ref[...],
                  preferred_element_type=f32)                   # (R, 3*inner)

    # per-head attention, batched over the batch block with 3-D einsums
    for h in range(heads):                                      # small static loop
        c = h * dim_head
        qh = qkv[:, c:c + dim_head].reshape(Bt, N, dim_head)
        kh = qkv[:, inner + c:inner + c + dim_head].reshape(Bt, N, dim_head)
        vh = qkv[:, 2 * inner + c:2 * inner + c + dim_head].reshape(Bt, N, dim_head)

        s = jnp.einsum('bnd,bmd->bnm', qh, kh,
                       preferred_element_type=f32) * scale      # (Bt, N, N) f32
        m = jnp.max(s, axis=-1, keepdims=True)
        e = jnp.exp(s - m)
        den = jnp.sum(e, axis=-1, keepdims=True)
        if approx_recip:
            p = e * pl.reciprocal(den, approx=True)
        else:
            p = e / den
        oh = jnp.einsum('bnm,bmd->bnd', p, vh,
                        preferred_element_type=f32)             # (Bt, N, dh)
        attn_scr[:, c:c + dim_head] = oh.reshape(R, dim_head)   # straight to VMEM

    # single fused output projection over all rows / heads
    attn_proj = jnp.dot(attn_scr[...].astype(bf16), wout_ref[...],
                        preferred_element_type=f32) + bout_ref[...]
    x = x + attn_proj                                           # residual

    # -------- FeedForward (pre-LN) + residual --------
    xn = _layernorm(x, ln2_g_ref[...], ln2_b_ref[...])
    h1 = jnp.dot(xn.astype(bf16), wff1_ref[...],
                 preferred_element_type=f32) + bff1_ref[...]
    h1 = _gelu_tanh(h1)
    h2 = jnp.dot(h1.astype(bf16), wff2_ref[...],
                 preferred_element_type=f32) + bff2_ref[...]
    x = x + h2

    # carry the running activation to the next layer (grid step)
    x_scr[...] = x

    @pl.when(l == last_l)
    def _():
        out_ref[...] = x                                        # pre-final-LN act


# ---------------------------------------------------------------------------
# Second Pallas kernel: final LayerNorm + lane-dense patch projection
# ---------------------------------------------------------------------------
def final_proj_kernel(x_ref, g_ref, b_ref, w_ref, bias_ref, out_ref):
    xn = _layernorm(x_ref[...], g_ref[...], b_ref[...])
    out_ref[...] = jnp.dot(xn.astype(jnp.bfloat16), w_ref[...],
                           preferred_element_type=jnp.float32) + bias_ref[...]


# ---------------------------------------------------------------------------
# Generation-aware VMEM / batch-block budgeting
# ---------------------------------------------------------------------------
def _tpu_budget():
    """Best-effort (vmem_capacity_bytes, #TensorCores sharing one Pallas grid)."""
    vmem_cap = 64 * 1024 * 1024          # conservative default (v7x-sized)
    n_cores = 1
    try:
        info = pltpu.get_tpu_info()
        cap = getattr(info, "vmem_capacity_bytes", None)
        if cap:
            vmem_cap = int(cap)
    except Exception:
        pass
    try:
        kind = jax.devices()[0].device_kind.lower()
        if "v7" in kind:
            n_cores = 2                   # 2 TensorCores share one Pallas grid
    except Exception:
        pass
    return vmem_cap, n_cores


# ---------------------------------------------------------------------------
# Wrapper: pallas_calls + image reassembly
# ---------------------------------------------------------------------------
def basic_vit_decoder_forward(x, params, *, depth, heads, dim_head,
                              output_channels, image_size, patch_size,
                              approx_softmax_recip=True):
    B, N, D = x.shape
    inner = heads * dim_head
    P = output_channels * patch_size * patch_size
    Hp = Wp = image_size // patch_size
    F = params['wff1'].shape[-1]

    # loud shape checks (the kernel assumes exact slicing geometry)
    assert N == Hp * Wp and N % 8 == 0, (N, Hp, Wp)
    assert params['pos'].shape == (1, N, D)
    assert params['wqkv'].shape == (depth, D, 3 * inner)
    assert params['wout'].shape == (depth, inner, D)
    assert params['wff1'].shape == (depth, D, F)
    assert params['wff2'].shape == (depth, F, D)
    assert params['wproj'].shape == (D, P)

    f32, bf16 = jnp.float32, jnp.bfloat16

    # ---- generation-aware batch-block / VMEM budget ----
    vmem_cap, n_cores = _tpu_budget()
    per_layer_w = 2 * (D * 3 * inner + inner * D + D * F + F * D)     # bf16
    per_layer_small = 4 * (2 * D + D + 2 * D + F + D)                 # f32 LN/bias

    def fits(bt):
        r = bt * N
        need = (2 * r * D * 4                     # input rows, double-buffered f32
                + 2 * r * D * 4                   # output activation, double-buffered
                + 2 * (per_layer_w + per_layer_small)  # per-layer params, x2 buffers
                + r * D * 4                       # x_scr carry
                + r * inner * 4                   # attention scratch
                + 2 * r * max(3 * inner, F) * 4)  # transient headroom (qkv / ffn hidden)
        return need <= int(0.55 * vmem_cap)

    divisors = [d for d in range(B, 0, -1) if B % d == 0]
    Bt = None
    for d in divisors:                    # one batch block per TensorCore if it fits
        if (B // d) >= n_cores and fits(d):
            Bt = d
            break
    if Bt is None:                        # fall back: largest that fits at all
        for d in divisors:
            if fits(d):
                Bt = d
                break
    if Bt is None:
        Bt = 1
    R = Bt * N                            # token rows per grid step

    vmem_limit = int(min(0.85 * vmem_cap, 100 * 1024 * 1024))
    vmem_limit = max(vmem_limit, 32 * 1024 * 1024)

    # ---- host-side prep: fold pos embedding, cast weights ----
    x2 = (x.astype(f32) + params['pos'].astype(f32)).reshape(B * N, D)

    wqkv = params['wqkv'].astype(bf16)
    wout = params['wout'].astype(bf16)
    wff1 = params['wff1'].astype(bf16)
    wff2 = params['wff2'].astype(bf16)

    ln1_g, ln1_b = params['ln1_g'].astype(f32), params['ln1_b'].astype(f32)
    ln2_g, ln2_b = params['ln2_g'].astype(f32), params['ln2_b'].astype(f32)
    bout = params['bout'].astype(f32)
    bff1, bff2 = params['bff1'].astype(f32), params['bff2'].astype(f32)
    lnf_g, lnf_b = params['lnf_g'].astype(f32), params['lnf_b'].astype(f32)

    Pp = ((P + 127) // 128) * 128         # lane-dense projection width
    wproj = jnp.pad(params['wproj'].astype(bf16), ((0, 0), (0, Pp - P)))
    bproj = jnp.pad(params['bproj'].astype(f32), ((0, 0), (0, Pp - P)))

    # ---- BlockSpecs for the main (batch-block, depth) grid ----
    def act_spec():
        return pl.BlockSpec((R, D), lambda b, l: (b, 0))

    def layer_spec(a):                    # per-layer (depth, d1, d2) array
        _, d1, d2 = a.shape
        return pl.BlockSpec((None, d1, d2), lambda b, l: (l, 0, 0))

    in_specs = [
        act_spec(),                                      # x2 (pos already added)
        layer_spec(ln1_g), layer_spec(ln1_b),
        layer_spec(wqkv), layer_spec(wout), layer_spec(bout),
        layer_spec(ln2_g), layer_spec(ln2_b),
        layer_spec(wff1), layer_spec(bff1),
        layer_spec(wff2), layer_spec(bff2),
    ]

    kernel = functools.partial(vit_layer_kernel, heads=heads, dim_head=dim_head,
                               seq_len=N, approx_recip=approx_softmax_recip)

    act = pl.pallas_call(
        kernel,
        out_shape=jax.ShapeDtypeStruct((B * N, D), f32),
        grid=(B // Bt, depth),            # depth MUST stay innermost ("arbitrary")
        in_specs=in_specs,
        out_specs=pl.BlockSpec((R, D), lambda b, l: (b, 0)),
        scratch_shapes=[pltpu.VMEM((R, D), f32),       # residual-stream carry
                        pltpu.VMEM((R, inner), f32)],  # per-head attention output
        compiler_params=pltpu.CompilerParams(
            dimension_semantics=("parallel", "arbitrary"),
            vmem_limit_bytes=vmem_limit),
    )(x2, ln1_g, ln1_b, wqkv, wout, bout,
      ln2_g, ln2_b, wff1, bff1, wff2, bff2)

    # ---- second call: final LN + patch projection (lane-dense output) ----
    flat = pl.pallas_call(
        final_proj_kernel,
        out_shape=jax.ShapeDtypeStruct((B * N, Pp), f32),
        grid=(B // Bt,),
        in_specs=[
            pl.BlockSpec((R, D), lambda i: (i, 0)),
            pl.BlockSpec((1, D), lambda i: (0, 0)),
            pl.BlockSpec((1, D), lambda i: (0, 0)),
            pl.BlockSpec((D, Pp), lambda i: (0, 0)),
            pl.BlockSpec((1, Pp), lambda i: (0, 0)),
        ],
        out_specs=pl.BlockSpec((R, Pp), lambda i: (i, 0)),
        compiler_params=pltpu.CompilerParams(
            dimension_semantics=("parallel",),
            vmem_limit_bytes=vmem_limit),
    )(act, lnf_g, lnf_b, wproj, bproj)

    # strip lane padding; einops: 'n (h w) (ph pw c) -> n c (h ph) (w pw)'
    flat = flat[:, :P].reshape(B, N, P)
    img = flat.reshape(B, Hp, Wp, patch_size, patch_size, output_channels)
    img = jnp.transpose(img, (0, 5, 1, 3, 2, 4))   # B, C, Hp, ph, Wp, pw
    return img.reshape(B, output_channels, Hp * patch_size, Wp * patch_size)


# ---------------------------------------------------------------------------
# Deterministic parameter init (shapes from the module's __init__)
# ---------------------------------------------------------------------------
def init_params(key, *, latent_size, depth, heads, dim_head, ff_dim,
                total_patches, flatten_patch_size):
    D, F = latent_size, ff_dim
    inner = heads * dim_head
    ks = jax.random.split(key, 8)

    def nrm(k, shape, scale=0.05):
        return scale * jax.random.normal(k, shape, jnp.float32)

    return dict(
        pos=nrm(ks[0], (1, total_patches, D), 1.0),           # torch.randn
        ln1_g=jnp.ones((depth, 1, D), jnp.float32),
        ln1_b=jnp.zeros((depth, 1, D), jnp.float32),
        wqkv=nrm(ks[1], (depth, D, 3 * inner)),               # Linear, no bias
        wout=nrm(ks[2], (depth, inner, D)),
        bout=nrm(ks[3], (depth, 1, D)),
        ln2_g=jnp.ones((depth, 1, D), jnp.float32),
        ln2_b=jnp.zeros((depth, 1, D), jnp.float32),
        wff1=nrm(ks[4], (depth, D, F)),
        bff1=jnp.zeros((depth, 1, F), jnp.float32),
        wff2=nrm(ks[5], (depth, F, D)),
        bff2=jnp.zeros((depth, 1, D), jnp.float32),
        lnf_g=jnp.ones((1, D), jnp.float32),
        lnf_b=jnp.zeros((1, D), jnp.float32),
        wproj=nrm(ks[6], (D, flatten_patch_size)),
        bproj=nrm(ks[7], (1, flatten_patch_size)),
    )


# ---------------------------------------------------------------------------
# Pure-JAX f32 reference (faithful to the PyTorch module) for correctness
# ---------------------------------------------------------------------------
def ref_forward(x, p, *, depth, heads, dim_head,
                output_channels, image_size, patch_size):
    B, N, D = x.shape
    dh = dim_head
    inner = heads * dh
    scale = dh ** -0.5
    x = x + p['pos']
    for l in range(depth):
        xn = _layernorm(x, p['ln1_g'][l], p['ln1_b'][l])
        qkv = xn @ p['wqkv'][l]
        q, k, v = jnp.split(qkv, 3, axis=-1)
        sh = lambda t: t.reshape(B, N, heads, dh).transpose(0, 2, 1, 3)
        q, k, v = sh(q), sh(k), sh(v)
        dots = jnp.einsum('bhnd,bhmd->bhnm', q, k) * scale
        attn = jax.nn.softmax(dots, axis=-1)
        out = jnp.einsum('bhnm,bhmd->bhnd', attn, v)
        out = out.transpose(0, 2, 1, 3).reshape(B, N, inner)
        x = x + (out @ p['wout'][l] + p['bout'][l])
        xn = _layernorm(x, p['ln2_g'][l], p['ln2_b'][l])
        h1 = jax.nn.gelu(xn @ p['wff1'][l] + p['bff1'][l], approximate=False)
        x = x + (h1 @ p['wff2'][l] + p['bff2'][l])
    x = _layernorm(x, p['lnf_g'], p['lnf_b'])
    fp = x @ p['wproj'] + p['bproj']
    Hp = Wp = image_size // patch_size
    img = fp.reshape(B, Hp, Wp, patch_size, patch_size, output_channels)
    img = jnp.transpose(img, (0, 5, 1, 3, 2, 4))
    return img.reshape(B, output_channels, Hp * patch_size, Wp * patch_size)


if __name__ == "__main__":
    # Small but shape-consistent config
    output_channels = 3
    image_size = 16
    patch_size = 4
    latent_size = 32
    depth = 2
    heads = 4
    dim_head = heads          # TransEncoder passes dim_head = heads
    ff_dim = 64

    total_patches = (image_size // patch_size) ** 2                  # 16
    flatten_patch_size = output_channels * patch_size * patch_size   # 48
    B = 8                     # divisible into 1 or 2 batch blocks

    key = jax.random.PRNGKey(0)
    kx, kp = jax.random.split(key)
    x = jax.random.normal(kx, (B, total_patches, latent_size), jnp.float32)
    params = init_params(kp, latent_size=latent_size, depth=depth, heads=heads,
                         dim_head=dim_head, ff_dim=ff_dim,
                         total_patches=total_patches,
                         flatten_patch_size=flatten_patch_size)

    out = basic_vit_decoder_forward(
        x, params, depth=depth, heads=heads, dim_head=dim_head,
        output_channels=output_channels,
        image_size=image_size, patch_size=patch_size)
    out = jax.block_until_ready(out)

    ref = jax.block_until_ready(
        ref_forward(x, params, depth=depth, heads=heads, dim_head=dim_head,
                    output_channels=output_channels,
                    image_size=image_size, patch_size=patch_size))

    assert out.shape == (B, output_channels, image_size, image_size), out.shape
    # kernel uses bf16 matmul operands (f32 accumulate), tanh-GELU and an
    # approx softmax reciprocal; reference is pure f32 exact-GELU -> allow
    # mixed-precision tolerance.
    err = float(jnp.max(jnp.abs(out - ref)))
    assert err < 2e-2, err
    print("KERNEL_OK")
</pallas_src>

<mosaic_0001>
module attributes {stable_mosaic.version = 11 : i64} {
  func.func @vit_layer_kernel(%arg0: i32, %arg1: i32, %arg2: memref<128x32xf32, #tpu.memory_space<vmem>>, %arg3: memref<1x1x32xf32, #tpu.memory_space<vmem>>, %arg4: memref<1x1x32xf32, #tpu.memory_space<vmem>>, %arg5: memref<1x32x48xbf16, #tpu.memory_space<vmem>>, %arg6: memref<1x16x32xbf16, #tpu.memory_space<vmem>>, %arg7: memref<1x1x32xf32, #tpu.memory_space<vmem>>, %arg8: memref<1x1x32xf32, #tpu.memory_space<vmem>>, %arg9: memref<1x1x32xf32, #tpu.memory_space<vmem>>, %arg10: memref<1x32x64xbf16, #tpu.memory_space<vmem>>, %arg11: memref<1x1x64xf32, #tpu.memory_space<vmem>>, %arg12: memref<1x64x32xbf16, #tpu.memory_space<vmem>>, %arg13: memref<1x1x32xf32, #tpu.memory_space<vmem>>, %arg14: memref<128x32xf32, #tpu.memory_space<vmem>>, %arg15: memref<128x32xf32, #tpu.memory_space<vmem>>, %arg16: memref<128x16xf32, #tpu.memory_space<vmem>>) attributes {dimension_semantics = [#tpu.dimension_semantics<parallel>, #tpu.dimension_semantics<arbitrary>], iteration_bounds = array<i64: 1, 2>, scalar_prefetch = 0 : i64, scratch_operands = 2 : i64, tpu.core_type = #tpu.core_type<tc>, window_params = [{transform_indices = @transform_0, window_bounds = array<i64: 128, 32>}, {transform_indices = @transform_1, window_bounds = array<i64: 1, 1, 32>}, {transform_indices = @transform_2, window_bounds = array<i64: 1, 1, 32>}, {transform_indices = @transform_3, window_bounds = array<i64: 1, 32, 48>}, {transform_indices = @transform_4, window_bounds = array<i64: 1, 16, 32>}, {transform_indices = @transform_5, window_bounds = array<i64: 1, 1, 32>}, {transform_indices = @transform_6, window_bounds = array<i64: 1, 1, 32>}, {transform_indices = @transform_7, window_bounds = array<i64: 1, 1, 32>}, {transform_indices = @transform_8, window_bounds = array<i64: 1, 32, 64>}, {transform_indices = @transform_9, window_bounds = array<i64: 1, 1, 64>}, {transform_indices = @transform_10, window_bounds = array<i64: 1, 64, 32>}, {transform_indices = @transform_11, window_bounds = array<i64: 1, 1, 32>}, {transform_indices = @transform_12, window_bounds = array<i64: 128, 32>}]} {
    %c0_i32 = arith.constant 0 : i32
    %0 = arith.cmpi eq, %arg1, %c0_i32 : i32
    %1 = arith.extui %0 : i1 to i32
    %c0_i32_0 = arith.constant 0 : i32
    %2 = arith.cmpi ne, %1, %c0_i32_0 : i32
    scf.if %2 {
      %c0_82 = arith.constant 0 : index
      %c0_83 = arith.constant 0 : index
      %188 = vector.load %arg2[%c0_82, %c0_83] : memref<128x32xf32, #tpu.memory_space<vmem>>, vector<128x32xf32>
      %c0_84 = arith.constant 0 : index
      %c0_85 = arith.constant 0 : index
      %189 = vector.load %arg15[%c0_84, %c0_85] : memref<128x32xf32, #tpu.memory_space<vmem>>, vector<128x32xf32>
      tpu.vector_store %arg15[%c0_84, %c0_85], %188 {strides = array<i32>} : memref<128x32xf32, #tpu.memory_space<vmem>>, vector<128x32xf32>,
    } else {
    }
    %c0 = arith.constant 0 : index
    %c0_1 = arith.constant 0 : index
    %3 = vector.load %arg15[%c0, %c0_1] : memref<128x32xf32, #tpu.memory_space<vmem>>, vector<128x32xf32>
    %c0_2 = arith.constant 0 : index
    %c0_3 = arith.constant 0 : index
    %c0_4 = arith.constant 0 : index
    %4 = vector.load %arg3[%c0_2, %c0_3, %c0_4] : memref<1x1x32xf32, #tpu.memory_space<vmem>>, vector<1x1x32xf32>
    %5 = vector.shape_cast %4 : vector<1x1x32xf32> to vector<1x32xf32>
    %c0_5 = arith.constant 0 : index
    %c0_6 = arith.constant 0 : index
    %c0_7 = arith.constant 0 : index
    %6 = vector.load %arg4[%c0_5, %c0_6, %c0_7] : memref<1x1x32xf32, #tpu.memory_space<vmem>>, vector<1x1x32xf32>
    %7 = vector.shape_cast %6 : vector<1x1x32xf32> to vector<1x32xf32>
    %cst = arith.constant dense<0.000000e+00> : vector<128xf32>
    %8 = vector.multi_reduction <add>, %3, %cst [1] : vector<128x32xf32> to vector<128xf32>
    %9 = vector.shape_cast %8 : vector<128xf32> to vector<128x1xf32>
    %cst_8 = arith.constant 3.200000e+01 : f32
    %10 = vector.broadcast %cst_8 : f32 to vector<128x1xf32>
    %11 = arith.divf %9, %10 : vector<128x1xf32>
    %12 = vector.broadcast %11 : vector<128x1xf32> to vector<128x32xf32>
    %13 = arith.subf %3, %12 : vector<128x32xf32>
    %14 = arith.mulf %13, %13 : vector<128x32xf32>
    %cst_9 = arith.constant dense<0.000000e+00> : vector<128xf32>
    %15 = vector.multi_reduction <add>, %14, %cst_9 [1] : vector<128x32xf32> to vector<128xf32>
    %16 = vector.shape_cast %15 : vector<128xf32> to vector<128x1xf32>
    %cst_10 = arith.constant 3.200000e+01 : f32
    %17 = vector.broadcast %cst_10 : f32 to vector<128x1xf32>
    %18 = arith.divf %16, %17 : vector<128x1xf32>
    %cst_11 = arith.constant 9.99999974E-6 : f32
    %19 = vector.broadcast %cst_11 : f32 to vector<128x1xf32>
    %20 = arith.addf %18, %19 : vector<128x1xf32>
    %21 = math.rsqrt %20 : vector<128x1xf32>
    %22 = vector.broadcast %21 : vector<128x1xf32> to vector<128x32xf32>
    %23 = arith.mulf %13, %22 : vector<128x32xf32>
    %24 = vector.broadcast %5 : vector<1x32xf32> to vector<128x32xf32>
    %25 = arith.mulf %23, %24 : vector<128x32xf32>
    %26 = vector.broadcast %7 : vector<1x32xf32> to vector<128x32xf32>
    %27 = arith.addf %25, %26 : vector<128x32xf32>
    %28 = arith.truncf %27 : vector<128x32xf32> to vector<128x32xbf16>
    %c0_12 = arith.constant 0 : index
    %c0_13 = arith.constant 0 : index
    %c0_14 = arith.constant 0 : index
    %29 = vector.load %arg5[%c0_12, %c0_13, %c0_14] : memref<1x32x48xbf16, #tpu.memory_space<vmem>>, vector<1x32x48xbf16>
    %30 = vector.shape_cast %29 : vector<1x32x48xbf16> to vector<32x48xbf16>
    %cst_15 = arith.constant dense<0.000000e+00> : vector<128x48xf32>
    %31 = tpu.matmul %28, %30, %cst_15 {dimension_numbers = #tpu.dot_dimension_numbers<[1], [0], [0], [1], [0, 0, 1, 1], [], []>} : vector<128x32xbf16>, vector<32x48xbf16>, vector<128x48xf32> -> vector<128x48xf32>
    %32 = vector.extract_strided_slice %31 {offsets = [0, 0], sizes = [128, 4], strides = [1, 1]} : vector<128x48xf32> to vector<128x4xf32>
    %33 = vector.shape_cast %32 : vector<128x4xf32> to vector<8x16x4xf32>
    %34 = vector.extract_strided_slice %31 {offsets = [0, 16], sizes = [128, 4], strides = [1, 1]} : vector<128x48xf32> to vector<128x4xf32>
    %35 = vector.shape_cast %34 : vector<128x4xf32> to vector<8x16x4xf32>
    %36 = vector.extract_strided_slice %31 {offsets = [0, 32], sizes = [128, 4], strides = [1, 1]} : vector<128x48xf32> to vector<128x4xf32>
    %37 = vector.shape_cast %36 : vector<128x4xf32> to vector<8x16x4xf32>
    "tpu.trace_start"() <{level = 10 : i32, message = "bnd,bmd->bnm"}> : () -> ()
    %cst_16 = arith.constant dense<0.000000e+00> : vector<8x16x16xf32>
    %38 = tpu.matmul %33, %35, %cst_16 {dimension_numbers = #tpu.dot_dimension_numbers<[2], [2], [1], [1], [0, 0, 0, 1, 1, 1], [0], [0]>} : vector<8x16x4xf32>, vector<8x16x4xf32>, vector<8x16x16xf32> -> vector<8x16x16xf32>
    "tpu.trace_stop"() : () -> ()
    %cst_17 = arith.constant 5.000000e-01 : f32
    %39 = vector.broadcast %cst_17 : f32 to vector<8x16x16xf32>
    %40 = arith.mulf %38, %39 : vector<8x16x16xf32>
    %cst_18 = arith.constant dense<0xFF800000> : vector<8x16xf32>
    %41 = vector.multi_reduction <maximumf>, %40, %cst_18 [2] : vector<8x16x16xf32> to vector<8x16xf32>
    %42 = vector.shape_cast %41 : vector<8x16xf32> to vector<8x16x1xf32>
    %43 = vector.broadcast %42 : vector<8x16x1xf32> to vector<8x16x16xf32>
    %44 = arith.subf %40, %43 : vector<8x16x16xf32>
    %45 = math.exp %44 : vector<8x16x16xf32>
    %cst_19 = arith.constant dense<0.000000e+00> : vector<8x16xf32>
    %46 = vector.multi_reduction <add>, %45, %cst_19 [2] : vector<8x16x16xf32> to vector<8x16xf32>
    %47 = vector.shape_cast %46 : vector<8x16xf32> to vector<8x16x1xf32>
    %48 = tpu.reciprocal %47 {approx = true} : vector<8x16x1xf32> -> vector<8x16x1xf32>
    %49 = vector.broadcast %48 : vector<8x16x1xf32> to vector<8x16x16xf32>
    %50 = arith.mulf %45, %49 : vector<8x16x16xf32>
    "tpu.trace_start"() <{level = 10 : i32, message = "bnm,bmd->bnd"}> : () -> ()
    %cst_20 = arith.constant dense<0.000000e+00> : vector<8x16x4xf32>
    %51 = tpu.matmul %50, %37, %cst_20 {dimension_numbers = #tpu.dot_dimension_numbers<[2], [1], [1], [2], [0, 0, 0, 1, 1, 2], [0], [0]>} : vector<8x16x16xf32>, vector<8x16x4xf32>, vector<8x16x4xf32> -> vector<8x16x4xf32>
    "tpu.trace_stop"() : () -> ()
    %52 = vector.shape_cast %51 : vector<8x16x4xf32> to vector<128x4xf32>
    %c0_21 = arith.constant 0 : index
    %c0_22 = arith.constant 0 : index
    %53 = vector.load %arg16[%c0_21, %c0_22] : memref<128x16xf32, #tpu.memory_space<vmem>>, vector<128x4xf32>
    tpu.vector_store %arg16[%c0_21, %c0_22], %52 {strides = array<i32>} : memref<128x16xf32, #tpu.memory_space<vmem>>, vector<128x4xf32>,
    %54 = vector.extract_strided_slice %31 {offsets = [0, 4], sizes = [128, 4], strides = [1, 1]} : vector<128x48xf32> to vector<128x4xf32>
    %55 = vector.shape_cast %54 : vector<128x4xf32> to vector<8x16x4xf32>
    %56 = vector.extract_strided_slice %31 {offsets = [0, 20], sizes = [128, 4], strides = [1, 1]} : vector<128x48xf32> to vector<128x4xf32>
    %57 = vector.shape_cast %56 : vector<128x4xf32> to vector<8x16x4xf32>
    %58 = vector.extract_strided_slice %31 {offsets = [0, 36], sizes = [128, 4], strides = [1, 1]} : vector<128x48xf32> to vector<128x4xf32>
    %59 = vector.shape_cast %58 : vector<128x4xf32> to vector<8x16x4xf32>
    "tpu.trace_start"() <{level = 10 : i32, message = "bnd,bmd->bnm"}> : () -> ()
    %cst_23 = arith.constant dense<0.000000e+00> : vector<8x16x16xf32>
    %60 = tpu.matmul %55, %57, %cst_23 {dimension_numbers = #tpu.dot_dimension_numbers<[2], [2], [1], [1], [0, 0, 0, 1, 1, 1], [0], [0]>} : vector<8x16x4xf32>, vector<8x16x4xf32>, vector<8x16x16xf32> -> vector<8x16x16xf32>
    "tpu.trace_stop"() : () -> ()
    %cst_24 = arith.constant 5.000000e-01 : f32
    %61 = vector.broadcast %cst_24 : f32 to vector<8x16x16xf32>
    %62 = arith.mulf %60, %61 : vector<8x16x16xf32>
    %cst_25 = arith.constant dense<0xFF800000> : vector<8x16xf32>
    %63 = vector.multi_reduction <maximumf>, %62, %cst_25 [2] : vector<8x16x16xf32> to vector<8x16xf32>
    %64 = vector.shape_cast %63 : vector<8x16xf32> to vector<8x16x1xf32>
    %65 = vector.broadcast %64 : vector<8x16x1xf32> to vector<8x16x16xf32>
    %66 = arith.subf %62, %65 : vector<8x16x16xf32>
    %67 = math.exp %66 : vector<8x16x16xf32>
    %cst_26 = arith.constant dense<0.000000e+00> : vector<8x16xf32>
    %68 = vector.multi_reduction <add>, %67, %cst_26 [2] : vector<8x16x16xf32> to vector<8x16xf32>
    %69 = vector.shape_cast %68 : vector<8x16xf32> to vector<8x16x1xf32>
    %70 = tpu.reciprocal %69 {approx = true} : vector<8x16x1xf32> -> vector<8x16x1xf32>
    %71 = vector.broadcast %70 : vector<8x16x1xf32> to vector<8x16x16xf32>
    %72 = arith.mulf %67, %71 : vector<8x16x16xf32>
    "tpu.trace_start"() <{level = 10 : i32, message = "bnm,bmd->bnd"}> : () -> ()
    %cst_27 = arith.constant dense<0.000000e+00> : vector<8x16x4xf32>
    %73 = tpu.matmul %72, %59, %cst_27 {dimension_numbers = #tpu.dot_dimension_numbers<[2], [1], [1], [2], [0, 0, 0, 1, 1, 2], [0], [0]>} : vector<8x16x16xf32>, vector<8x16x4xf32>, vector<8x16x4xf32> -> vector<8x16x4xf32>
    "tpu.trace_stop"() : () -> ()
    %74 = vector.shape_cast %73 : vector<8x16x4xf32> to vector<128x4xf32>
    %c0_28 = arith.constant 0 : index
    %c4 = arith.constant 4 : index
    %75 = vector.load %arg16[%c0_28, %c4] : memref<128x16xf32, #tpu.memory_space<vmem>>, vector<128x4xf32>
    tpu.vector_store %arg16[%c0_28, %c4], %74 {strides = array<i32>} : memref<128x16xf32, #tpu.memory_space<vmem>>, vector<128x4xf32>,
    %76 = vector.extract_strided_slice %31 {offsets = [0, 8], sizes = [128, 4], strides = [1, 1]} : vector<128x48xf32> to vector<128x4xf32>
    %77 = vector.shape_cast %76 : vector<128x4xf32> to vector<8x16x4xf32>
    %78 = vector.extract_strided_slice %31 {offsets = [0, 24], sizes = [128, 4], strides = [1, 1]} : vector<128x48xf32> to vector<128x4xf32>
    %79 = vector.shape_cast %78 : vector<128x4xf32> to vector<8x16x4xf32>
    %80 = vector.extract_strided_slice %31 {offsets = [0, 40], sizes = [128, 4], strides = [1, 1]} : vector<128x48xf32> to vector<128x4xf32>
    %81 = vector.shape_cast %80 : vector<128x4xf32> to vector<8x16x4xf32>
    "tpu.trace_start"() <{level = 10 : i32, message = "bnd,bmd->bnm"}> : () -> ()
    %cst_29 = arith.constant dense<0.000000e+00> : vector<8x16x16xf32>
    %82 = tpu.matmul %77, %79, %cst_29 {dimension_numbers = #tpu.dot_dimension_numbers<[2], [2], [1], [1], [0, 0, 0, 1, 1, 1], [0], [0]>} : vector<8x16x4xf32>, vector<8x16x4xf32>, vector<8x16x16xf32> -> vector<8x16x16xf32>
    "tpu.trace_stop"() : () -> ()
    %cst_30 = arith.constant 5.000000e-01 : f32
    %83 = vector.broadcast %cst_30 : f32 to vector<8x16x16xf32>
    %84 = arith.mulf %82, %83 : vector<8x16x16xf32>
    %cst_31 = arith.constant dense<0xFF800000> : vector<8x16xf32>
    %85 = vector.multi_reduction <maximumf>, %84, %cst_31 [2] : vector<8x16x16xf32> to vector<8x16xf32>
    %86 = vector.shape_cast %85 : vector<8x16xf32> to vector<8x16x1xf32>
    %87 = vector.broadcast %86 : vector<8x16x1xf32> to vector<8x16x16xf32>
    %88 = arith.subf %84, %87 : vector<8x16x16xf32>
    %89 = math.exp %88 : vector<8x16x16xf32>
    %cst_32 = arith.constant dense<0.000000e+00> : vector<8x16xf32>
    %90 = vector.multi_reduction <add>, %89, %cst_32 [2] : vector<8x16x16xf32> to vector<8x16xf32>
    %91 = vector.shape_cast %90 : vector<8x16xf32> to vector<8x16x1xf32>
    %92 = tpu.reciprocal %91 {approx = true} : vector<8x16x1xf32> -> vector<8x16x1xf32>
    %93 = vector.broadcast %92 : vector<8x16x1xf32> to vector<8x16x16xf32>
    %94 = arith.mulf %89, %93 : vector<8x16x16xf32>
    "tpu.trace_start"() <{level = 10 : i32, message = "bnm,bmd->bnd"}> : () -> ()
    %cst_33 = arith.constant dense<0.000000e+00> : vector<8x16x4xf32>
    %95 = tpu.matmul %94, %81, %cst_33 {dimension_numbers = #tpu.dot_dimension_numbers<[2], [1], [1], [2], [0, 0, 0, 1, 1, 2], [0], [0]>} : vector<8x16x16xf32>, vector<8x16x4xf32>, vector<8x16x4xf32> -> vector<8x16x4xf32>
    "tpu.trace_stop"() : () -> ()
    %96 = vector.shape_cast %95 : vector<8x16x4xf32> to vector<128x4xf32>
    %c0_34 = arith.constant 0 : index
    %c8 = arith.constant 8 : index
    %97 = vector.load %arg16[%c0_34, %c8] : memref<128x16xf32, #tpu.memory_space<vmem>>, vector<128x4xf32>
    tpu.vector_store %arg16[%c0_34, %c8], %96 {strides = array<i32>} : memref<128x16xf32, #tpu.memory_space<vmem>>, vector<128x4xf32>,
    %98 = vector.extract_strided_slice %31 {offsets = [0, 12], sizes = [128, 4], strides = [1, 1]} : vector<128x48xf32> to vector<128x4xf32>
    %99 = vector.shape_cast %98 : vector<128x4xf32> to vector<8x16x4xf32>
    %100 = vector.extract_strided_slice %31 {offsets = [0, 28], sizes = [128, 4], strides = [1, 1]} : vector<128x48xf32> to vector<128x4xf32>
    %101 = vector.shape_cast %100 : vector<128x4xf32> to vector<8x16x4xf32>
    %102 = vector.extract_strided_slice %31 {offsets = [0, 44], sizes = [128, 4], strides = [1, 1]} : vector<128x48xf32> to vector<128x4xf32>
    %103 = vector.shape_cast %102 : vector<128x4xf32> to vector<8x16x4xf32>
    "tpu.trace_start"() <{level = 10 : i32, message = "bnd,bmd->bnm"}> : () -> ()
    %cst_35 = arith.constant dense<0.000000e+00> : vector<8x16x16xf32>
    %104 = tpu.matmul %99, %101, %cst_35 {dimension_numbers = #tpu.dot_dimension_numbers<[2], [2], [1], [1], [0, 0, 0, 1, 1, 1], [0], [0]>} : vector<8x16x4xf32>, vector<8x16x4xf32>, vector<8x16x16xf32> -> vector<8x16x16xf32>
    "tpu.trace_stop"() : () -> ()
    %cst_36 = arith.constant 5.000000e-01 : f32
    %105 = vector.broadcast %cst_36 : f32 to vector<8x16x16xf32>
    %106 = arith.mulf %104, %105 : vector<8x16x16xf32>
    %cst_37 = arith.constant dense<0xFF800000> : vector<8x16xf32>
    %107 = vector.multi_reduction <maximumf>, %106, %cst_37 [2] : vector<8x16x16xf32> to vector<8x16xf32>
    %108 = vector.shape_cast %107 : vector<8x16xf32> to vector<8x16x1xf32>
    %109 = vector.broadcast %108 : vector<8x16x1xf32> to vector<8x16x16xf32>
    %110 = arith.subf %106, %109 : vector<8x16x16xf32>
    %111 = math.exp %110 : vector<8x16x16xf32>
    %cst_38 = arith.constant dense<0.000000e+00> : vector<8x16xf32>
    %112 = vector.multi_reduction <add>, %111, %cst_38 [2] : vector<8x16x16xf32> to vector<8x16xf32>
    %113 = vector.shape_cast %112 : vector<8x16xf32> to vector<8x16x1xf32>
    %114 = tpu.reciprocal %113 {approx = true} : vector<8x16x1xf32> -> vector<8x16x1xf32>
    %115 = vector.broadcast %114 : vector<8x16x1xf32> to vector<8x16x16xf32>
    %116 = arith.mulf %111, %115 : vector<8x16x16xf32>
    "tpu.trace_start"() <{level = 10 : i32, message = "bnm,bmd->bnd"}> : () -> ()
    %cst_39 = arith.constant dense<0.000000e+00> : vector<8x16x4xf32>
    %117 = tpu.matmul %116, %103, %cst_39 {dimension_numbers = #tpu.dot_dimension_numbers<[2], [1], [1], [2], [0, 0, 0, 1, 1, 2], [0], [0]>} : vector<8x16x16xf32>, vector<8x16x4xf32>, vector<8x16x4xf32> -> vector<8x16x4xf32>
    "tpu.trace_stop"() : () -> ()
    %118 = vector.shape_cast %117 : vector<8x16x4xf32> to vector<128x4xf32>
    %c0_40 = arith.constant 0 : index
    %c12 = arith.constant 12 : index
    %119 = vector.load %arg16[%c0_40, %c12] : memref<128x16xf32, #tpu.memory_space<vmem>>, vector<128x4xf32>
    tpu.vector_store %arg16[%c0_40, %c12], %118 {strides = array<i32>} : memref<128x16xf32, #tpu.memory_space<vmem>>, vector<128x4xf32>,
    %c0_41 = arith.constant 0 : index
    %c0_42 = arith.constant 0 : index
    %120 = vector.load %arg16[%c0_41, %c0_42] : memref<128x16xf32, #tpu.memory_space<vmem>>, vector<128x16xf32>
    %121 = arith.truncf %120 : vector<128x16xf32> to vector<128x16xbf16>
    %c0_43 = arith.constant 0 : index
    %c0_44 = arith.constant 0 : index
    %c0_45 = arith.constant 0 : index
    %122 = vector.load %arg6[%c0_43, %c0_44, %c0_45] : memref<1x16x32xbf16, #tpu.memory_space<vmem>>, vector<1x16x32xbf16>
    %123 = vector.shape_cast %122 : vector<1x16x32xbf16> to vector<16x32xbf16>
    %cst_46 = arith.constant dense<0.000000e+00> : vector<128x32xf32>
    %124 = tpu.matmul %121, %123, %cst_46 {dimension_numbers = #tpu.dot_dimension_numbers<[1], [0], [0], [1], [0, 0, 1, 1], [], []>} : vector<128x16xbf16>, vector<16x32xbf16>, vector<128x32xf32> -> vector<128x32xf32>
    %c0_47 = arith.constant 0 : index
    %c0_48 = arith.constant 0 : index
    %c0_49 = arith.constant 0 : index
    %125 = vector.load %arg7[%c0_47, %c0_48, %c0_49] : memref<1x1x32xf32, #tpu.memory_space<vmem>>, vector<1x1x32xf32>
    %126 = vector.shape_cast %125 : vector<1x1x32xf32> to vector<1x32xf32>
    %127 = vector.broadcast %126 : vector<1x32xf32> to vector<128x32xf32>
    %128 = arith.addf %124, %127 : vector<128x32xf32>
    %129 = arith.addf %3, %128 : vector<128x32xf32>
    %c0_50 = arith.constant 0 : index
    %c0_51 = arith.constant 0 : index
    %c0_52 = arith.constant 0 : index
    %130 = vector.load %arg8[%c0_50, %c0_51, %c0_52] : memref<1x1x32xf32, #tpu.memory_space<vmem>>, vector<1x1x32xf32>
    %131 = vector.shape_cast %130 : vector<1x1x32xf32> to vector<1x32xf32>
    %c0_53 = arith.constant 0 : index
    %c0_54 = arith.constant 0 : index
    %c0_55 = arith.constant 0 : index
    %132 = vector.load %arg9[%c0_53, %c0_54, %c0_55] : memref<1x1x32xf32, #tpu.memory_space<vmem>>, vector<1x1x32xf32>
    %133 = vector.shape_cast %132 : vector<1x1x32xf32> to vector<1x32xf32>
    %cst_56 = arith.constant dense<0.000000e+00> : vector<128xf32>
    %134 = vector.multi_reduction <add>, %129, %cst_56 [1] : vector<128x32xf32> to vector<128xf32>
    %135 = vector.shape_cast %134 : vector<128xf32> to vector<128x1xf32>
    %cst_57 = arith.constant 3.200000e+01 : f32
    %136 = vector.broadcast %cst_57 : f32 to vector<128x1xf32>
    %137 = arith.divf %135, %136 : vector<128x1xf32>
    %138 = vector.broadcast %137 : vector<128x1xf32> to vector<128x32xf32>
    %139 = arith.subf %129, %138 : vector<128x32xf32>
    %140 = arith.mulf %139, %139 : vector<128x32xf32>
    %cst_58 = arith.constant dense<0.000000e+00> : vector<128xf32>
    %141 = vector.multi_reduction <add>, %140, %cst_58 [1] : vector<128x32xf32> to vector<128xf32>
    %142 = vector.shape_cast %141 : vector<128xf32> to vector<128x1xf32>
    %cst_59 = arith.constant 3.200000e+01 : f32
    %143 = vector.broadcast %cst_59 : f32 to vector<128x1xf32>
    %144 = arith.divf %142, %143 : vector<128x1xf32>
    %cst_60 = arith.constant 9.99999974E-6 : f32
    %145 = vector.broadcast %cst_60 : f32 to vector<128x1xf32>
    %146 = arith.addf %144, %145 : vector<128x1xf32>
    %147 = math.rsqrt %146 : vector<128x1xf32>
    %148 = vector.broadcast %147 : vector<128x1xf32> to vector<128x32xf32>
    %149 = arith.mulf %139, %148 : vector<128x32xf32>
    %150 = vector.broadcast %131 : vector<1x32xf32> to vector<128x32xf32>
    %151 = arith.mulf %149, %150 : vector<128x32xf32>
    %152 = vector.broadcast %133 : vector<1x32xf32> to vector<128x32xf32>
    %153 = arith.addf %151, %152 : vector<128x32xf32>
    %154 = arith.truncf %153 : vector<128x32xf32> to vector<128x32xbf16>
    %c0_61 = arith.constant 0 : index
    %c0_62 = arith.constant 0 : index
    %c0_63 = arith.constant 0 : index
    %155 = vector.load %arg10[%c0_61, %c0_62, %c0_63] : memref<1x32x64xbf16, #tpu.memory_space<vmem>>, vector<1x32x64xbf16>
    %156 = vector.shape_cast %155 : vector<1x32x64xbf16> to vector<32x64xbf16>
    %cst_64 = arith.constant dense<0.000000e+00> : vector<128x64xf32>
    %157 = tpu.matmul %154, %156, %cst_64 {dimension_numbers = #tpu.dot_dimension_numbers<[1], [0], [0], [1], [0, 0, 1, 1], [], []>} : vector<128x32xbf16>, vector<32x64xbf16>, vector<128x64xf32> -> vector<128x64xf32>
    %c0_65 = arith.constant 0 : index
    %c0_66 = arith.constant 0 : index
    %c0_67 = arith.constant 0 : index
    %158 = vector.load %arg11[%c0_65, %c0_66, %c0_67] : memref<1x1x64xf32, #tpu.memory_space<vmem>>, vector<1x1x64xf32>
    %159 = vector.shape_cast %158 : vector<1x1x64xf32> to vector<1x64xf32>
    %160 = vector.broadcast %159 : vector<1x64xf32> to vector<128x64xf32>
    %161 = arith.addf %157, %160 : vector<128x64xf32>
    %cst_68 = arith.constant 5.000000e-01 : f32
    %162 = vector.broadcast %cst_68 : f32 to vector<128x64xf32>
    %163 = arith.mulf %162, %161 : vector<128x64xf32>
    %cst_69 = arith.constant 4.471500e-02 : f32
    %164 = vector.broadcast %cst_69 : f32 to vector<128x64xf32>
    %165 = arith.mulf %164, %161 : vector<128x64xf32>
    %166 = arith.mulf %165, %161 : vector<128x64xf32>
    %167 = arith.mulf %166, %161 : vector<128x64xf32>
    %168 = arith.addf %161, %167 : vector<128x64xf32>
    %cst_70 = arith.constant 0.797884583 : f32
    %169 = vector.broadcast %cst_70 : f32 to vector<128x64xf32>
    %170 = arith.mulf %169, %168 : vector<128x64xf32>
    %171 = math.tanh %170 : vector<128x64xf32>
    %cst_71 = arith.constant 1.000000e+00 : f32
    %172 = vector.broadcast %cst_71 : f32 to vector<128x64xf32>
    %173 = arith.addf %172, %171 : vector<128x64xf32>
    %174 = arith.mulf %163, %173 : vector<128x64xf32>
    %175 = arith.truncf %174 : vector<128x64xf32> to vector<128x64xbf16>
    %c0_72 = arith.constant 0 : index
    %c0_73 = arith.constant 0 : index
    %c0_74 = arith.constant 0 : index
    %176 = vector.load %arg12[%c0_72, %c0_73, %c0_74] : memref<1x64x32xbf16, #tpu.memory_space<vmem>>, vector<1x64x32xbf16>
    %177 = vector.shape_cast %176 : vector<1x64x32xbf16> to vector<64x32xbf16>
    %cst_75 = arith.constant dense<0.000000e+00> : vector<128x32xf32>
    %178 = tpu.matmul %175, %177, %cst_75 {dimension_numbers = #tpu.dot_dimension_numbers<[1], [0], [0], [1], [0, 0, 1, 1], [], []>} : vector<128x64xbf16>, vector<64x32xbf16>, vector<128x32xf32> -> vector<128x32xf32>
    %c0_76 = arith.constant 0 : index
    %c0_77 = arith.constant 0 : index
    %c0_78 = arith.constant 0 : index
    %179 = vector.load %arg13[%c0_76, %c0_77, %c0_78] : memref<1x1x32xf32, #tpu.memory_space<vmem>>, vector<1x1x32xf32>
    %180 = vector.shape_cast %179 : vector<1x1x32xf32> to vector<1x32xf32>
    %181 = vector.broadcast %180 : vector<1x32xf32> to vector<128x32xf32>
    %182 = arith.addf %178, %181 : vector<128x32xf32>
    %183 = arith.addf %129, %182 : vector<128x32xf32>
    %c0_79 = arith.constant 0 : index
    %c0_80 = arith.constant 0 : index
    %184 = vector.load %arg15[%c0_79, %c0_80] : memref<128x32xf32, #tpu.memory_space<vmem>>, vector<128x32xf32>
    tpu.vector_store %arg15[%c0_79, %c0_80], %183 {strides = array<i32>} : memref<128x32xf32, #tpu.memory_space<vmem>>, vector<128x32xf32>,
    %c1_i32 = arith.constant 1 : i32
    %185 = arith.cmpi eq, %arg1, %c1_i32 : i32
    %186 = arith.extui %185 : i1 to i32
    %c0_i32_81 = arith.constant 0 : i32
    %187 = arith.cmpi ne, %186, %c0_i32_81 : i32
    scf.if %187 {
      %c0_82 = arith.constant 0 : index
      %c0_83 = arith.constant 0 : index
      %188 = vector.load %arg14[%c0_82, %c0_83] : memref<128x32xf32, #tpu.memory_space<vmem>>, vector<128x32xf32>
      tpu.vector_store %arg14[%c0_82, %c0_83], %183 {strides = array<i32>} : memref<128x32xf32, #tpu.memory_space<vmem>>, vector<128x32xf32>,
    } else {
    }
    return
  }
  func.func @transform_0(%arg0: i32, %arg1: i32) -> (i32, i32) {
    %c0_i32 = arith.constant 0 : i32
    %c0_i32_0 = arith.constant 0 : i32
    return %arg0, %c0_i32 : i32, i32
  }
  func.func @transform_1(%arg0: i32, %arg1: i32) -> (i32, i32, i32) {
    %c0_i32 = arith.constant 0 : i32
    %c0_i32_0 = arith.constant 0 : i32
    %c0_i32_1 = arith.constant 0 : i32
    return %arg1, %c0_i32, %c0_i32_0 : i32, i32, i32
  }
  func.func @transform_2(%arg0: i32, %arg1: i32) -> (i32, i32, i32) {
    %c0_i32 = arith.constant 0 : i32
    %c0_i32_0 = arith.constant 0 : i32
    %c0_i32_1 = arith.constant 0 : i32
    return %arg1, %c0_i32, %c0_i32_0 : i32, i32, i32
  }
  func.func @transform_3(%arg0: i32, %arg1: i32) -> (i32, i32, i32) {
    %c0_i32 = arith.constant 0 : i32
    %c0_i32_0 = arith.constant 0 : i32
    %c0_i32_1 = arith.constant 0 : i32
    return %arg1, %c0_i32, %c0_i32_0 : i32, i32, i32
  }
  func.func @transform_4(%arg0: i32, %arg1: i32) -> (i32, i32, i32) {
    %c0_i32 = arith.constant 0 : i32
    %c0_i32_0 = arith.constant 0 : i32
    %c0_i32_1 = arith.constant 0 : i32
    return %arg1, %c0_i32, %c0_i32_0 : i32, i32, i32
  }
  func.func @transform_5(%arg0: i32, %arg1: i32) -> (i32, i32, i32) {
    %c0_i32 = arith.constant 0 : i32
    %c0_i32_0 = arith.constant 0 : i32
    %c0_i32_1 = arith.constant 0 : i32
    return %arg1, %c0_i32, %c0_i32_0 : i32, i32, i32
  }
  func.func @transform_6(%arg0: i32, %arg1: i32) -> (i32, i32, i32) {
    %c0_i32 = arith.constant 0 : i32
    %c0_i32_0 = arith.constant 0 : i32
    %c0_i32_1 = arith.constant 0 : i32
    return %arg1, %c0_i32, %c0_i32_0 : i32, i32, i32
  }
  func.func @transform_7(%arg0: i32, %arg1: i32) -> (i32, i32, i32) {
    %c0_i32 = arith.constant 0 : i32
    %c0_i32_0 = arith.constant 0 : i32
    %c0_i32_1 = arith.constant 0 : i32
    return %arg1, %c0_i32, %c0_i32_0 : i32, i32, i32
  }
  func.func @transform_8(%arg0: i32, %arg1: i32) -> (i32, i32, i32) {
    %c0_i32 = arith.constant 0 : i32
    %c0_i32_0 = arith.constant 0 : i32
    %c0_i32_1 = arith.constant 0 : i32
    return %arg1, %c0_i32, %c0_i32_0 : i32, i32, i32
  }
  func.func @transform_9(%arg0: i32, %arg1: i32) -> (i32, i32, i32) {
    %c0_i32 = arith.constant 0 : i32
    %c0_i32_0 = arith.constant 0 : i32
    %c0_i32_1 = arith.constant 0 : i32
    return %arg1, %c0_i32, %c0_i32_0 : i32, i32, i32
  }
  func.func @transform_10(%arg0: i32, %arg1: i32) -> (i32, i32, i32) {
    %c0_i32 = arith.constant 0 : i32
    %c0_i32_0 = arith.constant 0 : i32
    %c0_i32_1 = arith.constant 0 : i32
    return %arg1, %c0_i32, %c0_i32_0 : i32, i32, i32
  }
  func.func @transform_11(%arg0: i32, %arg1: i32) -> (i32, i32, i32) {
    %c0_i32 = arith.constant 0 : i32
    %c0_i32_0 = arith.constant 0 : i32
    %c0_i32_1 = arith.constant 0 : i32
    return %arg1, %c0_i32, %c0_i32_0 : i32, i32, i32
  }
  func.func @transform_12(%arg0: i32, %arg1: i32) -> (i32, i32) {
    %c0_i32 = arith.constant 0 : i32
    %c0_i32_0 = arith.constant 0 : i32
    return %arg0, %c0_i32 : i32, i32
  }
}

</mosaic_0001>

<bundles_post_ra>
// kernel: tpu_custom_call.1
= control target key start
LH: loop header
LB: loop body
LE: loop exit
PB: predicated region body
PF: predicated region fallthrough
CT: control target
= control target key end

     0   :  { %s10504_s21 = smov 0   ;;  %s10506_s22 = smov 0   ;;  %s13208_s0 = inlined_call_operand.vmem [shape: f32[128,32], index: 0, kind: input, shape index: {}]   ;;  %s13209_s1 = inlined_call_operand.vmem [shape: f32[2,1,32], index: 1, kind: input, shape index: {}]   ;;  %s13210_s2 = inlined_call_operand.vmem [shape: f32[2,1,32], index: 2, kind: input, shape index: {}]   ;;  %s13211_s3 = inlined_call_operand.vmem [shape: bf16[2,32,48], index: 3, kind: input, shape index: {}]   ;;  %s13212_s4 = inlined_call_operand.vmem [shape: bf16[2,16,32], index: 4, kind: input, shape index: {}]   ;;  %s13213_s5 = inlined_call_operand.vmem [shape: f32[2,1,32], index: 5, kind: input, shape index: {}]   ;;  %s13214_s6 = inlined_call_operand.vmem [shape: f32[2,1,32], index: 6, kind: input, shape index: {}]   ;;  %s13215_s7 = inlined_call_operand.vmem [shape: f32[2,1,32], index: 7, kind: input, shape index: {}]   ;;  %s13216_s8 = inlined_call_operand.vmem [shape: bf16[2,32,64], index: 8, kind: input, shape index: {}]   ;;  %s13217_s9 = inlined_call_operand.vmem [shape: f32[2,1,64], index: 9, kind: input, shape index: {}]   ;;  %s13218_s10 = inlined_call_operand.vmem [shape: bf16[2,64,32], index: 10, kind: input, shape index: {}]   ;;  %s13219_s11 = inlined_call_operand.vmem [shape: f32[2,1,32], index: 11, kind: input, shape index: {}]   ;;  %s13220_s12 = inlined_call_operand.vmem [shape: f32[128,32], index: 12, kind: output, shape index: {}]  }
   0x1   :  { %13236 = sst [smem:[#allocation27_spill]] %s13211_s3  ;;  %s10508_s23 = smov 0  }
   0x2   :  { %13237 = sst [smem:[#allocation28_spill]] %s13212_s4 }
   0x3   :  { %13238 = sst [smem:[#allocation29_spill]] %s13220_s12 }
   0x4 LB: > { %13239 = sst [smem:[#allocation4_spill]] %s10419_s22  ;;  %s31_s24 = sadd.s32 1, %s10419_s22  ;;  %s10423_s23 = sphi %s10508_s23, %s22_s23   ;;  %s10419_s22 = sphi %s10506_s22, %s13303_s22   ;;  %s10415_s21 = sphi %s10504_s21, %s13302_s21  }
   0x5   : > { %13240 = sst [smem:[#allocation5_spill]] %s10423_s23  ;;  %p8898_p0 = scmp.ge.s32.totalorder %s10423_s23, 1 }
   0x6   : > { %p32_p1 = scmp.ge.s32.totalorder %s31_s24, 2  ;;  %p471_p2 = scmp.lt.s32.totalorder %s10423_s23, 3 }
   0x8   : > { %s13305_s24 = smov (%p32_p1, %s31_s24), 0  ;;  %p472_p3 = pnand %p8898_p0, %p471_p2 }
   0x9   : > { %13241 = sst [smem:[#allocation6_spill]] %s13305_s24 }
   0xa   : > { %475 = sbr.rel (%p472_p3) target bundleno = 4195 (0x1063), region = 68 }
   0xf   : > { %p560_p4 = scmp.lt.s32.totalorder %s10415_s21, 1  ;;  %s13242_s3 = sld [smem:[#allocation27_spill]] }
  0x10   : > { %s13243_s4 = sld [smem:[#allocation28_spill]]  ;;  %p8907_p5 = scmp.ne.s32.totalorder %s10415_s21, 0 }
  0x11   : > { %s10526_s25 = scalar_select %p560_p4, %s10415_s21, 1 }
  0x13   : > { %s9153_s14 = sshll.u32 %s10526_s25, 4  ;;  %s9154_s15 = sshll.u32 %s10526_s25, 3 }
  0x14   : > { %s581_s29 = scalar_lea.vmem %s13214_s6, %s10526_s25  ;;  %s584_s12 = scalar_lea.vmem %s13215_s7, %s10526_s25 }
  0x15   : > { %s10541_s18 = scalar_lea.vmem %s13242_s3, %s9153_s14  ;;  %s10563_s3 = scalar_lea.vmem %s13216_s8, %s9153_s14 }
  0x16   : > { %s10546_s26 = scalar_lea.vmem %s13243_s4, %s9154_s15  ;;  %s592_s20 = scalar_lea.vmem %s13217_s9, %s10526_s25 }
  0x17   : > { %s9156_s4 = sshll.u32 %s10526_s25, 5  ;;  %s600_s13 = scalar_lea.vmem %s13219_s11, %s10526_s25 }
  0x18   : > { %s10573_s28 = scalar_lea.vmem %s13218_s10, %s9156_s4  ;;  %611 = sbr.rel (%p8907_p5) target bundleno = 38 (0x26), region = 72 }
  0x1d   : > { %v612_v0 = vld [vmem:[%s13208_s0] sm:$0xff]  ;;  %vm628_vm0 = vcmask 261120   ;;  %v613_v1 = vld [vmem:[%s13208_s0 + $0x8] sm:$0xff]  ;;  %v614_v2 = vld [vmem:[%s13208_s0 + $0x10] sm:$0xff] }
  0x1e   : > { %629 = vst.msk [vmem:[#allocation2] sm:$0xff] %vm628_vm0, %v612_v0  ;;  %630 = vst.msk [vmem:[#allocation2 + $0x8] sm:$0xff] %vm628_vm0, %v613_v1  ;;  %v615_v3 = vld [vmem:[%s13208_s0 + $0x18] sm:$0xff]  ;;  %v616_v4 = vld [vmem:[%s13208_s0 + $0x20] sm:$0xff] }
  0x1f   : > { %631 = vst.msk [vmem:[#allocation2 + $0x10] sm:$0xff] %vm628_vm0, %v614_v2  ;;  %v617_v5 = vld [vmem:[%s13208_s0 + $0x28] sm:$0xff]  ;;  %632 = vst.msk [vmem:[#allocation2 + $0x18] sm:$0xff] %vm628_vm0, %v615_v3  ;;  %v618_v6 = vld [vmem:[%s13208_s0 + $0x30] sm:$0xff] }
  0x20   : > { %633 = vst.msk [vmem:[#allocation2 + $0x20] sm:$0xff] %vm628_vm0, %v616_v4  ;;  %634 = vst.msk [vmem:[#allocation2 + $0x28] sm:$0xff] %vm628_vm0, %v617_v5  ;;  %v619_v7 = vld [vmem:[%s13208_s0 + $0x38] sm:$0xff]  ;;  %v620_v8 = vld [vmem:[%s13208_s0 + $0x40] sm:$0xff] }
  0x21   : > { %635 = vst.msk [vmem:[#allocation2 + $0x30] sm:$0xff] %vm628_vm0, %v618_v6  ;;  %636 = vst.msk [vmem:[#allocation2 + $0x38] sm:$0xff] %vm628_vm0, %v619_v7  ;;  %v621_v9 = vld [vmem:[%s13208_s0 + $0x48] sm:$0xff]  ;;  %v622_v10 = vld [vmem:[%s13208_s0 + $0x50] sm:$0xff] }
  0x22   : > { %637 = vst.msk [vmem:[#allocation2 + $0x40] sm:$0xff] %vm628_vm0, %v620_v8  ;;  %v623_v11 = vld [vmem:[%s13208_s0 + $0x58] sm:$0xff]  ;;  %638 = vst.msk [vmem:[#allocation2 + $0x48] sm:$0xff] %vm628_vm0, %v621_v9  ;;  %v624_v12 = vld [vmem:[%s13208_s0 + $0x60] sm:$0xff] }
  0x23   : > { %639 = vst.msk [vmem:[#allocation2 + $0x50] sm:$0xff] %vm628_vm0, %v622_v10  ;;  %640 = vst.msk [vmem:[#allocation2 + $0x58] sm:$0xff] %vm628_vm0, %v623_v11  ;;  %v625_v13 = vld [vmem:[%s13208_s0 + $0x68] sm:$0xff]  ;;  %v626_v14 = vld [vmem:[%s13208_s0 + $0x70] sm:$0xff] }
  0x24   : > { %641 = vst.msk [vmem:[#allocation2 + $0x60] sm:$0xff] %vm628_vm0, %v624_v12  ;;  %642 = vst.msk [vmem:[#allocation2 + $0x68] sm:$0xff] %vm628_vm0, %v625_v13  ;;  %v627_v15 = vld [vmem:[%s13208_s0 + $0x78] sm:$0xff] }
  0x25   : > { %643 = vst.msk [vmem:[#allocation2 + $0x70] sm:$0xff] %vm628_vm0, %v626_v14  ;;  %644 = vst.msk [vmem:[#allocation2 + $0x78] sm:$0xff] %vm628_vm0, %v627_v15 }
  0x26 PF: > { %v645_v16 = vld [vmem:[#allocation2] sm:$0xff]  ;;  %vm663_vm1 = vcmask 261120   ;;  %v647_v17 = vld [vmem:[#allocation2 + $0x10] sm:$0xff]  ;;  %v646_v18 = vld [vmem:[#allocation2 + $0x8] sm:$0xff]  ;;  %s13244_s30 = scalar_lea.vmem %s13209_s1, %s10526_s25  ;;  %s13245_s17 = scalar_lea.vmem %s13210_s2, %s10526_s25  ;;  %vm1068_vm2 = vcmask 31744   ;;  %vm1791_vm3 = vcmask 130048  }
  0x27   : > { %v664_v19 = vsel %vm663_vm1, %v645_v16, 0.0  ;;  %v670_v20 = vsel %vm663_vm1, %v647_v17, 0.0  ;;  %v648_v21 = vld [vmem:[#allocation2 + $0x18] sm:$0xff]  ;;  %v10646_v22 = vld [vmem:[#allocation2 + $0x20] sm:$0xff]  ;;  %v10648_v23 = vld [vmem:[#allocation2 + $0x28] sm:$0xff]  ;;  %v667_v24 = vsel %vm663_vm1, %v646_v18, 0.0 }
  0x28   : > { %665 = vadd.xlane.f32.xlu0 %v664_v19  ;;  %671 = vadd.xlane.f32.xlu1 %v670_v20  ;;  %v673_v25 = vsel %vm663_vm1, %v648_v21, 0.0  ;;  %v10652_v26 = vld [vmem:[#allocation2 + $0x30] sm:$0xff]  ;;  %v10654_v27 = vld [vmem:[#allocation2 + $0x38] sm:$0xff]  ;;  %v676_v28 = vsel %vm663_vm1, %v10646_v22, 0.0  ;;  %v679_v29 = vsel %vm663_vm1, %v10648_v23, 0.0  ;;  %s10425_s19 = smov 112  }
  0x29   : > { %v682_v30 = vsel %vm663_vm1, %v10652_v26, 0.0  ;;  %v685_v31 = vsel %vm663_vm1, %v10654_v27, 0.0  ;;  %v10664_v32 = vld [vmem:[#allocation2 + $0x40] sm:$0xff]  ;;  %v10666_v33 = vld [vmem:[#allocation2 + $0x48] sm:$0xff]  ;;  %s10426_s15 = smov 96   ;;  %s10427_s4 = smov 108  }
  0x2a   : > { %v688_v34 = vsel %vm663_vm1, %v10664_v32, 0.0  ;;  %v691_v35 = vsel %vm663_vm1, %v10666_v33, 0.0  ;;  %v10672_v36 = vld [vmem:[#allocation2 + $0x50] sm:$0xff]  ;;  %v10674_v37 = vld [vmem:[#allocation2 + $0x58] sm:$0xff]  ;;  %s10428_s24 = smov 124   ;;  %s10429_s27 = smov 92  }
  0x2b   : > { %v694_v38 = vsel %vm663_vm1, %v10672_v36, 0.0  ;;  %v697_v39 = vsel %vm663_vm1, %v10674_v37, 0.0  ;;  %v10680_v40 = vld [vmem:[#allocation2 + $0x60] sm:$0xff]  ;;  %v10682_v41 = vld [vmem:[#allocation2 + $0x68] sm:$0xff]  ;;  %s10430_s22 = smov 104   ;;  %s10432_s23 = smov 88  }
  0x2c   : > { %668 = vadd.xlane.f32.xlu0 %v667_v24  ;;  %674 = vadd.xlane.f32.xlu1 %v673_v25  ;;  %v700_v42 = vsel %vm663_vm1, %v10680_v40, 0.0  ;;  %v703_v43 = vsel %vm663_vm1, %v10682_v41, 0.0  ;;  %v10688_v44 = vld [vmem:[#allocation2 + $0x70] sm:$0xff]  ;;  %v10690_v45 = vld [vmem:[#allocation2 + $0x78] sm:$0xff]  ;;  %s10434_s14 = smov 116   ;;  %s10435_s16 = smov 84  }
  0x2d   : > { %v706_v46 = vsel %vm663_vm1, %v10688_v44, 0.0  ;;  %v709_v47 = vsel %vm663_vm1, %v10690_v45, 0.0  ;;  %vm4360_vm4 = vcmask 64544   ;;  %vm6057_vm5 = vcmask 97344   ;;  %p9148_p6 = scmp.ne.s32.totalorder %s10415_s21, 1 }
  0x2e   : > { %vm7754_vm6 = vcmask 130144   ;;  %vm8544_vm7 = vcmask 523264  }
  0x30   : > { %677 = vadd.xlane.f32.xlu0 %v676_v28  ;;  %680 = vadd.xlane.f32.xlu1 %v679_v29 }
  0x34   : > { %683 = vadd.xlane.f32.xlu0 %v682_v30  ;;  %686 = vadd.xlane.f32.xlu1 %v685_v31 }
  0x38   : > { %689 = vadd.xlane.f32.xlu0 %v688_v34  ;;  %692 = vadd.xlane.f32.xlu1 %v691_v35 }
  0x3c   : > { %695 = vadd.xlane.f32.xlu0 %v694_v38  ;;  %698 = vadd.xlane.f32.xlu1 %v697_v39 }
  0x40   : > { %701 = vadd.xlane.f32.xlu0 %v700_v42  ;;  %704 = vadd.xlane.f32.xlu1 %v703_v43 }
  0x44   : > { %707 = vadd.xlane.f32.xlu0 %v706_v46  ;;  %710 = vadd.xlane.f32.xlu1 %v709_v47 }
  0xb1   : > { %v666_v48 = vpop.xlane.xlu0 %665  ;;  %v672_v49 = vpop.xlane.xlu1 %671 }
  0xb2   : > { %v713_v50 = vmul.f32 0.03125, %v666_v48  ;;  %v715_v51 = vmul.f32 0.03125, %v672_v49 }
  0xb4   : > { %v10696_v52 = vsub.f32 %v645_v16, %v713_v50  ;;  %v10698_v53 = vsub.f32 %v647_v17, %v715_v51 }
  0xb5   : > { %v669_v54 = vpop.xlane.xlu0 %668  ;;  %v675_v55 = vpop.xlane.xlu1 %674 }
  0xb6   : > { %v714_v56 = vmul.f32 0.03125, %v669_v54  ;;  %v716_v57 = vmul.f32 0.03125, %v675_v55  ;;  %v745_v58 = vmul.f32 %v10696_v52, %v10696_v52  ;;  %v747_v59 = vmul.f32 %v10698_v53, %v10698_v53 }
  0xb8   : > { %v10704_v60 = vsub.f32 %v646_v18, %v714_v56  ;;  %v10706_v61 = vsub.f32 %v648_v21, %v716_v57  ;;  %v761_v62 = vsel %vm663_vm1, %v745_v58, 0.0  ;;  %v767_v1 = vsel %vm663_vm1, %v747_v59, 0.0 }
  0xb9   : > { %762 = vadd.xlane.f32.xlu0 %v761_v62  ;;  %v678_v63 = vpop.xlane.xlu0 %677  ;;  %v681_v0 = vpop.xlane.xlu1 %680 }
  0xba   : > { %v717_v2 = vmul.f32 0.03125, %v678_v63  ;;  %v718_v3 = vmul.f32 0.03125, %v681_v0  ;;  %v746_v4 = vmul.f32 %v10704_v60, %v10704_v60  ;;  %v748_v5 = vmul.f32 %v10706_v61, %v10706_v61 }
  0xbc   : > { %v10715_v6 = vsub.f32 %v10646_v22, %v717_v2  ;;  %v10718_v7 = vsub.f32 %v10648_v23, %v718_v3  ;;  %v764_v8 = vsel %vm663_vm1, %v746_v4, 0.0  ;;  %v770_v11 = vsel %vm663_vm1, %v748_v5, 0.0  ;;  %v10025_v5 = vld [vmem:[%s10541_s18] sm:$0xff]  }
  0xbd   : > { %768 = vadd.xlane.f32.xlu0 %v767_v1  ;;  %765 = vadd.xlane.f32.xlu1 %v764_v8  ;;  %v684_v9 = vpop.xlane.xlu0 %683  ;;  %v687_v10 = vpop.xlane.xlu1 %686 }
  0xbe   : > { %v719_v12 = vmul.f32 0.03125, %v684_v9  ;;  %v720_v13 = vmul.f32 0.03125, %v687_v10  ;;  %v749_v14 = vmul.f32 %v10715_v6, %v10715_v6  ;;  %v750_v15 = vmul.f32 %v10718_v7, %v10718_v7 }
  0xc0   : > { %v10727_v16 = vsub.f32 %v10652_v26, %v719_v12  ;;  %v10730_v17 = vsub.f32 %v10654_v27, %v720_v13  ;;  %v773_v18 = vsel %vm663_vm1, %v749_v14, 0.0  ;;  %v776_v21 = vsel %vm663_vm1, %v750_v15, 0.0 }
  0xc1   : > { %771 = vadd.xlane.f32.xlu1 %v770_v11  ;;  %774 = vadd.xlane.f32.xlu0 %v773_v18  ;;  %v690_v19 = vpop.xlane.xlu0 %689  ;;  %v693_v20 = vpop.xlane.xlu1 %692 }
  0xc2   : > { %v721_v22 = vmul.f32 0.03125, %v690_v19  ;;  %v722_v23 = vmul.f32 0.03125, %v693_v20  ;;  %v751_v24 = vmul.f32 %v10727_v16, %v10727_v16  ;;  %v752_v25 = vmul.f32 %v10730_v17, %v10730_v17 }
  0xc4   : > { %v10739_v26 = vsub.f32 %v10664_v32, %v721_v22  ;;  %v10742_v27 = vsub.f32 %v10666_v33, %v722_v23  ;;  %v779_v28 = vsel %vm663_vm1, %v751_v24, 0.0  ;;  %v782_v31 = vsel %vm663_vm1, %v752_v25, 0.0 }
  0xc5   : > { %777 = vadd.xlane.f32.xlu1 %v776_v21  ;;  %780 = vadd.xlane.f32.xlu0 %v779_v28  ;;  %v696_v29 = vpop.xlane.xlu0 %695  ;;  %v699_v30 = vpop.xlane.xlu1 %698 }
  0xc6   : > { %v723_v34 = vmul.f32 0.03125, %v696_v29  ;;  %v724_v35 = vmul.f32 0.03125, %v699_v30  ;;  %v753_v38 = vmul.f32 %v10739_v26, %v10739_v26  ;;  %v754_v32 = vmul.f32 %v10742_v27, %v10742_v27 }
  0xc8   : > { %v10751_v39 = vsub.f32 %v10672_v36, %v723_v34  ;;  %v10754_v33 = vsub.f32 %v10674_v37, %v724_v35  ;;  %v785_v42 = vsel %vm663_vm1, %v753_v38, 0.0  ;;  %v788_v47 = vsel %vm663_vm1, %v754_v32, 0.0 }
  0xc9   : > { %783 = vadd.xlane.f32.xlu1 %v782_v31  ;;  %786 = vadd.xlane.f32.xlu0 %v785_v42  ;;  %v702_v43 = vpop.xlane.xlu0 %701  ;;  %v705_v46 = vpop.xlane.xlu1 %704 }
  0xca   : > { %v725_v48 = vmul.f32 0.03125, %v702_v43  ;;  %v726_v49 = vmul.f32 0.03125, %v705_v46  ;;  %v755_v50 = vmul.f32 %v10751_v39, %v10751_v39  ;;  %v756_v36 = vmul.f32 %v10754_v33, %v10754_v33 }
  0xcc   : > { %v10763_v51 = vsub.f32 %v10680_v40, %v725_v48  ;;  %v10766_v37 = vsub.f32 %v10682_v41, %v726_v49  ;;  %v791_v54 = vsel %vm663_vm1, %v755_v50, 0.0  ;;  %v794_v57 = vsel %vm663_vm1, %v756_v36, 0.0  ;;  %v10795_v48 = vld [vmem:[%s13244_s30] ss:$0 sm:$0xff]  ;;  %s10433_s30 = smov 100  }
  0xcd   : > { %789 = vadd.xlane.f32.xlu1 %v788_v47  ;;  %792 = vadd.xlane.f32.xlu0 %v791_v54  ;;  %v708_v55 = vpop.xlane.xlu0 %707  ;;  %v711_v56 = vpop.xlane.xlu1 %710 }
  0xce   : > { %v727_v58 = vmul.f32 0.03125, %v708_v55  ;;  %v728_v59 = vmul.f32 0.03125, %v711_v56  ;;  %v757_v62 = vmul.f32 %v10763_v51, %v10763_v51  ;;  %v758_v40 = vmul.f32 %v10766_v37, %v10766_v37 }
  0xd0   : > { %v10775_v41 = vsub.f32 %v10688_v44, %v727_v58  ;;  %v10778_v63 = vsub.f32 %v10690_v45, %v728_v59  ;;  %v797_v0 = vsel %vm663_vm1, %v757_v62, 0.0  ;;  %v800_v1 = vsel %vm663_vm1, %v758_v40, 0.0  ;;  %v10024_v45 = vld [vmem:[%s10541_s18 + $0x8] sm:$0xff]   ;;  %v10804_v40 = vld [vmem:[%s13245_s17] ss:$0 sm:$0xff]  ;;  %s10431_s18 = smov 120  }
  0xd1   : > { %795 = vadd.xlane.f32.xlu1 %v794_v57  ;;  %798 = vadd.xlane.f32.xlu0 %v797_v0  ;;  %s10436_s17 = smov 4  }
  0xd2   : > { %v759_v2 = vmul.f32 %v10775_v41, %v10775_v41  ;;  %v760_v3 = vmul.f32 %v10778_v63, %v10778_v63  ;;  %9454 = vmatprep.subr.bf16.mxu0 %v10024_v45 }
  0xd3   : > { %9455 = vmatpush3.bf16.msra.mxu0 %v10024_v45 }
  0xd4   : > { %v803_v4 = vsel %vm663_vm1, %v759_v2, 0.0  ;;  %v806_v44 = vsel %vm663_vm1, %v760_v3, 0.0  ;;  %9456 = vmatprep.subr.bf16.mxu0 %v10025_v5 }
  0xd5   : > { %801 = vadd.xlane.f32.xlu1 %v800_v1  ;;  %804 = vadd.xlane.f32.xlu0 %v803_v4 }
  0xd7   : > { %9457 = vmatpush3.bf16.msra.mxu0 %v10025_v5 }
  0xd9   : > { %807 = vadd.xlane.f32.xlu1 %v806_v44 }
 0x142   : > { %v763_v8 = vpop.xlane.xlu0 %762 }
 0x143   : > { %v809_v9 = vmul.f32 0.03125, %v763_v8 }
 0x145   : > { %v825_v10 = vadd.f32 1e-05, %v809_v9 }
 0x146   : > { %v766_v11 = vpop.xlane.xlu1 %765  ;;  %v769_v12 = vpop.xlane.xlu0 %768 }
 0x147   : > { %10033 = vrsqrt.f32 %v825_v10  ;;  %v810_v13 = vmul.f32 0.03125, %v766_v11  ;;  %v811_v14 = vmul.f32 0.03125, %v769_v12 }
 0x149   : > { %v826_v15 = vadd.f32 1e-05, %v810_v13  ;;  %v827_v18 = vadd.f32 1e-05, %v811_v14 }
 0x14a   : > { %v772_v19 = vpop.xlane.xlu1 %771  ;;  %v775_v20 = vpop.xlane.xlu0 %774 }
 0x14b   : > { %10035 = vrsqrt.f32 %v826_v15  ;;  %v812_v21 = vmul.f32 0.03125, %v772_v19  ;;  %v813_v22 = vmul.f32 0.03125, %v775_v20 }
 0x14c   : > { %10037 = vrsqrt.f32 %v827_v18 }
 0x14d   : > { %v828_v23 = vadd.f32 1e-05, %v812_v21  ;;  %v829_v24 = vadd.f32 1e-05, %v813_v22 }
 0x14e   : > { %v778_v25 = vpop.xlane.xlu1 %777  ;;  %v781_v28 = vpop.xlane.xlu0 %780 }
 0x14f   : > { %10039 = vrsqrt.f32 %v828_v23  ;;  %v814_v29 = vmul.f32 0.03125, %v778_v25  ;;  %v815_v30 = vmul.f32 0.03125, %v781_v28 }
 0x150   : > { %10041 = vrsqrt.f32 %v829_v24 }
 0x151   : > { %v830_v31 = vadd.f32 1e-05, %v814_v29  ;;  %v831_v34 = vadd.f32 1e-05, %v815_v30 }
 0x152   : > { %v784_v35 = vpop.xlane.xlu1 %783  ;;  %v787_v38 = vpop.xlane.xlu0 %786 }
 0x153   : > { %10043 = vrsqrt.f32 %v830_v31  ;;  %v816_v32 = vmul.f32 0.03125, %v784_v35  ;;  %v817_v42 = vmul.f32 0.03125, %v787_v38 }
 0x154   : > { %v10034_v43 = vpop.eup %10033  ;;  %10045 = vrsqrt.f32 %v831_v34 }
 0x155   : > { %v832_v46 = vadd.f32 1e-05, %v816_v32  ;;  %v833_v47 = vadd.f32 1e-05, %v817_v42  ;;  %v857_v49 = vmul.f32 %v10034_v43, %v10696_v52 }
 0x156   : > { %v790_v50 = vpop.xlane.xlu1 %789  ;;  %v793_v36 = vpop.xlane.xlu0 %792 }
 0x157   : > { %10047 = vrsqrt.f32 %v832_v46  ;;  %v818_v54 = vmul.f32 0.03125, %v790_v50  ;;  %v819_v55 = vmul.f32 0.03125, %v793_v36  ;;  %v879_v57 = vmul.f32 %v10795_v48, %v857_v49 }
 0x158   : > { %v10036_v56 = vpop.eup %10035  ;;  %10049 = vrsqrt.f32 %v833_v47 }
 0x159   : > { %v10038_v58 = vpop.eup %10037  ;;  %v834_v59 = vadd.f32 1e-05, %v818_v54  ;;  %v835_v62 = vadd.f32 1e-05, %v819_v55  ;;  %v858_v52 = vmul.f32 %v10036_v56, %v10704_v60  ;;  %v901_v5 = vadd.f32 %v10804_v40, %v879_v57 }
 0x15a   : > { %v796_v0 = vpop.xlane.xlu1 %795  ;;  %v799_v1 = vpop.xlane.xlu0 %798  ;;  %v859_v2 = vmul.f32 %v10038_v58, %v10698_v53 }
 0x15b   : > { %10051 = vrsqrt.f32 %v834_v59  ;;  %v820_v3 = vmul.f32 0.03125, %v796_v0  ;;  %v821_v4 = vmul.f32 0.03125, %v799_v1  ;;  %v880_v44 = vmul.f32 %v10795_v48, %v858_v52 }
 0x15c   : > { %v10040_v45 = vpop.eup %10039  ;;  %10053 = vrsqrt.f32 %v835_v62  ;;  %v881_v53 = vmul.f32 %v10795_v48, %v859_v2 }
 0x15d   : > { %v10042_v8 = vpop.eup %10041  ;;  %v836_v9 = vadd.f32 1e-05, %v820_v3  ;;  %v837_v10 = vadd.f32 1e-05, %v821_v4  ;;  %v902_v11 = vadd.f32 %v10804_v40, %v880_v44  ;;  %v860_v60 = vmul.f32 %v10040_v45, %v10706_v61 }
 0x15e   : > { %v802_v12 = vpop.xlane.xlu1 %801  ;;  %v805_v13 = vpop.xlane.xlu0 %804  ;;  %v861_v14 = vmul.f32 %v10042_v8, %v10715_v6  ;;  %v903_v6 = vadd.f32 %v10804_v40, %v881_v53 }
 0x15f   : > { %10055 = vrsqrt.f32 %v836_v9  ;;  %v822_v15 = vmul.f32 0.03125, %v802_v12  ;;  %v823_v18 = vmul.f32 0.03125, %v805_v13  ;;  %v917_v19 = vpack.c.bf16 %v902_v11, %v901_v5 }
 0x160   : > { %v10044_v20 = vpop.eup %10043  ;;  %10057 = vrsqrt.f32 %v837_v10  ;;  %v882_v21 = vmul.f32 %v10795_v48, %v860_v60  ;;  %v883_v22 = vmul.f32 %v10795_v48, %v861_v14 }
 0x161   : > { %v10046_v23 = vpop.eup %10045  ;;  %v838_v24 = vadd.f32 1e-05, %v822_v15  ;;  %v839_v25 = vadd.f32 1e-05, %v823_v18  ;;  %9458 = vmatprep.mubr.msk.bf16.mxu0 %vm663_vm1, %v917_v19  ;;  %v862_v61 = vmul.f32 %v10044_v20, %v10718_v7 }
 0x162   : > { %v808_v28 = vpop.xlane.xlu1 %807  ;;  %v904_v29 = vadd.f32 %v10804_v40, %v882_v21  ;;  %v863_v30 = vmul.f32 %v10046_v23, %v10727_v16  ;;  %v905_v32 = vadd.f32 %v10804_v40, %v883_v22 }
 0x163   : > { %10059 = vrsqrt.f32 %v838_v24  ;;  %v824_v31 = vmul.f32 0.03125, %v808_v28  ;;  %v884_v34 = vmul.f32 %v10795_v48, %v862_v61 }
 0x164   : > { %v10048_v35 = vpop.eup %10047  ;;  %10061 = vrsqrt.f32 %v839_v25  ;;  %v918_v38 = vpack.c.bf16 %v904_v29, %v903_v6  ;;  %v885_v47 = vmul.f32 %v10795_v48, %v863_v30 }
 0x165   : > { %v10050_v42 = vpop.eup %10049  ;;  %v840_v43 = vadd.f32 1e-05, %v824_v31  ;;  %v906_v7 = vadd.f32 %v10804_v40, %v884_v34  ;;  %v864_v46 = vmul.f32 %v10048_v35, %v10730_v17 }
 0x166   : > { %9459 = vmatmul.mubr.msk.bf16.vlgmr.msra.gmra.mxu0 %vm663_vm1, %v918_v38  ;;  %v865_v16 = vmul.f32 %v10050_v42, %v10739_v26  ;;  %v907_v55 = vadd.f32 %v10804_v40, %v885_v47 }
 0x167   : > { %10063 = vrsqrt.f32 %v840_v43  ;;  %v919_v49 = vpack.c.bf16 %v906_v7, %v905_v32  ;;  %v886_v50 = vmul.f32 %v10795_v48, %v864_v46 }
 0x168   : > { %v10052_v36 = vpop.eup %10051  ;;  %v887_v57 = vmul.f32 %v10795_v48, %v865_v16 }
 0x169   : > { %v10054_v54 = vpop.eup %10053  ;;  %9462 = vmatprep.mubr.msk.bf16.mxu0 %vm663_vm1, %v919_v49  ;;  %v908_v56 = vadd.f32 %v10804_v40, %v886_v50  ;;  %v866_v17 = vmul.f32 %v10052_v36, %v10742_v27 }
 0x16a   : > { %v867_v58 = vmul.f32 %v10054_v54, %v10751_v39  ;;  %v909_v0 = vadd.f32 %v10804_v40, %v887_v57 }
 0x16b   : > { %v920_v59 = vpack.c.bf16 %v908_v56, %v907_v55  ;;  %v888_v26 = vmul.f32 %v10795_v48, %v866_v17 }
 0x16c   : > { %v10056_v62 = vpop.eup %10055  ;;  %v889_v3 = vmul.f32 %v10795_v48, %v867_v58 }
 0x16d   : > { %v10058_v52 = vpop.eup %10057  ;;  %v910_v1 = vadd.f32 %v10804_v40, %v888_v26  ;;  %v868_v2 = vmul.f32 %v10056_v62, %v10754_v33 }
 0x16e   : > { %9463 = vmatmul.mubr.msk.bf16.gmra.mxu0 %vm663_vm1, %v920_v59  ;;  %v869_v27 = vmul.f32 %v10058_v52, %v10763_v51  ;;  %v911_v5 = vadd.f32 %v10804_v40, %v889_v3 }
 0x16f   : > { %v921_v4 = vpack.c.bf16 %v910_v1, %v909_v0  ;;  %v890_v39 = vmul.f32 %v10795_v48, %v868_v2 }
 0x170   : > { %v10060_v44 = vpop.eup %10059  ;;  %v891_v33 = vmul.f32 %v10795_v48, %v869_v27 }
 0x171   : > { %v10062_v45 = vpop.eup %10061  ;;  %9466 = vmatprep.mubr.msk.bf16.mxu0 %vm663_vm1, %v921_v4  ;;  %v912_v8 = vadd.f32 %v10804_v40, %v890_v39  ;;  %v870_v9 = vmul.f32 %v10060_v44, %v10766_v37 }
 0x172   : > { %v871_v10 = vmul.f32 %v10062_v45, %v10775_v41  ;;  %v913_v12 = vadd.f32 %v10804_v40, %v891_v33 }
 0x173   : > { %v922_v11 = vpack.c.bf16 %v912_v8, %v911_v5  ;;  %v892_v51 = vmul.f32 %v10795_v48, %v870_v9 }
 0x174   : > { %v10064_v60 = vpop.eup %10063  ;;  %v893_v14 = vmul.f32 %v10795_v48, %v871_v10 }
 0x175   : > { %v914_v13 = vadd.f32 %v10804_v40, %v892_v51  ;;  %v872_v53 = vmul.f32 %v10064_v60, %v10778_v63 }
 0x176   : > { %9467 = vmatmul.mubr.msk.bf16.gmra.mxu0 %vm663_vm1, %v922_v11  ;;  %v915_v41 = vadd.f32 %v10804_v40, %v893_v14 }
 0x177   : > { %v923_v15 = vpack.c.bf16 %v914_v13, %v913_v12  ;;  %v894_v37 = vmul.f32 %v10795_v48, %v872_v53 }
 0x179   : > { %9470 = vmatprep.mubr.msk.bf16.mxu0 %vm663_vm1, %v923_v15  ;;  %v916_v18 = vadd.f32 %v10804_v40, %v894_v37 }
 0x17b   : > { %v924_v19 = vpack.c.bf16 %v916_v18, %v915_v41 }
 0x17e   : > { %9471 = vmatmul.mubr.msk.bf16.gmra.mxu0 %vm663_vm1, %v924_v19 }
 0x226   : > { %v10860_v20 = vpop.f32.mrf.mxu0 }
 0x227   : > { %13246 = vst [vmem:[#allocation7_spill] sm:$0xff] %v10860_v20 }
 0x228   : > { %v10862_v63 = vpop.f32.mrf.mxu0 }
 0x229   : > { %13247 = vst [vmem:[#allocation8_spill] sm:$0xff] %v10862_v63  ;;  %1064 = vrot.lane.b32.xlu1 %v10862_v63, %s10425_s19  ;;  %9478 = vmatprep.mubr.msk.f32.mxu1 %vm1068_vm2, %v10862_v63 }
 0x22a   : > { %v10868_v48 = vpop.f32.mrf.mxu0 }
 0x22b   : > { %13248 = vst [vmem:[#allocation9_spill] sm:$0xff] %v10868_v48 }
 0x22c   : > { %v10870_v21 = vpop.f32.mrf.mxu0 }
 0x22d   : > { %13249 = vst [vmem:[#allocation10_spill] sm:$0xff] %v10870_v21  ;;  %1156 = vrot.lane.b32.xlu1 %v10868_v48, %s10425_s19  ;;  %1066 = vrot.lane.b32.xlu0 %v10870_v21, %s10425_s19 }
 0x22e   : > { %v10876_v40 = vpop.f32.mrf.mxu0 }
 0x230   : > { %v10878_v22 = vpop.f32.mrf.mxu0 }
 0x231   : > { %1154 = vrot.lane.b32.xlu1 %v10860_v20, %s10425_s19 }
 0x232   : > { %v10882_v23 = vpop.f32.mrf.mxu0 }
 0x234   : > { %v10884_v24 = vpop.f32.mrf.mxu0 }
 0x235   : > { %1243 = vrot.lane.b32.xlu1 %v10878_v22, %s10425_s19  ;;  %1245 = vrot.lane.b32.xlu0 %v10884_v24, %s10425_s19 }
 0x236   : > { %v10890_v25 = vpop.f32.mrf.mxu0 }
 0x238   : > { %v10892_v61 = vpop.f32.mrf.mxu0 }
 0x239   : > { %1332 = vrot.lane.b32.xlu1 %v10876_v40, %s10425_s19  ;;  %1334 = vrot.lane.b32.xlu0 %v10882_v23, %s10425_s19 }
 0x23a   : > { %9506 = vmatprep.mubr.msk.f32.mxu0 %vm1068_vm2, %v10892_v61  ;;  %v10900_v28 = vpop.f32.mrf.mxu0 }
 0x23c   : > { %v10902_v6 = vpop.f32.mrf.mxu0 }
 0x23d   : > { %1512 = vrot.lane.b32.xlu1 %v10900_v28, %s10425_s19  ;;  %1423 = vrot.lane.b32.xlu0 %v10902_v6, %s10425_s19 }
 0x23e   : > { %v10908_v29 = vpop.f32.mrf.mxu0 }
 0x240   : > { %v10910_v30 = vpop.f32.mrf.mxu0 }
 0x241   : > { %13250 = vst [vmem:[#allocation11_spill] sm:$0xff] %v10910_v30  ;;  %1510 = vrot.lane.b32.xlu1 %v10890_v25, %s10425_s19  ;;  %1421 = vrot.lane.b32.xlu0 %v10892_v61, %s10425_s19 }
 0x242   : > { %v10916_v31 = vpop.f32.mrf.mxu0 }
 0x244   : > { %v10918_v34 = vpop.f32.mrf.mxu0 }
 0x245   : > { %1690 = vrot.lane.b32.xlu1 %v10916_v31, %s10425_s19  ;;  %1601 = vrot.lane.b32.xlu0 %v10918_v34, %s10425_s19 }
 0x249   : > { %1688 = vrot.lane.b32.xlu1 %v10908_v29, %s10425_s19  ;;  %1599 = vrot.lane.b32.xlu0 %v10910_v30, %s10425_s19  ;;  %s10437_s19 = smov 8  }
 0x24d   : > { %2057 = vrot.lane.b32.xlu1 %v10868_v48, %s10426_s15  ;;  %1970 = vrot.lane.b32.xlu0 %v10870_v21, %s10426_s15 }
 0x251   : > { %1968 = vrot.lane.b32.xlu1 %v10862_v63, %s10426_s15  ;;  %2144 = vrot.lane.b32.xlu0 %v10884_v24, %s10426_s15 }
 0x255   : > { %2055 = vrot.lane.b32.xlu1 %v10860_v20, %s10426_s15  ;;  %2142 = vrot.lane.b32.xlu0 %v10878_v22, %s10426_s15 }
 0x259   : > { %2231 = vrot.lane.b32.xlu1 %v10882_v23, %s10426_s15  ;;  %2318 = vrot.lane.b32.xlu0 %v10902_v6, %s10426_s15 }
 0x25d   : > { %2229 = vrot.lane.b32.xlu1 %v10876_v40, %s10426_s15  ;;  %2316 = vrot.lane.b32.xlu0 %v10892_v61, %s10426_s15 }
 0x261   : > { %2405 = vrot.lane.b32.xlu1 %v10900_v28, %s10426_s15  ;;  %2490 = vrot.lane.b32.xlu0 %v10910_v30, %s10426_s15 }
 0x265   : > { %2403 = vrot.lane.b32.xlu1 %v10890_v25, %s10426_s15  ;;  %2686 = vrot.lane.b32.xlu0 %v10870_v21, %s10427_s4 }
 0x269   : > { %2579 = vrot.lane.b32.xlu1 %v10916_v31, %s10426_s15  ;;  %2684 = vrot.lane.b32.xlu0 %v10862_v63, %s10427_s4 }
 0x26d   : > { %2577 = vrot.lane.b32.xlu1 %v10908_v29, %s10426_s15  ;;  %2680 = vrot.lane.b32.xlu0 %v10862_v63, %s10428_s24 }
 0x271   : > { %2777 = vrot.lane.b32.xlu1 %v10868_v48, %s10427_s4  ;;  %2682 = vrot.lane.b32.xlu0 %v10870_v21, %s10428_s24 }
 0x275   : > { %2775 = vrot.lane.b32.xlu1 %v10860_v20, %s10427_s4  ;;  %2959 = vrot.lane.b32.xlu0 %v10882_v23, %s10427_s4 }
 0x279   : > { %2868 = vrot.lane.b32.xlu1 %v10884_v24, %s10427_s4  ;;  %2492 = vrot.lane.b32.xlu0 %v10918_v34, %s10426_s15  ;;  %s10438_s15 = smov 12  }
 0x27d   : > { %2771 = vrot.lane.b32.xlu1 %v10860_v20, %s10428_s24 }
 0x281   : > { %2773 = vrot.lane.b32.xlu1 %v10868_v48, %s10428_s24 }
 0x29b   : > { %v1065_v35 = vpop.permute.xlu1 %1064 }
 0x29f   : > { %v1157_v38 = vpop.permute.xlu1 %1156  ;;  %v1067_v32 = vpop.permute.xlu0 %1066 }
 0x2a0   : > { %9474 = vmatprep.subr.msk.mxu1 %vm1068_vm2, %v1067_v32 }
 0x2a1   : > { %9475 = vmatpush3.xpose.msk.msra.mxu1 %vm1068_vm2, %v1067_v32 }
 0x2a2   : > { %9476 = vmatprep.subr.msk.mxu1 %vm1068_vm2, %v1065_v35 }
 0x2a3   : > { %v1155_v42 = vpop.permute.xlu1 %1154 }
 0x2a5   : > { %9477 = vmatpush3.xpose.msk.msra.mxu1 %vm1068_vm2, %v1065_v35 }
 0x2a6   : > { %9481 = vmatprep.subr.msk.mxu1 %vm1068_vm2, %v1157_v38 }
 0x2a7   : > { %v1244_v43 = vpop.permute.xlu1 %1243  ;;  %v1246_v7 = vpop.permute.xlu0 %1245 }
 0x2a8   : > { %9479 = vmatmul.mubr.msk.f32.vlgmr.msra.gmra.mxu1 %vm1068_vm2, %v10870_v21 }
 0x2a9   : > { %9482 = vmatpush3.xpose.msk.msra.mxu1 %vm1068_vm2, %v1157_v38  ;;  %9485 = vmatprep.mubr.msk.f32.mxu1 %vm1068_vm2, %v10860_v20 }
 0x2aa   : > { %9483 = vmatprep.subr.msk.mxu1 %vm1068_vm2, %v1155_v42 }
 0x2ab   : > { %v1333_v46 = vpop.permute.xlu1 %1332  ;;  %v1335_v47 = vpop.permute.xlu0 %1334 }
 0x2ad   : > { %9484 = vmatpush3.xpose.msk.msra.mxu1 %vm1068_vm2, %v1155_v42 }
 0x2ae   : > { %9488 = vmatprep.subr.msk.mxu1 %vm1068_vm2, %v1246_v7 }
 0x2af   : > { %v1513_v16 = vpop.permute.xlu1 %1512  ;;  %v1424_v49 = vpop.permute.xlu0 %1423 }
 0x2b0   : > { %9486 = vmatmul.mubr.msk.f32.vlgmr.msra.gmra.mxu1 %vm1068_vm2, %v10868_v48  ;;  %9502 = vmatprep.subr.msk.mxu0 %vm1068_vm2, %v1424_v49 }
 0x2b1   : > { %9489 = vmatpush3.xpose.msk.msra.mxu1 %vm1068_vm2, %v1246_v7  ;;  %9492 = vmatprep.mubr.msk.f32.mxu1 %vm1068_vm2, %v10878_v22 }
 0x2b2   : > { %9503 = vmatpush3.xpose.msk.msra.mxu0 %vm1068_vm2, %v1424_v49  ;;  %9490 = vmatprep.subr.msk.mxu1 %vm1068_vm2, %v1244_v43 }
 0x2b3   : > { %v1511_v50 = vpop.permute.xlu1 %1510  ;;  %v1422_v36 = vpop.permute.xlu0 %1421 }
 0x2b4   : > { %9504 = vmatprep.subr.msk.mxu0 %vm1068_vm2, %v1422_v36 }
 0x2b5   : > { %9491 = vmatpush3.xpose.msk.msra.mxu1 %vm1068_vm2, %v1244_v43 }
 0x2b6   : > { %9505 = vmatpush3.xpose.msk.msra.mxu0 %vm1068_vm2, %v1422_v36  ;;  %9495 = vmatprep.subr.msk.mxu1 %vm1068_vm2, %v1335_v47 }
 0x2b7   : > { %v1691_v54 = vpop.permute.xlu1 %1690  ;;  %v1602_v55 = vpop.permute.xlu0 %1601 }
 0x2b8   : > { %9493 = vmatmul.mubr.msk.f32.vlgmr.msra.gmra.mxu1 %vm1068_vm2, %v10884_v24  ;;  %9516 = vmatprep.subr.msk.mxu0 %vm1068_vm2, %v1602_v55 }
 0x2b9   : > { %9507 = vmatmul.mubr.msk.f32.vlgmr.msra.gmra.mxu0 %vm1068_vm2, %v10902_v6  ;;  %9496 = vmatpush3.xpose.msk.msra.mxu1 %vm1068_vm2, %v1335_v47 }
 0x2ba   : > { %9499 = vmatprep.mubr.msk.f32.mxu1 %vm1068_vm2, %v10876_v40  ;;  %9517 = vmatpush3.xpose.msk.msra.mxu0 %vm1068_vm2, %v1602_v55 }
 0x2bb   : > { %9520 = vmatprep.mubr.msk.f32.mxu0 %vm1068_vm2, %v10910_v30  ;;  %9497 = vmatprep.subr.msk.mxu1 %vm1068_vm2, %v1333_v46  ;;  %v1689_v56 = vpop.permute.xlu1 %1688  ;;  %v1600_v17 = vpop.permute.xlu0 %1599 }
 0x2bc   : > { %9518 = vmatprep.subr.msk.mxu0 %vm1068_vm2, %v1600_v17 }
 0x2bd   : > { %9498 = vmatpush3.xpose.msk.msra.mxu1 %vm1068_vm2, %v1333_v46 }
 0x2be   : > { %9519 = vmatpush3.xpose.msk.msra.mxu0 %vm1068_vm2, %v1600_v17  ;;  %9509 = vmatprep.subr.msk.mxu1 %vm1068_vm2, %v1513_v16 }
 0x2bf   : > { %v2058_v57 = vpop.permute.xlu1 %2057  ;;  %v1971_v58 = vpop.permute.xlu0 %1970 }
 0x2c0   : > { %9500 = vmatmul.mubr.msk.f32.vlgmr.msra.gmra.mxu1 %vm1068_vm2, %v10882_v23  ;;  %9530 = vmatprep.subr.mxu0 %v1971_v58 }
 0x2c1   : > { %9521 = vmatmul.mubr.msk.f32.vlgmr.msra.gmra.mxu0 %vm1068_vm2, %v10918_v34  ;;  %9510 = vmatpush3.xpose.msk.msra.mxu1 %vm1068_vm2, %v1513_v16 }
 0x2c2   : > { %9513 = vmatprep.mubr.msk.f32.mxu1 %vm1068_vm2, %v10890_v25  ;;  %9531 = vmatpush3.msra.mxu0 %v1971_v58 }
 0x2c3   : > { %9511 = vmatprep.subr.msk.mxu1 %vm1068_vm2, %v1511_v50  ;;  %v1969_v59 = vpop.permute.xlu1 %1968  ;;  %v11013_v26 = vpop.permute.xlu0 %2144 }
 0x2c4   : > { %9532 = vmatprep.subr.mxu0 %v1969_v59 }
 0x2c5   : > { %9512 = vmatpush3.xpose.msk.msra.mxu1 %vm1068_vm2, %v1511_v50  ;;  %9533 = vmatpush3.msra.mxu0 %v1969_v59 }
 0x2c6   : > { %9523 = vmatprep.subr.msk.mxu1 %vm1068_vm2, %v1691_v54  ;;  %9544 = vmatprep.subr.mxu0 %v11013_v26 }
 0x2c7   : > { %v2056_v62 = vpop.permute.xlu1 %2055 }
 0x2c8   : > { %9514 = vmatmul.mubr.msk.f32.vlgmr.msra.gmra.mxu1 %vm1068_vm2, %v10900_v28 }
 0x2c9   : > { %9524 = vmatpush3.xpose.msk.msra.mxu1 %vm1068_vm2, %v1691_v54  ;;  %9527 = vmatprep.mubr.msk.f32.mxu1 %vm1068_vm2, %v10908_v29 }
 0x2ca   : > { %9525 = vmatprep.subr.msk.mxu1 %vm1068_vm2, %v1689_v56 }
 0x2cb   : > { %v11027_v52 = vpop.permute.xlu1 %2231 }
 0x2cd   : > { %9526 = vmatpush3.xpose.msk.msra.mxu1 %vm1068_vm2, %v1689_v56 }
 0x2ce   : > { %9537 = vmatprep.subr.mxu1 %v2058_v57 }
 0x2d0   : > { %9528 = vmatmul.mubr.msk.f32.vlgmr.msra.gmra.mxu1 %vm1068_vm2, %v10916_v31 }
 0x2d1   : > { %9538 = vmatpush3.msra.mxu1 %v2058_v57 }
 0x2d2   : > { %9539 = vmatprep.subr.mxu1 %v2056_v62 }
 0x2d3   : > { %9540 = vmatpush3.msra.mxu1 %v2056_v62 }
 0x2d4   : > { %9551 = vmatprep.subr.mxu1 %v11027_v52 }
 0x368   : > { %v9480_v0 = vpop.f32.mrf.mxu1 }
 0x369   : > { %v11030_v1 = vmul.f32 0.5, %v9480_v0 }
 0x36a   : > { %v1143_v2 = vpop.f32.mrf.mxu1 }
 0x36b   : > { %v11032_v3 = vmul.f32 0.5, %v1143_v2  ;;  %v1795_v27 = vsel %vm1791_vm3, %v11030_v1, -inf }
 0x36c   : > { %1796 = vmax.xlane.f32.xlu1 %v1795_v27  ;;  %v11106_v27 = vpop.permute.xlu1 %2229 }
 0x36d   : > { %v1792_v4 = vsel %vm1791_vm3, %v11032_v3, -inf }
 0x36e   : > { %1793 = vmax.xlane.f32.xlu0 %v1792_v4  ;;  %v11108_v4 = vpop.permute.xlu0 %2142 }
 0x370   : > { %v9487_v39 = vpop.f32.mrf.mxu1 }
 0x371   : > { %v11038_v44 = vmul.f32 0.5, %v9487_v39  ;;  %v11110_v39 = vpop.permute.xlu1 %2405 }
 0x372   : > { %v1232_v45 = vpop.f32.mrf.mxu1 }
 0x373   : > { %v11040_v5 = vmul.f32 0.5, %v1232_v45  ;;  %v1801_v8 = vsel %vm1791_vm3, %v11038_v44, -inf  ;;  %v11112_v45 = vpop.permute.xlu0 %2318 }
 0x374   : > { %1802 = vmax.xlane.f32.xlu0 %v1801_v8 }
 0x375   : > { %v1798_v9 = vsel %vm1791_vm3, %v11040_v5, -inf  ;;  %v11114_v8 = vpop.permute.xlu1 %2403 }
 0x378   : > { %1799 = vmax.xlane.f32.xlu0 %v1798_v9  ;;  %v9494_v33 = vpop.f32.mrf.mxu1  ;;  %v11116_v9 = vpop.permute.xlu0 %2316 }
 0x379   : > { %v11046_v10 = vmul.f32 0.5, %v9494_v33  ;;  %v9508_v11 = vpop.f32.mrf.mxu0  ;;  %v11118_v33 = vpop.permute.xlu1 %2579 }
 0x37a   : > { %v1321_v51 = vpop.f32.mrf.mxu1  ;;  %v11048_v60 = vmul.f32 0.5, %v9508_v11 }
 0x37b   : > { %v11050_v12 = vmul.f32 0.5, %v1321_v51  ;;  %v1499_v13 = vpop.f32.mrf.mxu0  ;;  %v1807_v53 = vsel %vm1791_vm3, %v11046_v10, -inf }
 0x37c   : > { %1808 = vmax.xlane.f32.xlu1 %v1807_v53  ;;  %v11054_v14 = vmul.f32 0.5, %v1499_v13  ;;  %v1819_v37 = vsel %vm1791_vm3, %v11048_v60, -inf  ;;  %v11120_v11 = vpop.permute.xlu0 %2490 }
 0x37d   : > { %v1804_v15 = vsel %vm1791_vm3, %v11050_v12, -inf  ;;  %v11122_v51 = vpop.permute.xlu1 %2577 }
 0x37e   : > { %1805 = vmax.xlane.f32.xlu0 %v1804_v15  ;;  %v1816_v35 = vsel %vm1791_vm3, %v11054_v14, -inf }
 0x380   : > { %v9501_v41 = vpop.f32.mrf.mxu1  ;;  %1820 = vmax.xlane.f32.xlu1 %v1819_v37  ;;  %v11124_v13 = vpop.permute.xlu0 %2686 }
 0x381   : > { %v11060_v18 = vmul.f32 0.5, %v9501_v41  ;;  %v9522_v19 = vpop.f32.mrf.mxu0  ;;  %v11126_v53 = vpop.permute.xlu1 %2777 }
 0x382   : > { %v1410_v38 = vpop.f32.mrf.mxu1  ;;  %1817 = vmax.xlane.f32.xlu0 %v1816_v35  ;;  %v11064_v32 = vmul.f32 0.5, %v9522_v19 }
 0x383   : > { %v11066_v42 = vmul.f32 0.5, %v1410_v38  ;;  %v1677_v43 = vpop.f32.mrf.mxu0  ;;  %v1813_v7 = vsel %vm1791_vm3, %v11060_v18, -inf }
 0x384   : > { %1814 = vmax.xlane.f32.xlu1 %v1813_v7  ;;  %v11070_v46 = vmul.f32 0.5, %v1677_v43  ;;  %v1831_v16 = vsel %vm1791_vm3, %v11064_v32, -inf  ;;  %v11128_v15 = vpop.permute.xlu0 %2684 }
 0x385   : > { %v1810_v47 = vsel %vm1791_vm3, %v11066_v42, -inf  ;;  %v11130_v37 = vpop.permute.xlu1 %2775 }
 0x386   : > { %1811 = vmax.xlane.f32.xlu0 %v1810_v47  ;;  %v1828_v36 = vsel %vm1791_vm3, %v11070_v46, -inf }
 0x388   : > { %v9515_v49 = vpop.f32.mrf.mxu1  ;;  %1832 = vmax.xlane.f32.xlu1 %v1831_v16  ;;  %v11132_v41 = vpop.permute.xlu0 %2680 }
 0x389   : > { %v11076_v50 = vmul.f32 0.5, %v9515_v49  ;;  %v11134_v19 = vpop.permute.xlu1 %2868 }
 0x38a   : > { %v1588_v54 = vpop.f32.mrf.mxu1  ;;  %1829 = vmax.xlane.f32.xlu0 %v1828_v36 }
 0x38b   : > { %v11080_v55 = vmul.f32 0.5, %v1588_v54  ;;  %v1825_v56 = vsel %vm1791_vm3, %v11076_v50, -inf }
 0x38c   : > { %1826 = vmax.xlane.f32.xlu1 %v1825_v56  ;;  %v11136_v35 = vpop.permute.xlu0 %2682 }
 0x38d   : > { %v1822_v17 = vsel %vm1791_vm3, %v11080_v55, -inf  ;;  %v11138_v38 = vpop.permute.xlu1 %2771 }
 0x38e   : > { %1823 = vmax.xlane.f32.xlu0 %v1822_v17  ;;  %13251 = vst [vmem:[#allocation12_spill] sm:$0xff] %v11138_v38 }
 0x390   : > { %v9529_v57 = vpop.f32.mrf.mxu1  ;;  %v11140_v43 = vpop.permute.xlu0 %2959 }
 0x391   : > { %v11086_v58 = vmul.f32 0.5, %v9529_v57  ;;  %13252 = vst [vmem:[#allocation13_spill] sm:$0xff] %v11140_v43  ;;  %v11142_v7 = vpop.permute.xlu1 %2773 }
 0x392   : > { %v1766_v59 = vpop.f32.mrf.mxu1  ;;  %13253 = vst [vmem:[#allocation14_spill] sm:$0xff] %v11142_v7 }
 0x393   : > { %v11088_v62 = vmul.f32 0.5, %v1766_v59  ;;  %v1837_v0 = vsel %vm1791_vm3, %v11086_v58, -inf }
 0x394   : > { %1838 = vmax.xlane.f32.xlu1 %v1837_v0  ;;  %v11144_v47 = vpop.permute.xlu0 %2492 }
 0x395   : > { %v1834_v2 = vsel %vm1791_vm3, %v11088_v62, -inf }
 0x396   : > { %1835 = vmax.xlane.f32.xlu0 %v1834_v2 }
 0x3a5   : > { %2957 = vrot.lane.b32.xlu1 %v10876_v40, %s10427_s4 }
 0x3a9   : > { %3050 = vrot.lane.b32.xlu1 %v10902_v6, %s10427_s4 }
 0x3ac   : > { %2866 = vrot.lane.b32.xlu0 %v10878_v22, %s10427_s4 }
 0x3ad   : > { %2953 = vrot.lane.b32.xlu1 %v10876_v40, %s10428_s24 }
 0x3b0   : > { %2862 = vrot.lane.b32.xlu0 %v10878_v22, %s10428_s24 }
 0x3b4   : > { %2864 = vrot.lane.b32.xlu0 %v10884_v24, %s10428_s24 }
 0x3f5   : > { %v1797_v16 = vpop.xlane.xlu1 %1796 }
 0x3f6   : > { %v1841_v49 = vsub.f32 %v11030_v1, %v1797_v16 }
 0x3f7   : > { %v1794_v36 = vpop.xlane.xlu0 %1793 }
 0x3f8   : > { %v1858_v54 = vmul.f32 1.442695, %v1841_v49  ;;  %v1840_v56 = vsub.f32 %v11032_v3, %v1794_v36 }
 0x3fa   : > { %10065 = vpow2.f32 %v1858_v54  ;;  %v1856_v17 = vmul.f32 1.442695, %v1840_v56 }
 0x3fc   : > { %10067 = vpow2.f32 %v1856_v17 }
 0x3fd   : > { %v1803_v57 = vpop.xlane.xlu0 %1802 }
 0x3fe   : > { %v1843_v59 = vsub.f32 %v11038_v44, %v1803_v57 }
 0x400   : > { %v1862_v0 = vmul.f32 1.442695, %v1843_v59 }
 0x401   : > { %v1800_v2 = vpop.xlane.xlu0 %1799 }
 0x402   : > { %10069 = vpow2.f32 %v1862_v0  ;;  %v1842_v7 = vsub.f32 %v11040_v5, %v1800_v2 }
 0x404   : > { %v1860_v43 = vmul.f32 1.442695, %v1842_v7 }
 0x405   : > { %v1809_v38 = vpop.xlane.xlu1 %1808 }
 0x406   : > { %10071 = vpow2.f32 %v1860_v43  ;;  %v1845_v1 = vsub.f32 %v11046_v10, %v1809_v38 }
 0x407   : > { %v11151_v16 = vpop.eup %10065  ;;  %v1806_v49 = vpop.xlane.xlu0 %1805 }
 0x408   : > { %v1866_v3 = vmul.f32 1.442695, %v1845_v1  ;;  %v1844_v36 = vsub.f32 %v11050_v12, %v1806_v49  ;;  %v1891_v54 = vsel %vm1791_vm3, %v11151_v16, 0.0 }
 0x409   : > { %v11156_v44 = vpop.eup %10067  ;;  %v1821_v56 = vpop.xlane.xlu1 %1820  ;;  %1892 = vadd.xlane.f32.xlu1 %v1891_v54 }
 0x40a   : > { %10073 = vpow2.f32 %v1866_v3  ;;  %v1864_v5 = vmul.f32 1.442695, %v1844_v36  ;;  %v1849_v7 = vsub.f32 %v11048_v60, %v1821_v56  ;;  %v1888_v10 = vsel %vm1791_vm3, %v11156_v44, 0.0 }
 0x40b   : > { %1889 = vadd.xlane.f32.xlu0 %v1888_v10  ;;  %v1818_v38 = vpop.xlane.xlu0 %1817 }
 0x40c   : > { %10075 = vpow2.f32 %v1864_v5  ;;  %v1874_v43 = vmul.f32 1.442695, %v1849_v7  ;;  %v1848_v12 = vsub.f32 %v11054_v14, %v1818_v38 }
 0x40d   : > { %v1815_v17 = vpop.xlane.xlu1 %1814 }
 0x40e   : > { %10077 = vpow2.f32 %v1874_v43  ;;  %v1872_v57 = vmul.f32 1.442695, %v1848_v12  ;;  %v1847_v59 = vsub.f32 %v11060_v18, %v1815_v17 }
 0x40f   : > { %v11163_v0 = vpop.eup %10069  ;;  %v1812_v2 = vpop.xlane.xlu0 %1811 }
 0x410   : > { %10079 = vpow2.f32 %v1872_v57  ;;  %v1870_v1 = vmul.f32 1.442695, %v1847_v59  ;;  %v1846_v60 = vsub.f32 %v11066_v42, %v1812_v2  ;;  %v1897_v49 = vsel %vm1791_vm3, %v11163_v0, 0.0 }
 0x411   : > { %v1833_v3 = vpop.xlane.xlu1 %1832  ;;  %1898 = vadd.xlane.f32.xlu1 %v1897_v49 }
 0x412   : > { %10081 = vpow2.f32 %v1870_v1  ;;  %v1868_v36 = vmul.f32 1.442695, %v1846_v60  ;;  %v1853_v14 = vsub.f32 %v11064_v32, %v1833_v3 }
 0x413   : > { %v11169_v54 = vpop.eup %10071  ;;  %v1830_v56 = vpop.xlane.xlu0 %1829 }
 0x414   : > { %10083 = vpow2.f32 %v1868_v36  ;;  %v1882_v18 = vmul.f32 1.442695, %v1853_v14  ;;  %v1852_v5 = vsub.f32 %v11070_v46, %v1830_v56  ;;  %v1894_v7 = vsel %vm1791_vm3, %v11169_v54, 0.0 }
 0x415   : > { %v1827_v42 = vpop.xlane.xlu1 %1826  ;;  %1895 = vadd.xlane.f32.xlu0 %v1894_v7 }
 0x416   : > { %10085 = vpow2.f32 %v1882_v18  ;;  %v1880_v10 = vmul.f32 1.442695, %v1852_v5  ;;  %v1851_v38 = vsub.f32 %v11076_v50, %v1827_v42 }
 0x417   : > { %v11175_v43 = vpop.eup %10073  ;;  %v1824_v12 = vpop.xlane.xlu0 %1823 }
 0x418   : > { %10087 = vpow2.f32 %v1880_v10  ;;  %v1878_v32 = vmul.f32 1.442695, %v1851_v38  ;;  %v1850_v17 = vsub.f32 %v11080_v55, %v1824_v12  ;;  %v1903_v57 = vsel %vm1791_vm3, %v11175_v43, 0.0 }
 0x419   : > { %v11180_v46 = vpop.eup %10075  ;;  %1904 = vadd.xlane.f32.xlu1 %v1903_v57 }
 0x41a   : > { %10089 = vpow2.f32 %v1878_v32  ;;  %v1876_v59 = vmul.f32 1.442695, %v1850_v17  ;;  %v1900_v2 = vsel %vm1791_vm3, %v11180_v46, 0.0 }
 0x41b   : > { %v11184_v1 = vpop.eup %10077  ;;  %1901 = vadd.xlane.f32.xlu0 %v1900_v2 }
 0x41c   : > { %10091 = vpow2.f32 %v1876_v59  ;;  %v1915_v50 = vsel %vm1791_vm3, %v11184_v1, 0.0 }
 0x41d   : > { %v11188_v60 = vpop.eup %10079  ;;  %v1839_v55 = vpop.xlane.xlu1 %1838  ;;  %1916 = vadd.xlane.f32.xlu1 %v1915_v50 }
 0x41e   : > { %v1855_v49 = vsub.f32 %v11086_v58, %v1839_v55  ;;  %v1912_v3 = vsel %vm1791_vm3, %v11188_v60, 0.0 }
 0x41f   : > { %v11193_v36 = vpop.eup %10081  ;;  %1913 = vadd.xlane.f32.xlu0 %v1912_v3  ;;  %v1836_v14 = vpop.xlane.xlu0 %1835 }
 0x420   : > { %v1886_v56 = vmul.f32 1.442695, %v1855_v49  ;;  %v1854_v18 = vsub.f32 %v11088_v62, %v1836_v14  ;;  %v1909_v5 = vsel %vm1791_vm3, %v11193_v36, 0.0 }
 0x421   : > { %v11198_v7 = vpop.eup %10083  ;;  %1910 = vadd.xlane.f32.xlu1 %v1909_v5  ;;  %v11273_v3 = vpop.permute.xlu1 %2957 }
 0x422   : > { %10093 = vpow2.f32 %v1886_v56  ;;  %v1884_v42 = vmul.f32 1.442695, %v1854_v18  ;;  %v1906_v58 = vsel %vm1791_vm3, %v11198_v7, 0.0 }
 0x423   : > { %v11202_v10 = vpop.eup %10085  ;;  %1907 = vadd.xlane.f32.xlu0 %v1906_v58  ;;  %v11276_v14 = vpop.permute.xlu0 %2866 }
 0x424   : > { %10095 = vpow2.f32 %v1884_v42  ;;  %v1927_v38 = vsel %vm1791_vm3, %v11202_v10, 0.0 }
 0x425   : > { %v11206_v12 = vpop.eup %10087  ;;  %1928 = vadd.xlane.f32.xlu1 %v1927_v38  ;;  %v11282_v56 = vpop.permute.xlu1 %3050 }
 0x426   : > { %v1924_v62 = vsel %vm1791_vm3, %v11206_v12, 0.0 }
 0x427   : > { %v11210_v32 = vpop.eup %10089  ;;  %1925 = vadd.xlane.f32.xlu0 %v1924_v62  ;;  %v11286_v18 = vpop.permute.xlu0 %2862 }
 0x428   : > { %v1921_v17 = vsel %vm1791_vm3, %v11210_v32, 0.0 }
 0x429   : > { %v11214_v57 = vpop.eup %10091  ;;  %1922 = vadd.xlane.f32.xlu1 %v1921_v17  ;;  %v11292_v5 = vpop.permute.xlu1 %2953 }
 0x42a   : > { %v1918_v59 = vsel %vm1791_vm3, %v11214_v57, 0.0 }
 0x42b   : > { %1919 = vadd.xlane.f32.xlu0 %v1918_v59  ;;  %v11296_v42 = vpop.permute.xlu0 %2864 }
 0x42f   : > { %v11218_v2 = vpop.eup %10093 }
 0x430   : > { %v1933_v50 = vsel %vm1791_vm3, %v11218_v2, 0.0 }
 0x431   : > { %v11222_v55 = vpop.eup %10095  ;;  %1934 = vadd.xlane.f32.xlu1 %v1933_v50 }
 0x432   : > { %v1930_v49 = vsel %vm1791_vm3, %v11222_v55, 0.0 }
 0x433   : > { %1931 = vadd.xlane.f32.xlu0 %v1930_v49 }
 0x442   : > { %2955 = vrot.lane.b32.xlu1 %v10882_v23, %s10428_s24 }
 0x446   : > { %3139 = vrot.lane.b32.xlu1 %v10890_v25, %s10427_s4 }
 0x449   : > { %3141 = vrot.lane.b32.xlu0 %v10900_v28, %s10427_s4 }
 0x44a   : > { %3232 = vrot.lane.b32.xlu1 %v10918_v34, %s10427_s4 }
 0x44d   : > { %3048 = vrot.lane.b32.xlu0 %v10892_v61, %s10427_s4 }
 0x44e   : > { %3135 = vrot.lane.b32.xlu1 %v10890_v25, %s10428_s24 }
 0x451   : > { %3044 = vrot.lane.b32.xlu0 %v10892_v61, %s10428_s24 }
 0x452   : > { %3137 = vrot.lane.b32.xlu1 %v10900_v28, %s10428_s24 }
 0x455   : > { %3046 = vrot.lane.b32.xlu0 %v10902_v6, %s10428_s24 }
 0x456   : > { %3321 = vrot.lane.b32.xlu1 %v10908_v29, %s10427_s4 }
 0x459   : > { %3323 = vrot.lane.b32.xlu0 %v10916_v31, %s10427_s4 }
 0x45a   : > { %3228 = vrot.lane.b32.xlu1 %v10918_v34, %s10428_s24 }
 0x45d   : > { %3230 = vrot.lane.b32.xlu0 %v10910_v30, %s10427_s4 }
 0x45e   : > { %3319 = vrot.lane.b32.xlu1 %v10916_v31, %s10428_s24 }
 0x461   : > { %3226 = vrot.lane.b32.xlu0 %v10910_v30, %s10428_s24 }
 0x462   : > { %3689 = vrot.lane.b32.xlu1 %v10868_v48, %s10429_s27 }
 0x465   : > { %3317 = vrot.lane.b32.xlu0 %v10908_v29, %s10428_s24  ;;  %s13298_s24 = scalar_lea.vmem %s13213_s5, %s10526_s25 }
 0x466   : > { %3600 = vrot.lane.b32.xlu1 %v10862_v63, %s10429_s27 }
 0x469   : > { %3602 = vrot.lane.b32.xlu0 %v10870_v21, %s10429_s27 }
 0x46a   : > { %3687 = vrot.lane.b32.xlu1 %v10860_v20, %s10429_s27 }
 0x46d   : > { %3776 = vrot.lane.b32.xlu0 %v10884_v24, %s10429_s27 }
 0x46e   : > { %3863 = vrot.lane.b32.xlu1 %v10882_v23, %s10429_s27 }
 0x471   : > { %3774 = vrot.lane.b32.xlu0 %v10878_v22, %s10429_s27 }
 0x472   : > { %3861 = vrot.lane.b32.xlu1 %v10876_v40, %s10429_s27 }
 0x475   : > { %3950 = vrot.lane.b32.xlu0 %v10902_v6, %s10429_s27 }
 0x476   : > { %4037 = vrot.lane.b32.xlu1 %v10900_v28, %s10429_s27 }
 0x479   : > { %3948 = vrot.lane.b32.xlu0 %v10892_v61, %s10429_s27 }
 0x47a   : > { %4035 = vrot.lane.b32.xlu1 %v10890_v25, %s10429_s27 }
 0x47d   : > { %4124 = vrot.lane.b32.xlu0 %v10918_v34, %s10429_s27 }
 0x47e   : > { %4211 = vrot.lane.b32.xlu1 %v10916_v31, %s10429_s27 }
 0x481   : > { %4122 = vrot.lane.b32.xlu0 %v10910_v30, %s10429_s27 }
 0x482   : > { %4209 = vrot.lane.b32.xlu1 %v10908_v29, %s10429_s27 }
 0x485   : > { %4383 = vrot.lane.b32.xlu0 %v10870_v21, %s10430_s22 }
 0x486   : > { %4474 = vrot.lane.b32.xlu1 %v10868_v48, %s10430_s22 }
 0x489   : > { %4381 = vrot.lane.b32.xlu0 %v10862_v63, %s10430_s22 }
 0x48a   : > { %4472 = vrot.lane.b32.xlu1 %v10860_v20, %s10430_s22 }
 0x48d   : > { %4377 = vrot.lane.b32.xlu0 %v10862_v63, %s10431_s18 }
 0x48e   : > { %4565 = vrot.lane.b32.xlu1 %v10884_v24, %s10430_s22 }
 0x491   : > { %4379 = vrot.lane.b32.xlu0 %v10870_v21, %s10431_s18 }
 0x492   : > { %v1893_v58 = vpop.xlane.xlu1 %1892  ;;  %4468 = vrot.lane.b32.xlu1 %v10860_v20, %s10431_s18 }
 0x493   : > { %10097 = vrcp.f32 %v1893_v58 }
 0x494   : > { %v1890_v38 = vpop.xlane.xlu0 %1889 }
 0x495   : > { %10099 = vrcp.f32 %v1890_v38  ;;  %4656 = vrot.lane.b32.xlu0 %v10882_v23, %s10430_s22 }
 0x496   : > { %4470 = vrot.lane.b32.xlu1 %v10868_v48, %s10431_s18 }
 0x49a   : > { %v1899_v62 = vpop.xlane.xlu1 %1898 }
 0x49b   : > { %10101 = vrcp.f32 %v1899_v62 }
 0x49e   : > { %v1896_v17 = vpop.xlane.xlu0 %1895 }
 0x49f   : > { %10103 = vrcp.f32 %v1896_v17 }
 0x4a0   : > { %v10098_v59 = vpop.eup %10097 }
 0x4a1   : > { %v1953_v58 = vmul.f32 %v10098_v59, %v11151_v16 }
 0x4a2   : > { %v10100_v50 = vpop.eup %10099  ;;  %v1905_v49 = vpop.xlane.xlu1 %1904 }
 0x4a3   : > { %v1952_v21 = vmul.f32 %v10100_v50, %v11156_v44  ;;  %10105 = vrcp.f32 %v1905_v49 }
 0x4a4   : > { %v1902_v20 = vpop.xlane.xlu0 %1901 }
 0x4a5   : > { %10107 = vrcp.f32 %v1902_v20  ;;  %9534 = vmatprep.mubr.msk.f32.mxu0 %vm1791_vm3, %v1952_v21 }
 0x4a6   : > { %v1917_v38 = vpop.xlane.xlu1 %1916  ;;  %9535 = vmatmul.mubr.msk.f32.vlgmr.msra.gmra.mxu0 %vm1791_vm3, %v1953_v58 }
 0x4a7   : > { %9545 = vmatpush3.msra.mxu0 %v11013_v26  ;;  %10109 = vrcp.f32 %v1917_v38 }
 0x4a8   : > { %9546 = vmatprep.subr.mxu0 %v11108_v4  ;;  %v1914_v62 = vpop.xlane.xlu0 %1913  ;;  %v10102_v17 = vpop.eup %10101 }
 0x4a9   : > { %9547 = vmatpush3.msra.mxu0 %v11108_v4  ;;  %10111 = vrcp.f32 %v1914_v62  ;;  %v1955_v26 = vmul.f32 %v10102_v17, %v11163_v0 }
 0x4aa   : > { %9558 = vmatprep.subr.mxu0 %v11112_v45  ;;  %v1911_v44 = vpop.xlane.xlu1 %1910 }
 0x4ab   : > { %10113 = vrcp.f32 %v1911_v44 }
 0x4ac   : > { %v10104_v16 = vpop.eup %10103  ;;  %v1908_v20 = vpop.xlane.xlu0 %1907 }
 0x4ad   : > { %10115 = vrcp.f32 %v1908_v20  ;;  %v1954_v21 = vmul.f32 %v10104_v16, %v11169_v54 }
 0x4ae   : > { %v1929_v59 = vpop.xlane.xlu1 %1928 }
 0x4af   : > { %9541 = vmatprep.mubr.msk.f32.mxu1 %vm1791_vm3, %v1954_v21  ;;  %10117 = vrcp.f32 %v1929_v59 }
 0x4b0   : > { %9542 = vmatmul.mubr.msk.f32.vlgmr.msra.gmra.mxu1 %vm1791_vm3, %v1955_v26  ;;  %v1926_v4 = vpop.xlane.xlu0 %1925  ;;  %v10106_v50 = vpop.eup %10105 }
 0x4b1   : > { %9552 = vmatpush3.msra.mxu1 %v11027_v52  ;;  %10119 = vrcp.f32 %v1926_v4  ;;  %v1957_v38 = vmul.f32 %v10106_v50, %v11175_v43 }
 0x4b2   : > { %v10108_v49 = vpop.eup %10107  ;;  %9553 = vmatprep.subr.mxu1 %v11106_v27  ;;  %v1923_v58 = vpop.xlane.xlu1 %1922 }
 0x4b3   : > { %9554 = vmatpush3.msra.mxu1 %v11106_v27  ;;  %v1956_v54 = vmul.f32 %v10108_v49, %v11180_v46  ;;  %10121 = vrcp.f32 %v1923_v58 }
 0x4b4   : > { %9565 = vmatprep.subr.mxu1 %v11110_v39  ;;  %v1920_v0 = vpop.xlane.xlu0 %1919  ;;  %v10110_v62 = vpop.eup %10109 }
 0x4b5   : > { %10123 = vrcp.f32 %v1920_v0  ;;  %9548 = vmatprep.mubr.msk.f32.mxu0 %vm1791_vm3, %v1956_v54  ;;  %v1961_v27 = vmul.f32 %v10110_v62, %v11184_v1 }
 0x4b6   : > { %v10112_v52 = vpop.eup %10111  ;;  %9549 = vmatmul.mubr.msk.f32.vlgmr.msra.gmra.mxu0 %vm1791_vm3, %v1957_v38 }
 0x4b7   : > { %9559 = vmatpush3.msra.mxu0 %v11112_v45  ;;  %v1960_v44 = vmul.f32 %v10112_v52, %v11188_v60 }
 0x4b8   : > { %9560 = vmatprep.subr.mxu0 %v11116_v9  ;;  %v10114_v46 = vpop.eup %10113 }
 0x4b9   : > { %9561 = vmatpush3.msra.mxu0 %v11116_v9  ;;  %9562 = vmatprep.mubr.msk.f32.mxu0 %vm1791_vm3, %v1960_v44  ;;  %v1959_v1 = vmul.f32 %v10114_v46, %v11193_v36 }
 0x4ba   : > { %v10116_v43 = vpop.eup %10115  ;;  %9572 = vmatprep.subr.mxu0 %v11144_v47  ;;  %v1935_v17 = vpop.xlane.xlu1 %1934  ;;  %9563 = vmatmul.mubr.msk.f32.vlgmr.msra.gmra.mxu0 %vm1791_vm3, %v1961_v27 }
 0x4bb   : > { %9573 = vmatpush3.msra.mxu0 %v11144_v47  ;;  %v1958_v45 = vmul.f32 %v10116_v43, %v11198_v7  ;;  %10125 = vrcp.f32 %v1935_v17 }
 0x4bc   : > { %9574 = vmatprep.subr.mxu0 %v11120_v11  ;;  %v1932_v60 = vpop.xlane.xlu0 %1931  ;;  %v10118_v16 = vpop.eup %10117 }
 0x4bd   : > { %9575 = vmatpush3.msra.mxu0 %v11120_v11  ;;  %10127 = vrcp.f32 %v1932_v60  ;;  %9555 = vmatprep.mubr.msk.f32.mxu1 %vm1791_vm3, %v1958_v45  ;;  %v1965_v11 = vmul.f32 %v10118_v16, %v11202_v10 }
 0x4be   : > { %v10120_v9 = vpop.eup %10119  ;;  %9586 = vmatprep.subr.msk.mxu0 %vm1068_vm2, %v11124_v13  ;;  %v11342_v20 = vpop.permute.xlu1 %2955  ;;  %9556 = vmatmul.mubr.msk.f32.vlgmr.msra.gmra.mxu1 %vm1791_vm3, %v1959_v1 }
 0x4bf   : > { %9566 = vmatpush3.msra.mxu1 %v11110_v39  ;;  %v1964_v47 = vmul.f32 %v10120_v9, %v11206_v12 }
 0x4c0   : > { %9567 = vmatprep.subr.mxu1 %v11114_v8  ;;  %v11348_v36 = vpop.permute.xlu0 %3141  ;;  %v10122_v7 = vpop.eup %10121 }
 0x4c1   : > { %9568 = vmatpush3.msra.mxu1 %v11114_v8  ;;  %9576 = vmatprep.mubr.msk.f32.mxu0 %vm1791_vm3, %v1964_v47  ;;  %v1963_v10 = vmul.f32 %v10122_v7, %v11210_v32 }
 0x4c2   : > { %v10124_v21 = vpop.eup %10123  ;;  %9579 = vmatprep.subr.mxu1 %v11118_v33  ;;  %v11354_v59 = vpop.permute.xlu1 %3139  ;;  %9577 = vmatmul.mubr.msk.f32.vlgmr.msra.gmra.mxu0 %vm1791_vm3, %v1965_v11 }
 0x4c3   : > { %9587 = vmatpush3.xpose.msk.msra.mxu0 %vm1068_vm2, %v11124_v13  ;;  %9590 = vmatprep.mubr.msk.f32.mxu0 %vm1068_vm2, %v11132_v41  ;;  %v1962_v39 = vmul.f32 %v10124_v21, %v11214_v57 }
 0x4c4   : > { %9588 = vmatprep.subr.msk.mxu0 %vm1068_vm2, %v11128_v15  ;;  %v3049_v8 = vpop.permute.xlu0 %3048 }
 0x4c5   : > { %9569 = vmatprep.mubr.msk.f32.mxu1 %vm1791_vm3, %v1962_v39 }
 0x4c6   : > { %v3233_v12 = vpop.permute.xlu1 %3232  ;;  %9570 = vmatmul.mubr.msk.f32.vlgmr.msra.gmra.mxu1 %vm1791_vm3, %v1963_v10 }
 0x4c7   : > { %9580 = vmatpush3.msra.mxu1 %v11118_v33  ;;  %9589 = vmatpush3.xpose.msk.msra.mxu0 %vm1068_vm2, %v11128_v15 }
 0x4c8   : > { %9581 = vmatprep.subr.mxu1 %v11122_v51  ;;  %9600 = vmatprep.subr.msk.mxu0 %vm1068_vm2, %v11134_v19  ;;  %v3045_v13 = vpop.permute.xlu0 %3044  ;;  %v10126_v41 = vpop.eup %10125 }
 0x4c9   : > { %9582 = vmatpush3.msra.mxu1 %v11122_v51  ;;  %v1967_v57 = vmul.f32 %v10126_v41, %v11218_v2 }
 0x4ca   : > { %v10128_v32 = vpop.eup %10127  ;;  %9591 = vmatmul.mubr.msk.f32.vlgmr.msra.gmra.mxu0 %vm1068_vm2, %v11136_v35  ;;  %9593 = vmatprep.subr.msk.mxu1 %vm1068_vm2, %v11126_v53  ;;  %v3136_v33 = vpop.permute.xlu1 %3135 }
 0x4cb   : > { %9601 = vmatpush3.xpose.msk.msra.mxu0 %vm1068_vm2, %v11134_v19  ;;  %9604 = vmatprep.mubr.msk.f32.mxu0 %vm1068_vm2, %v11286_v18  ;;  %v1966_v15 = vmul.f32 %v10128_v32, %v11222_v55  ;;  %v13254_v19 = vld [vmem:[#allocation12_spill] sm:$0xff]  ;;  %v13256_v18 = vld [vmem:[#allocation14_spill] sm:$0xff] }
 0x4cc   : > { %9602 = vmatprep.subr.msk.mxu0 %vm1068_vm2, %v11276_v14  ;;  %v3047_v51 = vpop.permute.xlu0 %3046 }
 0x4cd   : > { %9583 = vmatprep.mubr.msk.f32.mxu1 %vm1791_vm3, %v1966_v15 }
 0x4ce   : > { %v3138_v35 = vpop.permute.xlu1 %3137  ;;  %9584 = vmatmul.mubr.msk.f32.vlgmr.msra.gmra.mxu1 %vm1791_vm3, %v1967_v57 }
 0x4cf   : > { %9594 = vmatpush3.xpose.msk.msra.mxu1 %vm1068_vm2, %v11126_v53  ;;  %9603 = vmatpush3.xpose.msk.msra.mxu0 %vm1068_vm2, %v11276_v14  ;;  %v13255_v53 = vld [vmem:[#allocation13_spill] sm:$0xff] }
 0x4d0   : > { %9595 = vmatprep.subr.msk.mxu1 %vm1068_vm2, %v11130_v37  ;;  %9597 = vmatprep.mubr.msk.f32.mxu1 %vm1068_vm2, %v13254_v19  ;;  %v3324_v55 = vpop.permute.xlu0 %3323 }
 0x4d1   : > { %9614 = vmatprep.subr.msk.mxu0 %vm1068_vm2, %v11282_v56 }
 0x4d2   : > { %9605 = vmatmul.mubr.msk.f32.vlgmr.msra.gmra.mxu0 %vm1068_vm2, %v11296_v42  ;;  %v3322_v2 = vpop.permute.xlu1 %3321 }
 0x4d3   : > { %9596 = vmatpush3.xpose.msk.msra.mxu1 %vm1068_vm2, %v11130_v37  ;;  %9615 = vmatpush3.xpose.msk.msra.mxu0 %vm1068_vm2, %v11282_v56 }
 0x4d4   : > { %9618 = vmatprep.mubr.msk.f32.mxu0 %vm1068_vm2, %v3045_v13  ;;  %9607 = vmatprep.subr.msk.mxu1 %vm1068_vm2, %v13255_v53  ;;  %v3231_v14 = vpop.permute.xlu0 %3230 }
 0x4d5   : > { %9616 = vmatprep.subr.msk.mxu0 %vm1068_vm2, %v3049_v8 }
 0x4d6   : > { %9598 = vmatmul.mubr.msk.f32.vlgmr.msra.gmra.mxu1 %vm1068_vm2, %v13256_v18  ;;  %v3229_v26 = vpop.permute.xlu1 %3228 }
 0x4d7   : > { %9608 = vmatpush3.xpose.msk.msra.mxu1 %vm1068_vm2, %v13255_v53  ;;  %9611 = vmatprep.mubr.msk.f32.mxu1 %vm1068_vm2, %v11292_v5 }
 0x4d8   : > { %9617 = vmatpush3.xpose.msk.msra.mxu0 %vm1068_vm2, %v3049_v8  ;;  %9609 = vmatprep.subr.msk.mxu1 %vm1068_vm2, %v11273_v3  ;;  %v3227_v37 = vpop.permute.xlu0 %3226 }
 0x4d9   : > { %9628 = vmatprep.subr.msk.mxu0 %vm1068_vm2, %v3233_v12 }
 0x4da   : > { %v3320_v56 = vpop.permute.xlu1 %3319 }
 0x4db   : > { %9619 = vmatmul.mubr.msk.f32.vlgmr.msra.gmra.mxu0 %vm1068_vm2, %v3047_v51  ;;  %9610 = vmatpush3.xpose.msk.msra.mxu1 %vm1068_vm2, %v11273_v3 }
 0x4dc   : > { %9629 = vmatpush3.xpose.msk.msra.mxu0 %vm1068_vm2, %v3233_v12  ;;  %9632 = vmatprep.mubr.msk.f32.mxu0 %vm1068_vm2, %v3227_v37  ;;  %v3318_v42 = vpop.permute.xlu0 %3317 }
 0x4dd   : > { %9621 = vmatprep.subr.msk.mxu1 %vm1068_vm2, %v11348_v36  ;;  %9630 = vmatprep.subr.msk.mxu0 %vm1068_vm2, %v3231_v14 }
 0x4de   : > { %9612 = vmatmul.mubr.msk.f32.vlgmr.msra.gmra.mxu1 %vm1068_vm2, %v11342_v20  ;;  %v3690_v5 = vpop.permute.xlu1 %3689 }
 0x4df   : > { %9622 = vmatpush3.xpose.msk.msra.mxu1 %vm1068_vm2, %v11348_v36  ;;  %9625 = vmatprep.mubr.msk.f32.mxu1 %vm1068_vm2, %v3136_v33 }
 0x4e0   : > { %9631 = vmatpush3.xpose.msk.msra.mxu0 %vm1068_vm2, %v3231_v14  ;;  %9623 = vmatprep.subr.msk.mxu1 %vm1068_vm2, %v11354_v59  ;;  %v3603_v3 = vpop.permute.xlu0 %3602 }
 0x4e1   : > { %9642 = vmatprep.subr.mxu0 %v3603_v3 }
 0x4e2   : > { %v3601_v4 = vpop.permute.xlu1 %3600 }
 0x4e3   : > { %9633 = vmatmul.mubr.msk.f32.vlgmr.msra.gmra.mxu0 %vm1068_vm2, %v3229_v26  ;;  %9624 = vmatpush3.xpose.msk.msra.mxu1 %vm1068_vm2, %v11354_v59 }
 0x4e4   : > { %9643 = vmatpush3.msra.mxu0 %v3603_v3  ;;  %9635 = vmatprep.subr.msk.mxu1 %vm1068_vm2, %v3324_v55  ;;  %v11438_v50 = vpop.permute.xlu0 %3776 }
 0x4e5   : > { %9644 = vmatprep.subr.mxu0 %v3601_v4 }
 0x4e6   : > { %9645 = vmatpush3.msra.mxu0 %v3601_v4  ;;  %9626 = vmatmul.mubr.msk.f32.vlgmr.msra.gmra.mxu1 %vm1068_vm2, %v3138_v35  ;;  %v3688_v49 = vpop.permute.xlu1 %3687 }
 0x4e7   : > { %9656 = vmatprep.subr.mxu0 %v11438_v50  ;;  %9636 = vmatpush3.xpose.msk.msra.mxu1 %vm1068_vm2, %v3324_v55 }
 0x4e8   : > { %9639 = vmatprep.mubr.msk.f32.mxu1 %vm1068_vm2, %v3318_v42  ;;  %9637 = vmatprep.subr.msk.mxu1 %vm1068_vm2, %v3322_v2 }
 0x4ea   : > { %v11447_v58 = vpop.permute.xlu1 %3863 }
 0x4eb   : > { %9638 = vmatpush3.xpose.msk.msra.mxu1 %vm1068_vm2, %v3322_v2 }
 0x4ec   : > { %9649 = vmatprep.subr.mxu1 %v3690_v5 }
 0x4ee   : > { %9640 = vmatmul.mubr.msk.f32.vlgmr.msra.gmra.mxu1 %vm1068_vm2, %v3320_v56 }
 0x4ef   : > { %9650 = vmatpush3.msra.mxu1 %v3690_v5 }
 0x4f0   : > { %9651 = vmatprep.subr.mxu1 %v3688_v49 }
 0x4f1   : > { %9652 = vmatpush3.msra.mxu1 %v3688_v49 }
 0x4f2   : > { %9663 = vmatprep.subr.mxu1 %v11447_v58 }
 0x566   : > { %v9536_v54 = vpop.f32.mrf.mxu0 }
 0x567   : > { %2665 = vst.msk [vmem:[#allocation3 + $0x8] sm:$0xff] %vm1068_vm2, %v9536_v54 }
 0x568   : > { %v2046_v0 = vpop.f32.mrf.mxu0 }
 0x569   : > { %2664 = vst.msk [vmem:[#allocation3] sm:$0xff] %vm1068_vm2, %v2046_v0 }
 0x570   : > { %v9543_v38 = vpop.f32.mrf.mxu1 }
 0x571   : > { %2667 = vst.msk [vmem:[#allocation3 + $0x18] sm:$0xff] %vm1068_vm2, %v9543_v38 }
 0x572   : > { %v2133_v62 = vpop.f32.mrf.mxu1 }
 0x573   : > { %2666 = vst.msk [vmem:[#allocation3 + $0x10] sm:$0xff] %vm1068_vm2, %v2133_v62 }
 0x576   : > { %v9550_v52 = vpop.f32.mrf.mxu0 }
 0x577   : > { %2669 = vst.msk [vmem:[#allocation3 + $0x28] sm:$0xff] %vm1068_vm2, %v9550_v52 }
 0x578   : > { %v2220_v44 = vpop.f32.mrf.mxu0 }
 0x579   : > { %2668 = vst.msk [vmem:[#allocation3 + $0x20] sm:$0xff] %vm1068_vm2, %v2220_v44 }
 0x57a   : > { %v9564_v27 = vpop.f32.mrf.mxu0 }
 0x57b   : > { %2673 = vst.msk [vmem:[#allocation3 + $0x48] sm:$0xff] %vm1068_vm2, %v9564_v27 }
 0x57c   : > { %v2394_v46 = vpop.f32.mrf.mxu0 }
 0x57d   : > { %2672 = vst.msk [vmem:[#allocation3 + $0x40] sm:$0xff] %vm1068_vm2, %v2394_v46 }
 0x57e   : > { %v9557_v43 = vpop.f32.mrf.mxu1 }
 0x57f   : > { %2671 = vst.msk [vmem:[#allocation3 + $0x38] sm:$0xff] %vm1068_vm2, %v9557_v43 }
 0x580   : > { %v2307_v17 = vpop.f32.mrf.mxu1 }
 0x581   : > { %2670 = vst.msk [vmem:[#allocation3 + $0x30] sm:$0xff] %vm1068_vm2, %v2307_v17 }
 0x582   : > { %v9578_v45 = vpop.f32.mrf.mxu0 }
 0x583   : > { %2677 = vst.msk [vmem:[#allocation3 + $0x68] sm:$0xff] %vm1068_vm2, %v9578_v45 }
 0x584   : > { %v2568_v60 = vpop.f32.mrf.mxu0 }
 0x585   : > { %2676 = vst.msk [vmem:[#allocation3 + $0x60] sm:$0xff] %vm1068_vm2, %v2568_v60 }
 0x586   : > { %v9571_v1 = vpop.f32.mrf.mxu1 }
 0x587   : > { %2675 = vst.msk [vmem:[#allocation3 + $0x58] sm:$0xff] %vm1068_vm2, %v9571_v1 }
 0x588   : > { %v2481_v16 = vpop.f32.mrf.mxu1 }
 0x589   : > { %2674 = vst.msk [vmem:[#allocation3 + $0x50] sm:$0xff] %vm1068_vm2, %v2481_v16 }
 0x58a   : > { %v9592_v9 = vpop.f32.mrf.mxu0 }
 0x58b   : > { %v11464_v20 = vmul.f32 0.5, %v9592_v9 }
 0x58c   : > { %v2762_v47 = vpop.f32.mrf.mxu0 }
 0x58d   : > { %v11466_v36 = vmul.f32 0.5, %v2762_v47  ;;  %v3427_v11 = vsel %vm1791_vm3, %v11464_v20, -inf }
 0x58e   : > { %3428 = vmax.xlane.f32.xlu1 %v3427_v11  ;;  %v9585_v7 = vpop.f32.mrf.mxu1  ;;  %v11542_v11 = vpop.permute.xlu1 %3861 }
 0x58f   : > { %2679 = vst.msk [vmem:[#allocation3 + $0x78] sm:$0xff] %vm1068_vm2, %v9585_v7  ;;  %v3424_v21 = vsel %vm1791_vm3, %v11466_v36, -inf  ;;  %v11544_v7 = vpop.permute.xlu0 %3774 }
 0x590   : > { %3425 = vmax.xlane.f32.xlu0 %v3424_v21  ;;  %v2655_v59 = vpop.f32.mrf.mxu1 }
 0x591   : > { %2678 = vst.msk [vmem:[#allocation3 + $0x70] sm:$0xff] %vm1068_vm2, %v2655_v59 }
 0x592   : > { %v9606_v39 = vpop.f32.mrf.mxu0  ;;  %v11546_v21 = vpop.permute.xlu1 %4037 }
 0x593   : > { %v11474_v8 = vmul.f32 0.5, %v9606_v39  ;;  %v11548_v59 = vpop.permute.xlu0 %3950 }
 0x594   : > { %v2944_v10 = vpop.f32.mrf.mxu0 }
 0x595   : > { %v11476_v12 = vmul.f32 0.5, %v2944_v10  ;;  %v3439_v13 = vsel %vm1791_vm3, %v11474_v8, -inf }
 0x596   : > { %3440 = vmax.xlane.f32.xlu1 %v3439_v13  ;;  %v9599_v41 = vpop.f32.mrf.mxu1  ;;  %v11550_v39 = vpop.permute.xlu1 %4035 }
 0x597   : > { %v11480_v32 = vmul.f32 0.5, %v9599_v41  ;;  %v3436_v33 = vsel %vm1791_vm3, %v11476_v12, -inf  ;;  %v11552_v10 = vpop.permute.xlu0 %3948 }
 0x598   : > { %3437 = vmax.xlane.f32.xlu0 %v3436_v33  ;;  %v2853_v15 = vpop.f32.mrf.mxu1 }
 0x599   : > { %v11484_v51 = vmul.f32 0.5, %v2853_v15  ;;  %v3433_v35 = vsel %vm1791_vm3, %v11480_v32, -inf }
 0x59a   : > { %v11554_v13 = vpop.permute.xlu1 %4211 }
 0x59b   : > { %v9620_v57 = vpop.f32.mrf.mxu0  ;;  %v3430_v26 = vsel %vm1791_vm3, %v11484_v51, -inf  ;;  %v11556_v41 = vpop.permute.xlu0 %4124 }
 0x59c   : > { %v11488_v19 = vmul.f32 0.5, %v9620_v57  ;;  %3434 = vmax.xlane.f32.xlu0 %v3433_v35 }
 0x59d   : > { %v3126_v55 = vpop.f32.mrf.mxu0 }
 0x59e   : > { %v9613_v2 = vpop.f32.mrf.mxu1  ;;  %v3451_v53 = vsel %vm1791_vm3, %v11488_v19, -inf  ;;  %v11492_v14 = vmul.f32 0.5, %v3126_v55  ;;  %v11558_v33 = vpop.permute.xlu1 %4209 }
 0x59f   : > { %v11494_v18 = vmul.f32 0.5, %v9613_v2  ;;  %3452 = vmax.xlane.f32.xlu1 %v3451_v53  ;;  %v11560_v15 = vpop.permute.xlu0 %4122 }
 0x5a0   : > { %3431 = vmax.xlane.f32.xlu0 %v3430_v26  ;;  %v3035_v37 = vpop.f32.mrf.mxu1  ;;  %v3448_v3 = vsel %vm1791_vm3, %v11492_v14, -inf }
 0x5a1   : > { %v3445_v56 = vsel %vm1791_vm3, %v11494_v18, -inf  ;;  %v11500_v42 = vmul.f32 0.5, %v3035_v37 }
 0x5a2   : > { %v11562_v57 = vpop.permute.xlu1 %4474 }
 0x5a3   : > { %3446 = vmax.xlane.f32.xlu1 %v3445_v56  ;;  %v9634_v5 = vpop.f32.mrf.mxu0  ;;  %v3442_v52 = vsel %vm1791_vm3, %v11500_v42, -inf  ;;  %v11564_v35 = vpop.permute.xlu0 %4383 }
 0x5a4   : > { %v11504_v4 = vmul.f32 0.5, %v9634_v5  ;;  %3449 = vmax.xlane.f32.xlu0 %v3448_v3 }
 0x5a5   : > { %v3308_v49 = vpop.f32.mrf.mxu0 }
 0x5a6   : > { %v9627_v54 = vpop.f32.mrf.mxu1  ;;  %v3463_v0 = vsel %vm1791_vm3, %v11504_v4, -inf  ;;  %v11508_v38 = vmul.f32 0.5, %v3308_v49  ;;  %v11566_v55 = vpop.permute.xlu1 %4472 }
 0x5a7   : > { %v11510_v62 = vmul.f32 0.5, %v9627_v54  ;;  %3464 = vmax.xlane.f32.xlu1 %v3463_v0  ;;  %v11568_v2 = vpop.permute.xlu0 %4381 }
 0x5a8   : > { %v3217_v44 = vpop.f32.mrf.mxu1  ;;  %3443 = vmax.xlane.f32.xlu0 %v3442_v52  ;;  %v3460_v43 = vsel %vm1791_vm3, %v11508_v38, -inf }
 0x5a9   : > { %v3457_v27 = vsel %vm1791_vm3, %v11510_v62, -inf  ;;  %v11516_v46 = vmul.f32 0.5, %v3217_v44 }
 0x5aa   : > { %v11570_v53 = vpop.permute.xlu1 %4565 }
 0x5ab   : > { %3458 = vmax.xlane.f32.xlu1 %v3457_v27  ;;  %v3454_v60 = vsel %vm1791_vm3, %v11516_v46, -inf  ;;  %v11572_v26 = vpop.permute.xlu0 %4377 }
 0x5ac   : > { %3461 = vmax.xlane.f32.xlu0 %v3460_v43 }
 0x5ae   : > { %v9641_v17 = vpop.f32.mrf.mxu1  ;;  %v11574_v37 = vpop.permute.xlu1 %4468 }
 0x5af   : > { %v11520_v45 = vmul.f32 0.5, %v9641_v17  ;;  %v11576_v56 = vpop.permute.xlu0 %4379 }
 0x5b0   : > { %3455 = vmax.xlane.f32.xlu0 %v3454_v60  ;;  %v3399_v1 = vpop.f32.mrf.mxu1 }
 0x5b1   : > { %v11524_v16 = vmul.f32 0.5, %v3399_v1  ;;  %v3469_v9 = vsel %vm1791_vm3, %v11520_v45, -inf }
 0x5b2   : > { %3470 = vmax.xlane.f32.xlu1 %v3469_v9  ;;  %v11578_v5 = vpop.permute.xlu1 %4470 }
 0x5b3   : > { %v3466_v47 = vsel %vm1791_vm3, %v11524_v16, -inf  ;;  %13257 = vst [vmem:[#allocation12_spill] sm:$0xff] %v11578_v5  ;;  %v11580_v3 = vpop.permute.xlu0 %4656 }
 0x5b4   : > { %3467 = vmax.xlane.f32.xlu0 %v3466_v47  ;;  %13258 = vst [vmem:[#allocation13_spill] sm:$0xff] %v11580_v3 }
 0x5c3   : > { %4654 = vrot.lane.b32.xlu1 %v10876_v40, %s10430_s22 }
 0x5c7   : > { %4747 = vrot.lane.b32.xlu1 %v10902_v6, %s10430_s22 }
 0x5ca   : > { %4563 = vrot.lane.b32.xlu0 %v10878_v22, %s10430_s22 }
 0x5cb   : > { %4650 = vrot.lane.b32.xlu1 %v10876_v40, %s10431_s18 }
 0x5ce   : > { %4559 = vrot.lane.b32.xlu0 %v10878_v22, %s10431_s18 }
 0x5d2   : > { %4561 = vrot.lane.b32.xlu0 %v10884_v24, %s10431_s18 }
 0x617   : > { %v3429_v49 = vpop.xlane.xlu1 %3428 }
 0x618   : > { %v3473_v54 = vsub.f32 %v11464_v20, %v3429_v49 }
 0x619   : > { %v3426_v0 = vpop.xlane.xlu0 %3425 }
 0x61a   : > { %v3490_v52 = vmul.f32 1.442695, %v3473_v54  ;;  %v3472_v44 = vsub.f32 %v11466_v36, %v3426_v0 }
 0x61c   : > { %10129 = vpow2.f32 %v3490_v52  ;;  %v3488_v27 = vmul.f32 1.442695, %v3472_v44 }
 0x61e   : > { %10131 = vpow2.f32 %v3488_v27 }
 0x61f   : > { %v3441_v43 = vpop.xlane.xlu1 %3440 }
 0x620   : > { %v3477_v17 = vsub.f32 %v11474_v8, %v3441_v43 }
 0x621   : > { %v3438_v60 = vpop.xlane.xlu0 %3437 }
 0x622   : > { %v3498_v1 = vmul.f32 1.442695, %v3477_v17  ;;  %v3476_v9 = vsub.f32 %v11476_v12, %v3438_v60 }
 0x624   : > { %10133 = vpow2.f32 %v3498_v1  ;;  %v3496_v47 = vmul.f32 1.442695, %v3476_v9 }
 0x625   : > { %v3435_v5 = vpop.xlane.xlu0 %3434 }
 0x626   : > { %10135 = vpow2.f32 %v3496_v47  ;;  %v3475_v20 = vsub.f32 %v11480_v32, %v3435_v5 }
 0x628   : > { %v3494_v49 = vmul.f32 1.442695, %v3475_v20  ;;  %v3453_v54 = vpop.xlane.xlu1 %3452 }
 0x629   : > { %v11587_v3 = vpop.eup %10129  ;;  %v3481_v36 = vsub.f32 %v11488_v19, %v3453_v54  ;;  %v3432_v0 = vpop.xlane.xlu0 %3431 }
 0x62a   : > { %10137 = vpow2.f32 %v3494_v49  ;;  %v3474_v8 = vsub.f32 %v11484_v51, %v3432_v0  ;;  %v3523_v52 = vsel %vm1791_vm3, %v11587_v3, 0.0 }
 0x62b   : > { %v11593_v12 = vpop.eup %10131  ;;  %v3506_v44 = vmul.f32 1.442695, %v3481_v36  ;;  %3524 = vadd.xlane.f32.xlu1 %v3523_v52 }
 0x62c   : > { %v3492_v27 = vmul.f32 1.442695, %v3474_v8  ;;  %v3447_v43 = vpop.xlane.xlu1 %3446  ;;  %v3520_v32 = vsel %vm1791_vm3, %v11593_v12, 0.0 }
 0x62d   : > { %10139 = vpow2.f32 %v3506_v44  ;;  %v3479_v5 = vsub.f32 %v11494_v18, %v3447_v43  ;;  %3521 = vadd.xlane.f32.xlu0 %v3520_v32  ;;  %v3450_v19 = vpop.xlane.xlu0 %3449 }
 0x62e   : > { %10141 = vpow2.f32 %v3492_v27  ;;  %v3480_v51 = vsub.f32 %v11492_v14, %v3450_v19 }
 0x62f   : > { %v3502_v17 = vmul.f32 1.442695, %v3479_v5 }
 0x630   : > { %v3504_v60 = vmul.f32 1.442695, %v3480_v51  ;;  %v3465_v1 = vpop.xlane.xlu1 %3464 }
 0x631   : > { %v11599_v9 = vpop.eup %10133  ;;  %10143 = vpow2.f32 %v3502_v17  ;;  %v3485_v47 = vsub.f32 %v11504_v4, %v3465_v1  ;;  %v3444_v20 = vpop.xlane.xlu0 %3443 }
 0x632   : > { %10145 = vpow2.f32 %v3504_v60  ;;  %v3478_v49 = vsub.f32 %v11500_v42, %v3444_v20  ;;  %v3535_v18 = vsel %vm1791_vm3, %v11599_v9, 0.0 }
 0x633   : > { %v11605_v54 = vpop.eup %10135  ;;  %v3514_v36 = vmul.f32 1.442695, %v3485_v47  ;;  %3536 = vadd.xlane.f32.xlu1 %v3535_v18 }
 0x634   : > { %v3500_v14 = vmul.f32 1.442695, %v3478_v49  ;;  %v3459_v0 = vpop.xlane.xlu1 %3458  ;;  %v3532_v8 = vsel %vm1791_vm3, %v11605_v54, 0.0 }
 0x635   : > { %10147 = vpow2.f32 %v3514_v36  ;;  %v3483_v52 = vsub.f32 %v11510_v62, %v3459_v0  ;;  %3533 = vadd.xlane.f32.xlu0 %v3532_v8  ;;  %v3462_v4 = vpop.xlane.xlu0 %3461 }
 0x636   : > { %10149 = vpow2.f32 %v3500_v14  ;;  %v3484_v42 = vsub.f32 %v11508_v38, %v3462_v4 }
 0x637   : > { %v11611_v44 = vpop.eup %10137  ;;  %v3510_v27 = vmul.f32 1.442695, %v3483_v52 }
 0x638   : > { %v3512_v43 = vmul.f32 1.442695, %v3484_v42  ;;  %v3529_v32 = vsel %vm1791_vm3, %v11611_v44, 0.0 }
 0x639   : > { %10151 = vpow2.f32 %v3510_v27  ;;  %3530 = vadd.xlane.f32.xlu1 %v3529_v32  ;;  %v3456_v5 = vpop.xlane.xlu0 %3455 }
 0x63a   : > { %v11615_v19 = vpop.eup %10139  ;;  %10153 = vpow2.f32 %v3512_v43  ;;  %v3482_v62 = vsub.f32 %v11516_v46, %v3456_v5 }
 0x63b   : > { %v11618_v51 = vpop.eup %10141  ;;  %v3471_v17 = vpop.xlane.xlu1 %3470  ;;  %v3547_v1 = vsel %vm1791_vm3, %v11615_v19, 0.0 }
 0x63c   : > { %v3508_v60 = vmul.f32 1.442695, %v3482_v62  ;;  %v3487_v38 = vsub.f32 %v11520_v45, %v3471_v17  ;;  %v3526_v47 = vsel %vm1791_vm3, %v11618_v51, 0.0 }
 0x63d   : > { %3548 = vadd.xlane.f32.xlu1 %v3547_v1  ;;  %3527 = vadd.xlane.f32.xlu0 %v3526_v47  ;;  %v3468_v20 = vpop.xlane.xlu0 %3467  ;;  %v13259_v47 = vld [vmem:[#allocation10_spill] sm:$0xff] }
 0x63e   : > { %v11625_v49 = vpop.eup %10143  ;;  %10155 = vpow2.f32 %v3508_v60  ;;  %v3518_v18 = vmul.f32 1.442695, %v3487_v38  ;;  %v3486_v46 = vsub.f32 %v11524_v16, %v3468_v20  ;;  %v13260_v20 = vld [vmem:[#allocation7_spill] sm:$0xff] }
 0x63f   : > { %v11628_v36 = vpop.eup %10145  ;;  %v3541_v45 = vsel %vm1791_vm3, %v11625_v49, 0.0 }
 0x640   : > { %10157 = vpow2.f32 %v3518_v18  ;;  %v3516_v14 = vmul.f32 1.442695, %v3486_v46  ;;  %v3544_v0 = vsel %vm1791_vm3, %v11628_v36, 0.0  ;;  %v11712_v18 = vpop.permute.xlu1 %4654 }
 0x641   : > { %3542 = vadd.xlane.f32.xlu1 %v3541_v45  ;;  %3545 = vadd.xlane.f32.xlu0 %v3544_v0  ;;  %v11716_v46 = vpop.permute.xlu0 %4563 }
 0x642   : > { %v11634_v8 = vpop.eup %10147  ;;  %10159 = vpow2.f32 %v3516_v14 }
 0x643   : > { %v11636_v52 = vpop.eup %10149  ;;  %v3559_v16 = vsel %vm1791_vm3, %v11634_v8, 0.0 }
 0x644   : > { %v3538_v4 = vsel %vm1791_vm3, %v11636_v52, 0.0  ;;  %v11722_v14 = vpop.permute.xlu1 %4747 }
 0x645   : > { %3560 = vadd.xlane.f32.xlu1 %v3559_v16  ;;  %3539 = vadd.xlane.f32.xlu0 %v3538_v4  ;;  %v11726_v45 = vpop.permute.xlu0 %4559 }
 0x646   : > { %v11642_v42 = vpop.eup %10151 }
 0x647   : > { %v11644_v27 = vpop.eup %10153  ;;  %v3553_v43 = vsel %vm1791_vm3, %v11642_v42, 0.0 }
 0x648   : > { %v3556_v32 = vsel %vm1791_vm3, %v11644_v27, 0.0  ;;  %v11732_v0 = vpop.permute.xlu1 %4650 }
 0x649   : > { %3554 = vadd.xlane.f32.xlu1 %v3553_v43  ;;  %3557 = vadd.xlane.f32.xlu0 %v3556_v32  ;;  %v11736_v16 = vpop.permute.xlu0 %4561 }
 0x64b   : > { %v11650_v5 = vpop.eup %10155 }
 0x64c   : > { %v3550_v62 = vsel %vm1791_vm3, %v11650_v5, 0.0 }
 0x64d   : > { %v11654_v17 = vpop.eup %10157  ;;  %3551 = vadd.xlane.f32.xlu0 %v3550_v62 }
 0x64e   : > { %v3565_v60 = vsel %vm1791_vm3, %v11654_v17, 0.0 }
 0x64f   : > { %v11658_v38 = vpop.eup %10159  ;;  %3566 = vadd.xlane.f32.xlu1 %v3565_v60 }
 0x650   : > { %v3562_v1 = vsel %vm1791_vm3, %v11658_v38, 0.0 }
 0x651   : > { %3563 = vadd.xlane.f32.xlu0 %v3562_v1 }
 0x660   : > { %4652 = vrot.lane.b32.xlu1 %v10882_v23, %s10431_s18 }
 0x664   : > { %4836 = vrot.lane.b32.xlu1 %v10890_v25, %s10430_s22 }
 0x667   : > { %4838 = vrot.lane.b32.xlu0 %v10900_v28, %s10430_s22 }
 0x668   : > { %4929 = vrot.lane.b32.xlu1 %v10918_v34, %s10430_s22 }
 0x66b   : > { %4745 = vrot.lane.b32.xlu0 %v10892_v61, %s10430_s22 }
 0x66c   : > { %4832 = vrot.lane.b32.xlu1 %v10890_v25, %s10431_s18 }
 0x66f   : > { %4741 = vrot.lane.b32.xlu0 %v10892_v61, %s10431_s18 }
 0x670   : > { %4834 = vrot.lane.b32.xlu1 %v10900_v28, %s10431_s18 }
 0x673   : > { %4743 = vrot.lane.b32.xlu0 %v10902_v6, %s10431_s18 }
 0x674   : > { %5018 = vrot.lane.b32.xlu1 %v10908_v29, %s10430_s22 }
 0x677   : > { %5020 = vrot.lane.b32.xlu0 %v10916_v31, %s10430_s22 }
 0x678   : > { %4925 = vrot.lane.b32.xlu1 %v10918_v34, %s10431_s18 }
 0x67b   : > { %4927 = vrot.lane.b32.xlu0 %v10910_v30, %s10430_s22 }
 0x67c   : > { %5016 = vrot.lane.b32.xlu1 %v10916_v31, %s10431_s18 }
 0x67f   : > { %4923 = vrot.lane.b32.xlu0 %v10910_v30, %s10431_s18 }
 0x680   : > { %5386 = vrot.lane.b32.xlu1 %v10868_v48, %s10432_s23 }
 0x683   : > { %5014 = vrot.lane.b32.xlu0 %v10908_v29, %s10431_s18 }
 0x684   : > { %5297 = vrot.lane.b32.xlu1 %v10862_v63, %s10432_s23 }
 0x687   : > { %5299 = vrot.lane.b32.xlu0 %v13259_v47, %s10432_s23 }
 0x688   : > { %5384 = vrot.lane.b32.xlu1 %v13260_v20, %s10432_s23 }
 0x68b   : > { %5473 = vrot.lane.b32.xlu0 %v10884_v24, %s10432_s23 }
 0x68c   : > { %5560 = vrot.lane.b32.xlu1 %v10882_v23, %s10432_s23 }
 0x68f   : > { %5471 = vrot.lane.b32.xlu0 %v10878_v22, %s10432_s23 }
 0x690   : > { %5558 = vrot.lane.b32.xlu1 %v10876_v40, %s10432_s23 }
 0x693   : > { %5647 = vrot.lane.b32.xlu0 %v10902_v6, %s10432_s23 }
 0x694   : > { %5734 = vrot.lane.b32.xlu1 %v10900_v28, %s10432_s23 }
 0x697   : > { %5645 = vrot.lane.b32.xlu0 %v10892_v61, %s10432_s23 }
 0x698   : > { %5732 = vrot.lane.b32.xlu1 %v10890_v25, %s10432_s23 }
 0x69b   : > { %5821 = vrot.lane.b32.xlu0 %v10918_v34, %s10432_s23 }
 0x69c   : > { %5908 = vrot.lane.b32.xlu1 %v10916_v31, %s10432_s23 }
 0x69f   : > { %5819 = vrot.lane.b32.xlu0 %v10910_v30, %s10432_s23 }
 0x6a0   : > { %5906 = vrot.lane.b32.xlu1 %v10908_v29, %s10432_s23  ;;  %s13299_s23 = sld [smem:[#allocation29_spill]] (!%p9148_p6) }
 0x6a3   : > { %6080 = vrot.lane.b32.xlu0 %v13259_v47, %s10433_s30 }
 0x6a4   : > { %6171 = vrot.lane.b32.xlu1 %v10868_v48, %s10433_s30 }
 0x6a7   : > { %6078 = vrot.lane.b32.xlu0 %v10862_v63, %s10433_s30 }
 0x6a8   : > { %6169 = vrot.lane.b32.xlu1 %v13260_v20, %s10433_s30 }
 0x6ab   : > { %6074 = vrot.lane.b32.xlu0 %v10862_v63, %s10434_s14 }
 0x6ac   : > { %6076 = vrot.lane.b32.xlu1 %v13259_v47, %s10434_s14 }
 0x6af   : > { %6165 = vrot.lane.b32.xlu0 %v13260_v20, %s10434_s14 }
 0x6b0   : > { %6262 = vrot.lane.b32.xlu1 %v10884_v24, %s10433_s30 }
 0x6b3   : > { %6167 = vrot.lane.b32.xlu0 %v10868_v48, %s10434_s14 }
 0x6b4   : > { %v3525_v4 = vpop.xlane.xlu1 %3524  ;;  %6353 = vrot.lane.b32.xlu1 %v10882_v23, %s10433_s30 }
 0x6b5   : > { %10161 = vrcp.f32 %v3525_v4 }
 0x6b6   : > { %v3522_v43 = vpop.xlane.xlu0 %3521 }
 0x6b7   : > { %10163 = vrcp.f32 %v3522_v43 }
 0x6bc   : > { %v3537_v32 = vpop.xlane.xlu1 %3536 }
 0x6bd   : > { %10165 = vrcp.f32 %v3537_v32 }
 0x6be   : > { %v3534_v62 = vpop.xlane.xlu0 %3533 }
 0x6bf   : > { %10167 = vrcp.f32 %v3534_v62 }
 0x6c2   : > { %v3531_v60 = vpop.xlane.xlu1 %3530  ;;  %v10162_v1 = vpop.eup %10161 }
 0x6c3   : > { %v3585_v48 = vmul.f32 %v10162_v1, %v11587_v3  ;;  %10169 = vrcp.f32 %v3531_v60 }
 0x6c4   : > { %v10164_v20 = vpop.eup %10163 }
 0x6c5   : > { %v3584_v63 = vmul.f32 %v10164_v20, %v11593_v12 }
 0x6c6   : > { %v3549_v47 = vpop.xlane.xlu1 %3548  ;;  %v3528_v30 = vpop.xlane.xlu0 %3527 }
 0x6c7   : > { %9646 = vmatprep.mubr.msk.f32.mxu0 %vm1791_vm3, %v3584_v63  ;;  %10171 = vrcp.f32 %v3528_v30 }
 0x6c8   : > { %9647 = vmatmul.mubr.msk.f32.vlgmr.msra.gmra.mxu0 %vm1791_vm3, %v3585_v48  ;;  %10173 = vrcp.f32 %v3549_v47 }
 0x6c9   : > { %9657 = vmatpush3.msra.mxu0 %v11438_v50 }
 0x6ca   : > { %9658 = vmatprep.subr.mxu0 %v11544_v7  ;;  %v3543_v4 = vpop.xlane.xlu1 %3542  ;;  %v3546_v43 = vpop.xlane.xlu0 %3545 }
 0x6cb   : > { %v10166_v32 = vpop.eup %10165  ;;  %9659 = vmatpush3.msra.mxu0 %v11544_v7  ;;  %10175 = vrcp.f32 %v3546_v43 }
 0x6cc   : > { %v10168_v12 = vpop.eup %10167  ;;  %9670 = vmatprep.subr.mxu0 %v11548_v59  ;;  %v3589_v48 = vmul.f32 %v10166_v32, %v11599_v9  ;;  %10177 = vrcp.f32 %v3543_v4 }
 0x6cd   : > { %v3588_v3 = vmul.f32 %v10168_v12, %v11605_v54 }
 0x6ce   : > { %v3561_v63 = vpop.xlane.xlu1 %3560  ;;  %v3540_v30 = vpop.xlane.xlu0 %3539 }
 0x6cf   : > { %9660 = vmatprep.mubr.msk.f32.mxu0 %vm1791_vm3, %v3588_v3  ;;  %10179 = vrcp.f32 %v3540_v30 }
 0x6d0   : > { %9661 = vmatmul.mubr.msk.f32.vlgmr.msra.gmra.mxu0 %vm1791_vm3, %v3589_v48  ;;  %10181 = vrcp.f32 %v3561_v63  ;;  %v10170_v54 = vpop.eup %10169 }
 0x6d1   : > { %9671 = vmatpush3.msra.mxu0 %v11548_v59  ;;  %v3587_v62 = vmul.f32 %v10170_v54, %v11611_v44 }
 0x6d2   : > { %9672 = vmatprep.subr.mxu0 %v11552_v10  ;;  %v3558_v50 = vpop.xlane.xlu0 %3557  ;;  %v3555_v7 = vpop.xlane.xlu1 %3554 }
 0x6d3   : > { %9673 = vmatpush3.msra.mxu0 %v11552_v10  ;;  %10183 = vrcp.f32 %v3558_v50 }
 0x6d4   : > { %9684 = vmatprep.subr.mxu0 %v11556_v41  ;;  %v10172_v9 = vpop.eup %10171  ;;  %10185 = vrcp.f32 %v3555_v7 }
 0x6d5   : > { %v3586_v20 = vmul.f32 %v10172_v9, %v11618_v51  ;;  %v10174_v59 = vpop.eup %10173 }
 0x6d6   : > { %v3552_v47 = vpop.xlane.xlu0 %3551  ;;  %v3593_v51 = vmul.f32 %v10174_v59, %v11615_v19 }
 0x6d7   : > { %10187 = vrcp.f32 %v3552_v47  ;;  %9653 = vmatprep.mubr.msk.f32.mxu1 %vm1791_vm3, %v3586_v20 }
 0x6d8   : > { %v3567_v60 = vpop.xlane.xlu1 %3566  ;;  %v10176_v1 = vpop.eup %10175  ;;  %9654 = vmatmul.mubr.msk.f32.vlgmr.msra.gmra.mxu1 %vm1791_vm3, %v3587_v62 }
 0x6d9   : > { %10189 = vrcp.f32 %v3567_v60  ;;  %9664 = vmatpush3.msra.mxu1 %v11447_v58  ;;  %v3592_v4 = vmul.f32 %v10176_v1, %v11628_v36  ;;  %v10178_v43 = vpop.eup %10177 }
 0x6da   : > { %v3564_v10 = vpop.xlane.xlu0 %3563  ;;  %9665 = vmatprep.subr.mxu1 %v11542_v11  ;;  %v3591_v19 = vmul.f32 %v10178_v43, %v11625_v49 }
 0x6db   : > { %10191 = vrcp.f32 %v3564_v10  ;;  %9666 = vmatpush3.msra.mxu1 %v11542_v11  ;;  %9674 = vmatprep.mubr.msk.f32.mxu0 %vm1791_vm3, %v3592_v4 }
 0x6dc   : > { %v11768_v44 = vpop.permute.xlu1 %4652  ;;  %v10180_v32 = vpop.eup %10179  ;;  %9677 = vmatprep.subr.mxu1 %v11546_v21  ;;  %9675 = vmatmul.mubr.msk.f32.vlgmr.msra.gmra.mxu0 %vm1791_vm3, %v3593_v51 }
 0x6dd   : > { %9685 = vmatpush3.msra.mxu0 %v11556_v41  ;;  %v3590_v36 = vmul.f32 %v10180_v32, %v11636_v52  ;;  %v10182_v11 = vpop.eup %10181 }
 0x6de   : > { %v11773_v58 = vpop.permute.xlu0 %4838  ;;  %9686 = vmatprep.subr.mxu0 %v11560_v15 }
 0x6df   : > { %9687 = vmatpush3.msra.mxu0 %v11560_v15  ;;  %9667 = vmatprep.mubr.msk.f32.mxu1 %vm1791_vm3, %v3590_v36  ;;  %v3597_v15 = vmul.f32 %v10182_v11, %v11634_v8 }
 0x6e0   : > { %v11780_v12 = vpop.permute.xlu1 %4836  ;;  %v10184_v3 = vpop.eup %10183  ;;  %9698 = vmatprep.subr.msk.mxu0 %vm1068_vm2, %v11564_v35  ;;  %9668 = vmatmul.mubr.msk.f32.vlgmr.msra.gmra.mxu1 %vm1791_vm3, %v3591_v19 }
 0x6e1   : > { %9678 = vmatpush3.msra.mxu1 %v11546_v21  ;;  %v3596_v52 = vmul.f32 %v10184_v3, %v11644_v27  ;;  %v10186_v63 = vpop.eup %10185 }
 0x6e2   : > { %v4746_v41 = vpop.permute.xlu0 %4745  ;;  %9679 = vmatprep.subr.mxu1 %v11550_v39  ;;  %v3595_v8 = vmul.f32 %v10186_v63, %v11642_v42 }
 0x6e3   : > { %9680 = vmatpush3.msra.mxu1 %v11550_v39  ;;  %9688 = vmatprep.mubr.msk.f32.mxu0 %vm1791_vm3, %v3596_v52 }
 0x6e4   : > { %v10188_v49 = vpop.eup %10187  ;;  %v4930_v30 = vpop.permute.xlu1 %4929  ;;  %9691 = vmatprep.subr.mxu1 %v11554_v13  ;;  %9689 = vmatmul.mubr.msk.f32.vlgmr.msra.gmra.mxu0 %vm1791_vm3, %v3597_v15 }
 0x6e5   : > { %v3594_v21 = vmul.f32 %v10188_v49, %v11650_v5  ;;  %9699 = vmatpush3.xpose.msk.msra.mxu0 %vm1068_vm2, %v11564_v35  ;;  %9702 = vmatprep.mubr.msk.f32.mxu0 %vm1068_vm2, %v11572_v26  ;;  %v13262_v5 = vld [vmem:[#allocation12_spill] sm:$0xff] }
 0x6e6   : > { %v4742_v27 = vpop.permute.xlu0 %4741  ;;  %v10190_v48 = vpop.eup %10189  ;;  %9700 = vmatprep.subr.msk.mxu0 %vm1068_vm2, %v11568_v2 }
 0x6e7   : > { %9681 = vmatprep.mubr.msk.f32.mxu1 %vm1791_vm3, %v3594_v21  ;;  %v3599_v42 = vmul.f32 %v10190_v48, %v11654_v17 }
 0x6e8   : > { %v10192_v39 = vpop.eup %10191  ;;  %v4833_v50 = vpop.permute.xlu1 %4832  ;;  %9682 = vmatmul.mubr.msk.f32.vlgmr.msra.gmra.mxu1 %vm1791_vm3, %v3595_v8 }
 0x6e9   : > { %9692 = vmatpush3.msra.mxu1 %v11554_v13  ;;  %v3598_v35 = vmul.f32 %v10192_v39, %v11658_v38  ;;  %9701 = vmatpush3.xpose.msk.msra.mxu0 %vm1068_vm2, %v11568_v2 }
 0x6ea   : > { %9693 = vmatprep.subr.mxu1 %v11558_v33  ;;  %v4744_v26 = vpop.permute.xlu0 %4743  ;;  %9712 = vmatprep.subr.msk.mxu0 %vm1068_vm2, %v11570_v53 }
 0x6eb   : > { %9694 = vmatpush3.msra.mxu1 %v11558_v33  ;;  %9695 = vmatprep.mubr.msk.f32.mxu1 %vm1791_vm3, %v3598_v35 }
 0x6ec   : > { %9705 = vmatprep.subr.msk.mxu1 %vm1068_vm2, %v11562_v57  ;;  %v4835_v13 = vpop.permute.xlu1 %4834  ;;  %9703 = vmatmul.mubr.msk.f32.vlgmr.msra.gmra.mxu0 %vm1068_vm2, %v11576_v56 }
 0x6ed   : > { %9696 = vmatmul.mubr.msk.f32.vlgmr.msra.gmra.mxu1 %vm1791_vm3, %v3599_v42  ;;  %9713 = vmatpush3.xpose.msk.msra.mxu0 %vm1068_vm2, %v11570_v53  ;;  %v13261_v53 = vld [vmem:[#allocation13_spill] sm:$0xff] }
 0x6ee   : > { %9706 = vmatpush3.xpose.msk.msra.mxu1 %vm1068_vm2, %v11562_v57  ;;  %v5021_v33 = vpop.permute.xlu0 %5020  ;;  %9716 = vmatprep.mubr.msk.f32.mxu0 %vm1068_vm2, %v11726_v45 }
 0x6ef   : > { %9707 = vmatprep.subr.msk.mxu1 %vm1068_vm2, %v11566_v55  ;;  %9709 = vmatprep.mubr.msk.f32.mxu1 %vm1068_vm2, %v11574_v37 }
 0x6f0   : > { %9714 = vmatprep.subr.msk.mxu0 %vm1068_vm2, %v11716_v46  ;;  %v5019_v2 = vpop.permute.xlu1 %5018 }
 0x6f1   : > { %9715 = vmatpush3.xpose.msk.msra.mxu0 %vm1068_vm2, %v11716_v46 }
 0x6f2   : > { %9708 = vmatpush3.xpose.msk.msra.mxu1 %vm1068_vm2, %v11566_v55  ;;  %v4928_v57 = vpop.permute.xlu0 %4927  ;;  %9726 = vmatprep.subr.msk.mxu0 %vm1068_vm2, %v11722_v14 }
 0x6f3   : > { %9719 = vmatprep.subr.msk.mxu1 %vm1068_vm2, %v13261_v53 }
 0x6f4   : > { %v4926_v56 = vpop.permute.xlu1 %4925  ;;  %9717 = vmatmul.mubr.msk.f32.vlgmr.msra.gmra.mxu0 %vm1068_vm2, %v11736_v16 }
 0x6f5   : > { %9710 = vmatmul.mubr.msk.f32.vlgmr.msra.gmra.mxu1 %vm1068_vm2, %v13262_v5  ;;  %9727 = vmatpush3.xpose.msk.msra.mxu0 %vm1068_vm2, %v11722_v14 }
 0x6f6   : > { %9720 = vmatpush3.xpose.msk.msra.mxu1 %vm1068_vm2, %v13261_v53  ;;  %9723 = vmatprep.mubr.msk.f32.mxu1 %vm1068_vm2, %v11732_v0  ;;  %v4924_v55 = vpop.permute.xlu0 %4923 }
 0x6f7   : > { %9730 = vmatprep.mubr.msk.f32.mxu0 %vm1068_vm2, %v4742_v27  ;;  %9721 = vmatprep.subr.msk.mxu1 %vm1068_vm2, %v11712_v18 }
 0x6f8   : > { %9728 = vmatprep.subr.msk.mxu0 %vm1068_vm2, %v4746_v41  ;;  %v5017_v37 = vpop.permute.xlu1 %5016 }
 0x6f9   : > { %9729 = vmatpush3.xpose.msk.msra.mxu0 %vm1068_vm2, %v4746_v41 }
 0x6fa   : > { %9722 = vmatpush3.xpose.msk.msra.mxu1 %vm1068_vm2, %v11712_v18  ;;  %9740 = vmatprep.subr.msk.mxu0 %vm1068_vm2, %v4930_v30  ;;  %v5015_v17 = vpop.permute.xlu0 %5014 }
 0x6fb   : > { %9733 = vmatprep.subr.msk.mxu1 %vm1068_vm2, %v11773_v58 }
 0x6fc   : > { %9731 = vmatmul.mubr.msk.f32.vlgmr.msra.gmra.mxu0 %vm1068_vm2, %v4744_v26  ;;  %v5387_v38 = vpop.permute.xlu1 %5386 }
 0x6fd   : > { %9724 = vmatmul.mubr.msk.f32.vlgmr.msra.gmra.mxu1 %vm1068_vm2, %v11768_v44  ;;  %9741 = vmatpush3.xpose.msk.msra.mxu0 %vm1068_vm2, %v4930_v30 }
 0x6fe   : > { %9734 = vmatpush3.xpose.msk.msra.mxu1 %vm1068_vm2, %v11773_v58  ;;  %9737 = vmatprep.mubr.msk.f32.mxu1 %vm1068_vm2, %v4833_v50  ;;  %v5300_v18 = vpop.permute.xlu0 %5299 }
 0x6ff   : > { %9744 = vmatprep.mubr.msk.f32.mxu0 %vm1068_vm2, %v4924_v55  ;;  %9735 = vmatprep.subr.msk.mxu1 %vm1068_vm2, %v11780_v12 }
 0x700   : > { %9742 = vmatprep.subr.msk.mxu0 %vm1068_vm2, %v4928_v57  ;;  %v5298_v46 = vpop.permute.xlu1 %5297 }
 0x701   : > { %9743 = vmatpush3.xpose.msk.msra.mxu0 %vm1068_vm2, %v4928_v57 }
 0x702   : > { %9736 = vmatpush3.xpose.msk.msra.mxu1 %vm1068_vm2, %v11780_v12  ;;  %9754 = vmatprep.subr.mxu0 %v5300_v18  ;;  %v11878_v14 = vpop.permute.xlu0 %5473 }
 0x703   : > { %9747 = vmatprep.subr.msk.mxu1 %vm1068_vm2, %v5021_v33 }
 0x704   : > { %9745 = vmatmul.mubr.msk.f32.vlgmr.msra.gmra.mxu0 %vm1068_vm2, %v4926_v56  ;;  %v5385_v45 = vpop.permute.xlu1 %5384 }
 0x705   : > { %9738 = vmatmul.mubr.msk.f32.vlgmr.msra.gmra.mxu1 %vm1068_vm2, %v4835_v13  ;;  %9755 = vmatpush3.msra.mxu0 %v5300_v18 }
 0x706   : > { %9748 = vmatpush3.xpose.msk.msra.mxu1 %vm1068_vm2, %v5021_v33  ;;  %9751 = vmatprep.mubr.msk.f32.mxu1 %vm1068_vm2, %v5015_v17 }
 0x707   : > { %9749 = vmatprep.subr.msk.mxu1 %vm1068_vm2, %v5019_v2  ;;  %9756 = vmatprep.subr.mxu0 %v5298_v46 }
 0x708   : > { %9757 = vmatpush3.msra.mxu0 %v5298_v46  ;;  %v11883_v0 = vpop.permute.xlu1 %5560 }
 0x709   : > { %9768 = vmatprep.subr.mxu0 %v11878_v14 }
 0x70a   : > { %9750 = vmatpush3.xpose.msk.msra.mxu1 %vm1068_vm2, %v5019_v2 }
 0x70b   : > { %9761 = vmatprep.subr.mxu1 %v5387_v38 }
 0x70d   : > { %9752 = vmatmul.mubr.msk.f32.vlgmr.msra.gmra.mxu1 %vm1068_vm2, %v5017_v37 }
 0x70e   : > { %9762 = vmatpush3.msra.mxu1 %v5387_v38 }
 0x70f   : > { %9763 = vmatprep.subr.mxu1 %v5385_v45 }
 0x710   : > { %9764 = vmatpush3.msra.mxu1 %v5385_v45 }
 0x711   : > { %9775 = vmatprep.subr.mxu1 %v11883_v0 }
 0x788   : > { %v11886_v16 = vpop.f32.mrf.mxu0 }
 0x78a   : > { %v11888_v7 = vpop.f32.mrf.mxu0 }
 0x78b   : > { %13263 = vst [vmem:[#allocation14_spill] sm:$0xff] %v11888_v7 }
 0x790   : > { %v11890_v54 = vpop.f32.mrf.mxu0 }
 0x791   : > { %13264 = vst [vmem:[#allocation13_spill] sm:$0xff] %v11890_v54 }
 0x792   : > { %v11894_v47 = vpop.f32.mrf.mxu0 }
 0x793   : > { %13266 = vst [vmem:[#allocation15_spill] sm:$0xff] %v11894_v47 }
 0x798   : > { %v11892_v9 = vpop.f32.mrf.mxu1 }
 0x799   : > { %13265 = vst [vmem:[#allocation12_spill] sm:$0xff] %v11892_v9 }
 0x79a   : > { %v11896_v20 = vpop.f32.mrf.mxu1 }
 0x79b   : > { %13267 = vst [vmem:[#allocation16_spill] sm:$0xff] %v11896_v20 }
 0x79c   : > { %v11898_v62 = vpop.f32.mrf.mxu0 }
 0x79d   : > { %13268 = vst [vmem:[#allocation17_spill] sm:$0xff] %v11898_v62 }
 0x79e   : > { %v11902_v60 = vpop.f32.mrf.mxu0 }
 0x79f   : > { %13270 = vst [vmem:[#allocation19_spill] sm:$0xff] %v11902_v60 }
 0x7a0   : > { %v11900_v59 = vpop.f32.mrf.mxu1 }
 0x7a1   : > { %13269 = vst [vmem:[#allocation18_spill] sm:$0xff] %v11900_v59 }
 0x7a2   : > { %v11904_v1 = vpop.f32.mrf.mxu1 }
 0x7a3   : > { %13271 = vst [vmem:[#allocation20_spill] sm:$0xff] %v11904_v1 }
 0x7a4   : > { %v11906_v10 = vpop.f32.mrf.mxu0 }
 0x7a5   : > { %13272 = vst [vmem:[#allocation21_spill] sm:$0xff] %v11906_v10 }
 0x7a6   : > { %v11910_v51 = vpop.f32.mrf.mxu0 }
 0x7a7   : > { %13274 = vst [vmem:[#allocation23_spill] sm:$0xff] %v11910_v51 }
 0x7a8   : > { %v11908_v4 = vpop.f32.mrf.mxu1 }
 0x7a9   : > { %13273 = vst [vmem:[#allocation22_spill] sm:$0xff] %v11908_v4 }
 0x7aa   : > { %v11912_v43 = vpop.f32.mrf.mxu1 }
 0x7ab   : > { %13275 = vst [vmem:[#allocation24_spill] sm:$0xff] %v11912_v43 }
 0x7ac   : > { %v9704_v44 = vpop.f32.mrf.mxu0 }
 0x7ad   : > { %v11914_v32 = vmul.f32 0.5, %v9704_v44  ;;  %v11920_v11 = vpop.f32.mrf.mxu1 }
 0x7ae   : > { %v4459_v58 = vpop.f32.mrf.mxu0  ;;  %13276 = vst [vmem:[#allocation25_spill] sm:$0xff] %v11920_v11 }
 0x7af   : > { %v11916_v36 = vmul.f32 0.5, %v4459_v58  ;;  %v5124_v19 = vsel %vm1791_vm3, %v11914_v32, -inf  ;;  %v11924_v3 = vpop.f32.mrf.mxu1 }
 0x7b0   : > { %5125 = vmax.xlane.f32.xlu1 %v5124_v19  ;;  %13277 = vst [vmem:[#allocation26_spill] sm:$0xff] %v11924_v3 }
 0x7b1   : > { %v5121_v12 = vsel %vm1791_vm3, %v11916_v36, -inf }
 0x7b2   : > { %5122 = vmax.xlane.f32.xlu0 %v5121_v12 }
 0x7b4   : > { %v9718_v41 = vpop.f32.mrf.mxu0 }
 0x7b5   : > { %v11926_v52 = vmul.f32 0.5, %v9718_v41  ;;  %v9711_v63 = vpop.f32.mrf.mxu1 }
 0x7b6   : > { %v4641_v15 = vpop.f32.mrf.mxu0  ;;  %v11932_v21 = vmul.f32 0.5, %v9711_v63 }
 0x7b7   : > { %v11928_v49 = vmul.f32 0.5, %v4641_v15  ;;  %v5136_v30 = vsel %vm1791_vm3, %v11926_v52, -inf  ;;  %v4550_v8 = vpop.f32.mrf.mxu1 }
 0x7b8   : > { %5137 = vmax.xlane.f32.xlu1 %v5136_v30  ;;  %v11936_v48 = vmul.f32 0.5, %v4550_v8  ;;  %v5130_v35 = vsel %vm1791_vm3, %v11932_v21, -inf }
 0x7b9   : > { %v5133_v27 = vsel %vm1791_vm3, %v11928_v49, -inf }
 0x7ba   : > { %5134 = vmax.xlane.f32.xlu0 %v5133_v27  ;;  %v5127_v57 = vsel %vm1791_vm3, %v11936_v48, -inf }
 0x7bc   : > { %v9732_v50 = vpop.f32.mrf.mxu0 }
 0x7bd   : > { %v9725_v39 = vpop.f32.mrf.mxu1  ;;  %v11940_v26 = vmul.f32 0.5, %v9732_v50 }
 0x7be   : > { %5131 = vmax.xlane.f32.xlu0 %v5130_v35  ;;  %v4823_v42 = vpop.f32.mrf.mxu0  ;;  %v11942_v13 = vmul.f32 0.5, %v9725_v39 }
 0x7bf   : > { %v5148_v33 = vsel %vm1791_vm3, %v11940_v26, -inf  ;;  %v11946_v2 = vmul.f32 0.5, %v4823_v42  ;;  %v4732_v53 = vpop.f32.mrf.mxu1  ;;  %v11994_v42 = vpop.permute.xlu1 %5558 }
 0x7c0   : > { %5149 = vmax.xlane.f32.xlu1 %v5148_v33  ;;  %v5142_v56 = vsel %vm1791_vm3, %v11942_v13, -inf  ;;  %v11952_v5 = vmul.f32 0.5, %v4732_v53  ;;  %v11996_v33 = vpop.permute.xlu0 %5471 }
 0x7c1   : > { %v5145_v17 = vsel %vm1791_vm3, %v11946_v2, -inf }
 0x7c2   : > { %5128 = vmax.xlane.f32.xlu0 %v5127_v57  ;;  %v5139_v58 = vsel %vm1791_vm3, %v11952_v5, -inf }
 0x7c3   : > { %v11998_v57 = vpop.permute.xlu1 %5734 }
 0x7c4   : > { %5143 = vmax.xlane.f32.xlu1 %v5142_v56  ;;  %v9746_v37 = vpop.f32.mrf.mxu0  ;;  %v12000_v53 = vpop.permute.xlu0 %5647 }
 0x7c5   : > { %v9739_v55 = vpop.f32.mrf.mxu1  ;;  %v11956_v38 = vmul.f32 0.5, %v9746_v37 }
 0x7c6   : > { %5146 = vmax.xlane.f32.xlu0 %v5145_v17  ;;  %v5005_v18 = vpop.f32.mrf.mxu0  ;;  %v11958_v46 = vmul.f32 0.5, %v9739_v55 }
 0x7c7   : > { %v5160_v45 = vsel %vm1791_vm3, %v11956_v38, -inf  ;;  %v11962_v44 = vmul.f32 0.5, %v5005_v18  ;;  %v4914_v19 = vpop.f32.mrf.mxu1  ;;  %v12002_v56 = vpop.permute.xlu1 %5732 }
 0x7c8   : > { %5161 = vmax.xlane.f32.xlu1 %v5160_v45  ;;  %v5154_v12 = vsel %vm1791_vm3, %v11958_v46, -inf  ;;  %v11968_v63 = vmul.f32 0.5, %v4914_v19  ;;  %v12004_v55 = vpop.permute.xlu0 %5645 }
 0x7c9   : > { %v5157_v30 = vsel %vm1791_vm3, %v11962_v44, -inf }
 0x7ca   : > { %5140 = vmax.xlane.f32.xlu0 %v5139_v58  ;;  %v5151_v50 = vsel %vm1791_vm3, %v11968_v63, -inf }
 0x7cb   : > { %v12006_v37 = vpop.permute.xlu1 %5908 }
 0x7cc   : > { %5155 = vmax.xlane.f32.xlu1 %v5154_v12  ;;  %v12008_v17 = vpop.permute.xlu0 %5821 }
 0x7cd   : > { %v9753_v41 = vpop.f32.mrf.mxu1 }
 0x7ce   : > { %v11970_v15 = vmul.f32 0.5, %v9753_v41  ;;  %5158 = vmax.xlane.f32.xlu0 %v5157_v30 }
 0x7cf   : > { %v5096_v27 = vpop.f32.mrf.mxu1  ;;  %v12010_v18 = vpop.permute.xlu1 %5906 }
 0x7d0   : > { %v5166_v8 = vsel %vm1791_vm3, %v11970_v15, -inf  ;;  %v11976_v39 = vmul.f32 0.5, %v5096_v27  ;;  %v12012_v45 = vpop.permute.xlu0 %5819 }
 0x7d1   : > { %5167 = vmax.xlane.f32.xlu1 %v5166_v8 }
 0x7d2   : > { %5152 = vmax.xlane.f32.xlu0 %v5151_v50  ;;  %v5163_v35 = vsel %vm1791_vm3, %v11976_v39, -inf }
 0x7d3   : > { %v12014_v58 = vpop.permute.xlu1 %6171 }
 0x7d4   : > { %v12016_v19 = vpop.permute.xlu0 %6080 }
 0x7d6   : > { %5164 = vmax.xlane.f32.xlu0 %v5163_v35 }
 0x7d7   : > { %v12018_v12 = vpop.permute.xlu1 %6169 }
 0x7d8   : > { %v12020_v41 = vpop.permute.xlu0 %6078 }
 0x7db   : > { %v12022_v30 = vpop.permute.xlu1 %6076 }
 0x7dc   : > { %v12024_v27 = vpop.permute.xlu0 %6074 }
 0x7df   : > { %v12026_v8 = vpop.permute.xlu1 %6262 }
 0x7e0   : > { %v12028_v50 = vpop.permute.xlu0 %6165 }
 0x7e2   : > { %6351 = vrot.lane.b32.xlu1 %v10876_v40, %s10433_s30 }
 0x7e3   : > { %v12030_v35 = vpop.permute.xlu1 %6353 }
 0x7e4   : > { %v12032_v3 = vpop.permute.xlu0 %6167 }
 0x7e6   : > { %6258 = vrot.lane.b32.xlu1 %v10884_v24, %s10434_s14 }
 0x7ea   : > { %6444 = vrot.lane.b32.xlu1 %v10902_v6, %s10433_s30 }
 0x7ec   : > { %6260 = vrot.lane.b32.xlu0 %v10878_v22, %s10433_s30 }
 0x7f0   : > { %6256 = vrot.lane.b32.xlu0 %v10878_v22, %s10434_s14 }
 0x7f4   : > { %6347 = vrot.lane.b32.xlu0 %v10876_v40, %s10434_s14 }
 0x839   : > { %v5126_v51 = vpop.xlane.xlu1 %5125 }
 0x83a   : > { %v5170_v43 = vsub.f32 %v11914_v32, %v5126_v51 }
 0x83b   : > { %v5123_v60 = vpop.xlane.xlu0 %5122 }
 0x83c   : > { %v5187_v1 = vmul.f32 1.442695, %v5170_v43  ;;  %v5169_v47 = vsub.f32 %v11916_v36, %v5123_v60 }
 0x83e   : > { %10193 = vpow2.f32 %v5187_v1  ;;  %v5185_v20 = vmul.f32 1.442695, %v5169_v47 }
 0x840   : > { %10195 = vpow2.f32 %v5185_v20 }
 0x841   : > { %v5138_v7 = vpop.xlane.xlu1 %5137 }
 0x842   : > { %v5174_v11 = vsub.f32 %v11926_v52, %v5138_v7 }
 0x843   : > { %v5135_v10 = vpop.xlane.xlu0 %5134 }
 0x844   : > { %v5195_v4 = vmul.f32 1.442695, %v5174_v11  ;;  %v5173_v62 = vsub.f32 %v11928_v49, %v5135_v10 }
 0x846   : > { %10197 = vpow2.f32 %v5195_v4  ;;  %v5193_v59 = vmul.f32 1.442695, %v5173_v62 }
 0x847   : > { %v5132_v54 = vpop.xlane.xlu0 %5131 }
 0x848   : > { %10199 = vpow2.f32 %v5193_v59  ;;  %v5172_v51 = vsub.f32 %v11932_v21, %v5132_v54 }
 0x849   : > { %v5150_v43 = vpop.xlane.xlu1 %5149 }
 0x84a   : > { %v5191_v32 = vmul.f32 1.442695, %v5172_v51  ;;  %v5178_v47 = vsub.f32 %v11940_v26, %v5150_v43 }
 0x84b   : > { %v12039_v9 = vpop.eup %10193  ;;  %v5129_v20 = vpop.xlane.xlu0 %5128 }
 0x84c   : > { %10201 = vpow2.f32 %v5191_v32  ;;  %v5171_v7 = vsub.f32 %v11936_v48, %v5129_v20  ;;  %v5220_v60 = vsel %vm1791_vm3, %v12039_v9, 0.0  ;;  %v5203_v62 = vmul.f32 1.442695, %v5178_v47 }
 0x84d   : > { %v12045_v1 = vpop.eup %10195  ;;  %5221 = vadd.xlane.f32.xlu1 %v5220_v60  ;;  %v5144_v10 = vpop.xlane.xlu1 %5143 }
 0x84e   : > { %v5189_v59 = vmul.f32 1.442695, %v5171_v7  ;;  %v5217_v54 = vsel %vm1791_vm3, %v12045_v1, 0.0  ;;  %10203 = vpow2.f32 %v5203_v62  ;;  %v5176_v4 = vsub.f32 %v11942_v13, %v5144_v10 }
 0x84f   : > { %5218 = vadd.xlane.f32.xlu0 %v5217_v54  ;;  %v5147_v36 = vpop.xlane.xlu0 %5146 }
 0x850   : > { %10205 = vpow2.f32 %v5189_v59  ;;  %v5177_v11 = vsub.f32 %v11946_v2, %v5147_v36  ;;  %v5199_v52 = vmul.f32 1.442695, %v5176_v4 }
 0x851   : > { %v5162_v21 = vpop.xlane.xlu1 %5161 }
 0x852   : > { %v5201_v49 = vmul.f32 1.442695, %v5177_v11  ;;  %10207 = vpow2.f32 %v5199_v52  ;;  %v5182_v26 = vsub.f32 %v11956_v38, %v5162_v21 }
 0x853   : > { %v12051_v48 = vpop.eup %10197  ;;  %v5141_v51 = vpop.xlane.xlu0 %5140 }
 0x854   : > { %10209 = vpow2.f32 %v5201_v49  ;;  %v5175_v32 = vsub.f32 %v11952_v5, %v5141_v51  ;;  %v5232_v13 = vsel %vm1791_vm3, %v12051_v48, 0.0  ;;  %v5211_v47 = vmul.f32 1.442695, %v5182_v26 }
 0x855   : > { %v12057_v43 = vpop.eup %10199  ;;  %5233 = vadd.xlane.f32.xlu1 %v5232_v13  ;;  %v5156_v20 = vpop.xlane.xlu1 %5155 }
 0x856   : > { %v5197_v2 = vmul.f32 1.442695, %v5175_v32  ;;  %v5229_v7 = vsel %vm1791_vm3, %v12057_v43, 0.0  ;;  %10211 = vpow2.f32 %v5211_v47  ;;  %v5180_v60 = vsub.f32 %v11958_v46, %v5156_v20 }
 0x857   : > { %5230 = vadd.xlane.f32.xlu0 %v5229_v7  ;;  %v5159_v38 = vpop.xlane.xlu0 %5158 }
 0x858   : > { %10213 = vpow2.f32 %v5197_v2  ;;  %v5181_v5 = vsub.f32 %v11962_v44, %v5159_v38  ;;  %v5207_v59 = vmul.f32 1.442695, %v5180_v60 }
 0x859   : > { %v12063_v62 = vpop.eup %10201 }
 0x85a   : > { %v5209_v10 = vmul.f32 1.442695, %v5181_v5  ;;  %v5168_v54 = vpop.xlane.xlu1 %5167  ;;  %v5226_v4 = vsel %vm1791_vm3, %v12063_v62, 0.0  ;;  %10215 = vpow2.f32 %v5207_v59 }
 0x85b   : > { %v5184_v36 = vsub.f32 %v11970_v15, %v5168_v54  ;;  %5227 = vadd.xlane.f32.xlu1 %v5226_v4  ;;  %v5153_v11 = vpop.xlane.xlu0 %5152  ;;  %v12068_v52 = vpop.eup %10203 }
 0x85c   : > { %10217 = vpow2.f32 %v5209_v10  ;;  %v5179_v46 = vsub.f32 %v11968_v63, %v5153_v11  ;;  %v5244_v26 = vsel %vm1791_vm3, %v12068_v52, 0.0 }
 0x85d   : > { %v12071_v49 = vpop.eup %10205  ;;  %v5215_v44 = vmul.f32 1.442695, %v5184_v36 }
 0x85e   : > { %v5205_v21 = vmul.f32 1.442695, %v5179_v46  ;;  %v5223_v51 = vsel %vm1791_vm3, %v12071_v49, 0.0 }
 0x85f   : > { %10219 = vpow2.f32 %v5215_v44  ;;  %5245 = vadd.xlane.f32.xlu1 %v5244_v26  ;;  %5224 = vadd.xlane.f32.xlu0 %v5223_v51  ;;  %v5165_v15 = vpop.xlane.xlu0 %5164  ;;  %v12077_v32 = vpop.eup %10207  ;;  %v13278_v26 = vld [vmem:[#allocation11_spill] sm:$0xff]  ;;  %v13279_v51 = vld [vmem:[#allocation10_spill] sm:$0xff] }
 0x860   : > { %10221 = vpow2.f32 %v5205_v21  ;;  %v5183_v13 = vsub.f32 %v11976_v39, %v5165_v15  ;;  %v5238_v2 = vsel %vm1791_vm3, %v12077_v32, 0.0  ;;  %v13280_v15 = vld [vmem:[#allocation8_spill] sm:$0xff] }
 0x861   : > { %v12080_v63 = vpop.eup %10209 }
 0x862   : > { %v5213_v47 = vmul.f32 1.442695, %v5183_v13  ;;  %v5241_v20 = vsel %vm1791_vm3, %v12080_v63, 0.0  ;;  %v13281_v13 = vld [vmem:[#allocation7_spill] sm:$0xff] }
 0x863   : > { %5239 = vadd.xlane.f32.xlu1 %v5238_v2  ;;  %5242 = vadd.xlane.f32.xlu0 %v5241_v20  ;;  %v12086_v7 = vpop.eup %10211  ;;  %v12164_v2 = vpop.permute.xlu1 %6351 }
 0x864   : > { %10223 = vpow2.f32 %v5213_v47  ;;  %v5256_v38 = vsel %vm1791_vm3, %v12086_v7, 0.0  ;;  %v13282_v47 = vld [vmem:[#allocation9_spill] sm:$0xff]  ;;  %v12166_v20 = vpop.permute.xlu0 %6260 }
 0x865   : > { %v12088_v60 = vpop.eup %10213 }
 0x866   : > { %v5235_v39 = vsel %vm1791_vm3, %v12088_v60, 0.0 }
 0x867   : > { %5257 = vadd.xlane.f32.xlu1 %v5256_v38  ;;  %5236 = vadd.xlane.f32.xlu0 %v5235_v39  ;;  %v12094_v5 = vpop.eup %10215  ;;  %v12168_v38 = vpop.permute.xlu1 %6258 }
 0x868   : > { %v5250_v10 = vsel %vm1791_vm3, %v12094_v5, 0.0  ;;  %v12170_v39 = vpop.permute.xlu0 %6256 }
 0x869   : > { %v12096_v59 = vpop.eup %10217 }
 0x86a   : > { %v5253_v54 = vsel %vm1791_vm3, %v12096_v59, 0.0 }
 0x86b   : > { %5251 = vadd.xlane.f32.xlu1 %v5250_v10  ;;  %5254 = vadd.xlane.f32.xlu0 %v5253_v54 }
 0x86c   : > { %v12102_v4 = vpop.eup %10219 }
 0x86d   : > { %v12104_v36 = vpop.eup %10221  ;;  %v5262_v11 = vsel %vm1791_vm3, %v12102_v4, 0.0 }
 0x86e   : > { %v5247_v46 = vsel %vm1791_vm3, %v12104_v36, 0.0 }
 0x86f   : > { %5263 = vadd.xlane.f32.xlu1 %v5262_v11  ;;  %5248 = vadd.xlane.f32.xlu0 %v5247_v46 }
 0x871   : > { %v12110_v44 = vpop.eup %10223 }
 0x872   : > { %v5259_v21 = vsel %vm1791_vm3, %v12110_v44, 0.0 }
 0x873   : > { %5260 = vadd.xlane.f32.xlu0 %v5259_v21 }
 0x880   : > { %6535 = vrot.lane.b32.xlu1 %v10900_v28, %s10433_s30 }
 0x884   : > { %6533 = vrot.lane.b32.xlu1 %v10890_v25, %s10433_s30 }
 0x888   : > { %6440 = vrot.lane.b32.xlu1 %v10902_v6, %s10434_s14 }
 0x889   : > { %6349 = vrot.lane.b32.xlu0 %v10882_v23, %s10434_s14 }
 0x88c   : > { %6626 = vrot.lane.b32.xlu1 %v10918_v34, %s10433_s30 }
 0x88d   : > { %6442 = vrot.lane.b32.xlu0 %v10892_v61, %s10433_s30 }
 0x890   : > { %6717 = vrot.lane.b32.xlu1 %v10916_v31, %s10433_s30 }
 0x891   : > { %6438 = vrot.lane.b32.xlu0 %v10892_v61, %s10434_s14 }
 0x894   : > { %6715 = vrot.lane.b32.xlu1 %v10908_v29, %s10433_s30 }
 0x895   : > { %6529 = vrot.lane.b32.xlu0 %v10890_v25, %s10434_s14 }
 0x898   : > { %6622 = vrot.lane.b32.xlu1 %v10918_v34, %s10434_s14 }
 0x899   : > { %6531 = vrot.lane.b32.xlu0 %v10900_v28, %s10434_s14 }
 0x89c   : > { %6713 = vrot.lane.b32.xlu1 %v10916_v31, %s10434_s14 }
 0x89d   : > { %6624 = vrot.lane.b32.xlu0 %v13278_v26, %s10433_s30  ;;  %s13300_s30 = smov (!%p9148_p6), %s13299_s23 }
 0x8a0   : > { %6996 = vrot.lane.b32.xlu1 %v13279_v51, %s10435_s16 }
 0x8a1   : > { %6620 = vrot.lane.b32.xlu0 %v13278_v26, %s10434_s14 }
 0x8a4   : > { %6994 = vrot.lane.b32.xlu1 %v13280_v15, %s10435_s16 }
 0x8a5   : > { %6711 = vrot.lane.b32.xlu0 %v10908_v29, %s10434_s14 }
 0x8a8   : > { %7081 = vrot.lane.b32.xlu1 %v13281_v13, %s10435_s16 }
 0x8a9   : > { %7083 = vrot.lane.b32.xlu0 %v13282_v47, %s10435_s16 }
 0x8ac   : > { %7170 = vrot.lane.b32.xlu1 %v10884_v24, %s10435_s16  ;;  %v12172_v24 = vpop.permute.xlu1 %6444 }
 0x8ad   : > { %7168 = vrot.lane.b32.xlu0 %v10878_v22, %s10435_s16  ;;  %v12174_v22 = vpop.permute.xlu0 %6347 }
 0x8b0   : > { %7257 = vrot.lane.b32.xlu1 %v10882_v23, %s10435_s16 }
 0x8b1   : > { %7344 = vrot.lane.b32.xlu0 %v10902_v6, %s10435_s16 }
 0x8b4   : > { %7255 = vrot.lane.b32.xlu1 %v10876_v40, %s10435_s16 }
 0x8d6   : > { %v5222_v10 = vpop.xlane.xlu1 %5221 }
 0x8d7   : > { %10225 = vrcp.f32 %v5222_v10 }
 0x8d8   : > { %v5219_v23 = vpop.xlane.xlu0 %5218 }
 0x8d9   : > { %10227 = vrcp.f32 %v5219_v23 }
 0x8de   : > { %v5234_v6 = vpop.xlane.xlu1 %5233 }
 0x8df   : > { %10229 = vrcp.f32 %v5234_v6 }
 0x8e0   : > { %v5231_v54 = vpop.xlane.xlu0 %5230 }
 0x8e1   : > { %10231 = vrcp.f32 %v5231_v54 }
 0x8e4   : > { %v5228_v40 = vpop.xlane.xlu1 %5227  ;;  %v10226_v11 = vpop.eup %10225 }
 0x8e5   : > { %v5282_v13 = vmul.f32 %v10226_v11, %v12039_v9  ;;  %10233 = vrcp.f32 %v5228_v40 }
 0x8e6   : > { %v10228_v46 = vpop.eup %10227 }
 0x8e7   : > { %v5281_v21 = vmul.f32 %v10228_v46, %v12045_v1 }
 0x8e8   : > { %v5246_v51 = vpop.xlane.xlu1 %5245  ;;  %v5225_v15 = vpop.xlane.xlu0 %5224 }
 0x8e9   : > { %9758 = vmatprep.mubr.msk.f32.mxu0 %vm1791_vm3, %v5281_v21  ;;  %10235 = vrcp.f32 %v5225_v15 }
 0x8ea   : > { %9759 = vmatmul.mubr.msk.f32.vlgmr.msra.gmra.mxu0 %vm1791_vm3, %v5282_v13  ;;  %10237 = vrcp.f32 %v5246_v51 }
 0x8eb   : > { %9769 = vmatpush3.msra.mxu0 %v11878_v14 }
 0x8ec   : > { %9770 = vmatprep.subr.mxu0 %v11996_v33  ;;  %v5240_v47 = vpop.xlane.xlu1 %5239  ;;  %v5243_v10 = vpop.xlane.xlu0 %5242 }
 0x8ed   : > { %v10230_v23 = vpop.eup %10229  ;;  %9771 = vmatpush3.msra.mxu0 %v11996_v33  ;;  %10239 = vrcp.f32 %v5243_v10 }
 0x8ee   : > { %v10232_v1 = vpop.eup %10231  ;;  %9782 = vmatprep.subr.mxu0 %v12000_v53  ;;  %v5286_v40 = vmul.f32 %v10230_v23, %v12051_v48  ;;  %10241 = vrcp.f32 %v5240_v47 }
 0x8ef   : > { %v5285_v9 = vmul.f32 %v10232_v1, %v12057_v43 }
 0x8f0   : > { %v5258_v6 = vpop.xlane.xlu1 %5257  ;;  %v5237_v54 = vpop.xlane.xlu0 %5236 }
 0x8f1   : > { %9772 = vmatprep.mubr.msk.f32.mxu0 %vm1791_vm3, %v5285_v9  ;;  %10243 = vrcp.f32 %v5237_v54 }
 0x8f2   : > { %9773 = vmatmul.mubr.msk.f32.vlgmr.msra.gmra.mxu0 %vm1791_vm3, %v5286_v40  ;;  %10245 = vrcp.f32 %v5258_v6  ;;  %v10234_v43 = vpop.eup %10233 }
 0x8f3   : > { %9783 = vmatpush3.msra.mxu0 %v12000_v53  ;;  %v5284_v51 = vmul.f32 %v10234_v43, %v12063_v62 }
 0x8f4   : > { %9784 = vmatprep.subr.mxu0 %v12004_v55  ;;  %v5252_v14 = vpop.xlane.xlu1 %5251  ;;  %v5255_v33 = vpop.xlane.xlu0 %5254 }
 0x8f5   : > { %9785 = vmatpush3.msra.mxu0 %v12004_v55  ;;  %10247 = vrcp.f32 %v5255_v33 }
 0x8f6   : > { %9796 = vmatprep.subr.mxu0 %v12008_v17  ;;  %v10236_v48 = vpop.eup %10235  ;;  %10249 = vrcp.f32 %v5252_v14 }
 0x8f7   : > { %v5283_v21 = vmul.f32 %v10236_v48, %v12071_v49  ;;  %v10238_v53 = vpop.eup %10237 }
 0x8f8   : > { %v5264_v11 = vpop.xlane.xlu1 %5263  ;;  %v5249_v46 = vpop.xlane.xlu0 %5248  ;;  %v5290_v49 = vmul.f32 %v10238_v53, %v12068_v52 }
 0x8f9   : > { %10251 = vrcp.f32 %v5249_v46  ;;  %9765 = vmatprep.mubr.msk.f32.mxu1 %vm1791_vm3, %v5283_v21 }
 0x8fa   : > { %v10240_v15 = vpop.eup %10239  ;;  %9766 = vmatmul.mubr.msk.f32.vlgmr.msra.gmra.mxu1 %vm1791_vm3, %v5284_v51 }
 0x8fb   : > { %9776 = vmatpush3.msra.mxu1 %v11883_v0  ;;  %v5289_v47 = vmul.f32 %v10240_v15, %v12080_v63  ;;  %v10242_v62 = vpop.eup %10241 }
 0x8fc   : > { %v12197_v55 = vpop.permute.xlu1 %6535  ;;  %v5261_v13 = vpop.xlane.xlu0 %5260  ;;  %9777 = vmatprep.subr.mxu1 %v11994_v42  ;;  %v5288_v52 = vmul.f32 %v10242_v62, %v12077_v32 }
 0x8fd   : > { %10253 = vrcp.f32 %v5261_v13  ;;  %9778 = vmatpush3.msra.mxu1 %v11994_v42  ;;  %9786 = vmatprep.mubr.msk.f32.mxu0 %vm1791_vm3, %v5289_v47 }
 0x8fe   : > { %10255 = vrcp.f32 %v5264_v11  ;;  %v10244_v10 = vpop.eup %10243  ;;  %9789 = vmatprep.subr.mxu1 %v11998_v57  ;;  %9787 = vmatmul.mubr.msk.f32.vlgmr.msra.gmra.mxu0 %vm1791_vm3, %v5290_v49 }
 0x8ff   : > { %9797 = vmatpush3.msra.mxu0 %v12008_v17  ;;  %v5287_v23 = vmul.f32 %v10244_v10, %v12088_v60  ;;  %v10246_v42 = vpop.eup %10245 }
 0x900   : > { %v12207_v0 = vpop.permute.xlu1 %6533  ;;  %v12209_v63 = vpop.permute.xlu0 %6349  ;;  %9798 = vmatprep.subr.mxu0 %v12012_v45  ;;  %v5294_v32 = vmul.f32 %v10246_v42, %v12086_v7 }
 0x901   : > { %9799 = vmatpush3.msra.mxu0 %v12012_v45  ;;  %9779 = vmatprep.mubr.msk.f32.mxu1 %vm1791_vm3, %v5287_v23 }
 0x902   : > { %v10248_v1 = vpop.eup %10247  ;;  %9810 = vmatprep.subr.msk.mxu0 %vm1068_vm2, %v12016_v19  ;;  %9780 = vmatmul.mubr.msk.f32.vlgmr.msra.gmra.mxu1 %vm1791_vm3, %v5288_v52 }
 0x903   : > { %9790 = vmatpush3.msra.mxu1 %v11998_v57  ;;  %v5293_v9 = vmul.f32 %v10248_v1, %v12096_v59  ;;  %v10250_v45 = vpop.eup %10249 }
 0x904   : > { %v12220_v17 = vpop.permute.xlu1 %6440  ;;  %v6443_v60 = vpop.permute.xlu0 %6442  ;;  %9791 = vmatprep.subr.mxu1 %v12002_v56  ;;  %v5292_v7 = vmul.f32 %v10250_v45, %v12094_v5 }
 0x905   : > { %9792 = vmatpush3.msra.mxu1 %v12002_v56  ;;  %9800 = vmatprep.mubr.msk.f32.mxu0 %vm1791_vm3, %v5293_v9 }
 0x906   : > { %v10252_v6 = vpop.eup %10251  ;;  %9803 = vmatprep.subr.mxu1 %v12006_v37  ;;  %9801 = vmatmul.mubr.msk.f32.vlgmr.msra.gmra.mxu0 %vm1791_vm3, %v5294_v32 }
 0x907   : > { %9811 = vmatpush3.xpose.msk.msra.mxu0 %vm1068_vm2, %v12016_v19  ;;  %9814 = vmatprep.mubr.msk.f32.mxu0 %vm1068_vm2, %v12024_v27  ;;  %v5291_v59 = vmul.f32 %v10252_v6, %v12104_v36 }
 0x908   : > { %v6627_v57 = vpop.permute.xlu1 %6626  ;;  %9812 = vmatprep.subr.msk.mxu0 %vm1068_vm2, %v12020_v41  ;;  %v6439_v56 = vpop.permute.xlu0 %6438 }
 0x909   : > { %9793 = vmatprep.mubr.msk.f32.mxu1 %vm1791_vm3, %v5291_v59 }
 0x90a   : > { %v10254_v54 = vpop.eup %10253  ;;  %9794 = vmatmul.mubr.msk.f32.vlgmr.msra.gmra.mxu1 %vm1791_vm3, %v5292_v7 }
 0x90b   : > { %v10256_v40 = vpop.eup %10255  ;;  %v5295_v19 = vmul.f32 %v10254_v54, %v12110_v44  ;;  %9804 = vmatpush3.msra.mxu1 %v12006_v37  ;;  %9813 = vmatpush3.xpose.msk.msra.mxu0 %vm1068_vm2, %v12020_v41 }
 0x90c   : > { %v6718_v27 = vpop.permute.xlu1 %6717  ;;  %9805 = vmatprep.subr.mxu1 %v12010_v18  ;;  %9824 = vmatprep.subr.msk.mxu0 %vm1068_vm2, %v12026_v8  ;;  %v5296_v5 = vmul.f32 %v10256_v40, %v12102_v4  ;;  %v6530_v36 = vpop.permute.xlu0 %6529 }
 0x90d   : > { %9806 = vmatpush3.msra.mxu1 %v12010_v18  ;;  %9807 = vmatprep.mubr.msk.f32.mxu1 %vm1791_vm3, %v5295_v19 }
 0x90e   : > { %9815 = vmatmul.mubr.msk.f32.vlgmr.msra.gmra.mxu0 %vm1068_vm2, %v12022_v30  ;;  %9817 = vmatprep.subr.msk.mxu1 %vm1068_vm2, %v12014_v58 }
 0x90f   : > { %9808 = vmatmul.mubr.msk.f32.vlgmr.msra.gmra.mxu1 %vm1791_vm3, %v5296_v5  ;;  %9825 = vmatpush3.xpose.msk.msra.mxu0 %vm1068_vm2, %v12026_v8 }
 0x910   : > { %v6716_v37 = vpop.permute.xlu1 %6715  ;;  %9818 = vmatpush3.xpose.msk.msra.mxu1 %vm1068_vm2, %v12014_v58  ;;  %9828 = vmatprep.mubr.msk.f32.mxu0 %vm1068_vm2, %v12170_v39  ;;  %v6532_v41 = vpop.permute.xlu0 %6531 }
 0x911   : > { %9819 = vmatprep.subr.msk.mxu1 %vm1068_vm2, %v12018_v12  ;;  %9821 = vmatprep.mubr.msk.f32.mxu1 %vm1068_vm2, %v12028_v50 }
 0x912   : > { %9826 = vmatprep.subr.msk.mxu0 %vm1068_vm2, %v12166_v20 }
 0x913   : > { %9827 = vmatpush3.xpose.msk.msra.mxu0 %vm1068_vm2, %v12166_v20 }
 0x914   : > { %v6623_v18 = vpop.permute.xlu1 %6622  ;;  %9820 = vmatpush3.xpose.msk.msra.mxu1 %vm1068_vm2, %v12018_v12  ;;  %9838 = vmatprep.subr.msk.mxu0 %vm1068_vm2, %v12172_v24  ;;  %v6625_v12 = vpop.permute.xlu0 %6624 }
 0x915   : > { %9831 = vmatprep.subr.msk.mxu1 %vm1068_vm2, %v12030_v35 }
 0x916   : > { %9829 = vmatmul.mubr.msk.f32.vlgmr.msra.gmra.mxu0 %vm1068_vm2, %v12168_v38 }
 0x917   : > { %9822 = vmatmul.mubr.msk.f32.vlgmr.msra.gmra.mxu1 %vm1068_vm2, %v12032_v3  ;;  %9839 = vmatpush3.xpose.msk.msra.mxu0 %vm1068_vm2, %v12172_v24 }
 0x918   : > { %v6714_v58 = vpop.permute.xlu1 %6713  ;;  %9832 = vmatpush3.xpose.msk.msra.mxu1 %vm1068_vm2, %v12030_v35  ;;  %9835 = vmatprep.mubr.msk.f32.mxu1 %vm1068_vm2, %v12174_v22  ;;  %v6621_v8 = vpop.permute.xlu0 %6620 }
 0x919   : > { %9842 = vmatprep.mubr.msk.f32.mxu0 %vm1068_vm2, %v6439_v56  ;;  %9833 = vmatprep.subr.msk.mxu1 %vm1068_vm2, %v12164_v2 }
 0x91a   : > { %9840 = vmatprep.subr.msk.mxu0 %vm1068_vm2, %v6443_v60 }
 0x91b   : > { %9841 = vmatpush3.xpose.msk.msra.mxu0 %vm1068_vm2, %v6443_v60 }
 0x91c   : > { %v6997_v3 = vpop.permute.xlu1 %6996  ;;  %9834 = vmatpush3.xpose.msk.msra.mxu1 %vm1068_vm2, %v12164_v2  ;;  %9852 = vmatprep.subr.msk.mxu0 %vm1068_vm2, %v6627_v57  ;;  %v6712_v35 = vpop.permute.xlu0 %6711 }
 0x91d   : > { %9845 = vmatprep.subr.msk.mxu1 %vm1068_vm2, %v12197_v55 }
 0x91e   : > { %9843 = vmatmul.mubr.msk.f32.vlgmr.msra.gmra.mxu0 %vm1068_vm2, %v12220_v17 }
 0x91f   : > { %9836 = vmatmul.mubr.msk.f32.vlgmr.msra.gmra.mxu1 %vm1068_vm2, %v12209_v63  ;;  %9853 = vmatpush3.xpose.msk.msra.mxu0 %vm1068_vm2, %v6627_v57 }
 0x920   : > { %v6995_v30 = vpop.permute.xlu1 %6994  ;;  %9846 = vmatpush3.xpose.msk.msra.mxu1 %vm1068_vm2, %v12197_v55  ;;  %9849 = vmatprep.mubr.msk.f32.mxu1 %vm1068_vm2, %v6530_v36  ;;  %v7084_v44 = vpop.permute.xlu0 %7083 }
 0x921   : > { %9856 = vmatprep.mubr.msk.f32.mxu0 %vm1068_vm2, %v6621_v8  ;;  %9847 = vmatprep.subr.msk.mxu1 %vm1068_vm2, %v12207_v0 }
 0x922   : > { %9854 = vmatprep.subr.msk.mxu0 %vm1068_vm2, %v6625_v12 }
 0x923   : > { %9855 = vmatpush3.xpose.msk.msra.mxu0 %vm1068_vm2, %v6625_v12 }
 0x924   : > { %v7082_v50 = vpop.permute.xlu1 %7081  ;;  %9848 = vmatpush3.xpose.msk.msra.mxu1 %vm1068_vm2, %v12207_v0  ;;  %9866 = vmatprep.subr.mxu0 %v6997_v3 }
 0x925   : > { %9859 = vmatprep.subr.msk.mxu1 %vm1068_vm2, %v6718_v27 }
 0x926   : > { %9857 = vmatmul.mubr.msk.f32.vlgmr.msra.gmra.mxu0 %vm1068_vm2, %v6623_v18 }
 0x927   : > { %9850 = vmatmul.mubr.msk.f32.vlgmr.msra.gmra.mxu1 %vm1068_vm2, %v6532_v41  ;;  %9867 = vmatpush3.msra.mxu0 %v6997_v3 }
 0x928   : > { %9860 = vmatpush3.xpose.msk.msra.mxu1 %vm1068_vm2, %v6718_v27  ;;  %9863 = vmatprep.mubr.msk.f32.mxu1 %vm1068_vm2, %v6712_v35  ;;  %v12314_v4 = vpop.permute.xlu1 %7170 }
 0x929   : > { %9861 = vmatprep.subr.msk.mxu1 %vm1068_vm2, %v6716_v37  ;;  %9868 = vmatprep.subr.mxu0 %v6995_v30 }
 0x92a   : > { %9869 = vmatpush3.msra.mxu0 %v6995_v30 }
 0x92b   : > { %9880 = vmatprep.subr.mxu0 %v12314_v4 }
 0x92c   : > { %9862 = vmatpush3.xpose.msk.msra.mxu1 %vm1068_vm2, %v6716_v37  ;;  %v12320_v2 = vpop.permute.xlu1 %7257 }
 0x92d   : > { %9873 = vmatprep.subr.mxu1 %v7084_v44 }
 0x92f   : > { %9864 = vmatmul.mubr.msk.f32.vlgmr.msra.gmra.mxu1 %vm1068_vm2, %v6714_v58 }
 0x930   : > { %9874 = vmatpush3.msra.mxu1 %v7084_v44 }
 0x931   : > { %9875 = vmatprep.subr.mxu1 %v7082_v50 }
 0x932   : > { %9876 = vmatpush3.msra.mxu1 %v7082_v50 }
 0x933   : > { %9887 = vmatprep.subr.mxu1 %v12320_v2 }
 0x9aa   : > { %v12323_v20 = vpop.f32.mrf.mxu0 }
 0x9ac   : > { %v12325_v38 = vpop.f32.mrf.mxu0 }
 0x9b2   : > { %v12327_v39 = vpop.f32.mrf.mxu0 }
 0x9b4   : > { %v12331_v22 = vpop.f32.mrf.mxu0 }
 0x9ba   : > { %v12329_v24 = vpop.f32.mrf.mxu1 }
 0x9bc   : > { %v12333_v14 = vpop.f32.mrf.mxu1 }
 0x9be   : > { %v12335_v33 = vpop.f32.mrf.mxu0 }
 0x9c0   : > { %v12339_v48 = vpop.f32.mrf.mxu0 }
 0x9c2   : > { %v12337_v43 = vpop.f32.mrf.mxu1 }
 0x9c4   : > { %v12341_v11 = vpop.f32.mrf.mxu1 }
 0x9c6   : > { %v12343_v46 = vpop.f32.mrf.mxu0 }
 0x9c8   : > { %v12347_v51 = vpop.f32.mrf.mxu0 }
 0x9ca   : > { %v12345_v21 = vpop.f32.mrf.mxu1 }
 0x9cc   : > { %v12349_v53 = vpop.f32.mrf.mxu1 }
 0x9ce   : > { %v9816_v15 = vpop.f32.mrf.mxu0 }
 0x9cf   : > { %v12351_v55 = vmul.f32 0.5, %v9816_v15  ;;  %v12357_v62 = vpop.f32.mrf.mxu1 }
 0x9d0   : > { %v6156_v13 = vpop.f32.mrf.mxu0 }
 0x9d1   : > { %v12353_v47 = vmul.f32 0.5, %v6156_v13  ;;  %v6821_v49 = vsel %vm1791_vm3, %v12351_v55, -inf  ;;  %v12361_v0 = vpop.f32.mrf.mxu1 }
 0x9d2   : > { %6822 = vmax.xlane.f32.xlu1 %v6821_v49 }
 0x9d3   : > { %v6818_v10 = vsel %vm1791_vm3, %v12353_v47, -inf }
 0x9d4   : > { %6819 = vmax.xlane.f32.xlu0 %v6818_v10 }
 0x9d6   : > { %v9830_v63 = vpop.f32.mrf.mxu0 }
 0x9d7   : > { %v12363_v23 = vmul.f32 0.5, %v9830_v63  ;;  %v9823_v52 = vpop.f32.mrf.mxu1 }
 0x9d8   : > { %v6338_v42 = vpop.f32.mrf.mxu0  ;;  %v12369_v60 = vmul.f32 0.5, %v9823_v52 }
 0x9d9   : > { %v12365_v1 = vmul.f32 0.5, %v6338_v42  ;;  %v6833_v17 = vsel %vm1791_vm3, %v12363_v23, -inf  ;;  %v6247_v32 = vpop.f32.mrf.mxu1 }
 0x9da   : > { %6834 = vmax.xlane.f32.xlu1 %v6833_v17  ;;  %v12373_v6 = vmul.f32 0.5, %v6247_v32  ;;  %v6827_v56 = vsel %vm1791_vm3, %v12369_v60, -inf }
 0x9db   : > { %v6830_v9 = vsel %vm1791_vm3, %v12365_v1, -inf }
 0x9dc   : > { %6831 = vmax.xlane.f32.xlu0 %v6830_v9  ;;  %v6824_v27 = vsel %vm1791_vm3, %v12373_v6, -inf }
 0x9de   : > { %v9844_v45 = vpop.f32.mrf.mxu0 }
 0x9df   : > { %v9837_v57 = vpop.f32.mrf.mxu1  ;;  %v12375_v59 = vmul.f32 0.5, %v9844_v45 }
 0x9e0   : > { %6828 = vmax.xlane.f32.xlu0 %v6827_v56  ;;  %v6520_v7 = vpop.f32.mrf.mxu0  ;;  %v12379_v54 = vmul.f32 0.5, %v9837_v57 }
 0x9e1   : > { %v6845_v40 = vsel %vm1791_vm3, %v12375_v59, -inf  ;;  %v12383_v19 = vmul.f32 0.5, %v6520_v7  ;;  %v6429_v5 = vpop.f32.mrf.mxu1 }
 0x9e2   : > { %6846 = vmax.xlane.f32.xlu1 %v6845_v40  ;;  %v6839_v36 = vsel %vm1791_vm3, %v12379_v54, -inf  ;;  %v12389_v18 = vmul.f32 0.5, %v6429_v5 }
 0x9e3   : > { %v6842_v12 = vsel %vm1791_vm3, %v12383_v19, -inf }
 0x9e4   : > { %6825 = vmax.xlane.f32.xlu0 %v6824_v27  ;;  %v6836_v35 = vsel %vm1791_vm3, %v12389_v18, -inf }
 0x9e6   : > { %6840 = vmax.xlane.f32.xlu1 %v6839_v36  ;;  %v9858_v37 = vpop.f32.mrf.mxu0 }
 0x9e7   : > { %v9851_v41 = vpop.f32.mrf.mxu1  ;;  %v12391_v58 = vmul.f32 0.5, %v9858_v37 }
 0x9e8   : > { %6843 = vmax.xlane.f32.xlu0 %v6842_v12  ;;  %v6702_v3 = vpop.f32.mrf.mxu0  ;;  %v12395_v30 = vmul.f32 0.5, %v9851_v41 }
 0x9e9   : > { %v6857_v8 = vsel %vm1791_vm3, %v12391_v58, -inf  ;;  %v12399_v50 = vmul.f32 0.5, %v6702_v3  ;;  %v6611_v44 = vpop.f32.mrf.mxu1 }
 0x9ea   : > { %6858 = vmax.xlane.f32.xlu1 %v6857_v8  ;;  %v6851_v15 = vsel %vm1791_vm3, %v12395_v30, -inf  ;;  %v12405_v13 = vmul.f32 0.5, %v6611_v44 }
 0x9eb   : > { %v6854_v49 = vsel %vm1791_vm3, %v12399_v50, -inf }
 0x9ec   : > { %6837 = vmax.xlane.f32.xlu0 %v6836_v35  ;;  %v6848_v10 = vsel %vm1791_vm3, %v12405_v13, -inf }
 0x9ee   : > { %6852 = vmax.xlane.f32.xlu1 %v6851_v15 }
 0x9ef   : > { %v9865_v63 = vpop.f32.mrf.mxu1 }
 0x9f0   : > { %6855 = vmax.xlane.f32.xlu0 %v6854_v49  ;;  %v12415_v52 = vmul.f32 0.5, %v9865_v63 }
 0x9f1   : > { %v6793_v42 = vpop.f32.mrf.mxu1 }
 0x9f2   : > { %v6863_v17 = vsel %vm1791_vm3, %v12415_v52, -inf  ;;  %v12419_v9 = vmul.f32 0.5, %v6793_v42 }
 0x9f4   : > { %6849 = vmax.xlane.f32.xlu0 %v6848_v10  ;;  %v6860_v32 = vsel %vm1791_vm3, %v12419_v9, -inf }
 0x9ff   : > { %7431 = vrot.lane.b32.xlu1 %v10900_v28, %s10435_s16  ;;  %v12431_v28 = vpop.permute.xlu1 %7255 }
 0xa0a   : > { %7342 = vrot.lane.b32.xlu0 %v10892_v61, %s10435_s16  ;;  %v12429_v61 = vpop.permute.xlu0 %7168 }
 0xa0e   : > { %v12433_v45 = vpop.permute.xlu0 %7344 }
 0xa23   : > { %6864 = vmax.xlane.f32.xlu1 %v6863_v17 }
 0xa29   : > { %6861 = vmax.xlane.f32.xlu0 %v6860_v32 }
 0xa34   : > { %7429 = vrot.lane.b32.xlu1 %v10890_v25, %s10435_s16 }
 0xa38   : > { %7605 = vrot.lane.b32.xlu1 %v10916_v31, %s10435_s16 }
 0xa3f   : > { %7518 = vrot.lane.b32.xlu0 %v10918_v34, %s10435_s16 }
 0xa5b   : > { %v6823_v57 = vpop.xlane.xlu1 %6822 }
 0xa5c   : > { %v6867_v56 = vsub.f32 %v12351_v55, %v6823_v57 }
 0xa5d   : > { %v6820_v7 = vpop.xlane.xlu0 %6819 }
 0xa5e   : > { %v6884_v40 = vmul.f32 1.442695, %v6867_v56  ;;  %v6866_v27 = vsub.f32 %v12353_v47, %v6820_v7 }
 0xa60   : > { %10257 = vpow2.f32 %v6884_v40  ;;  %v6882_v25 = vmul.f32 1.442695, %v6866_v27 }
 0xa62   : > { %10259 = vpow2.f32 %v6882_v25 }
 0xa63   : > { %v6835_v31 = vpop.xlane.xlu1 %6834 }
 0xa64   : > { %v6871_v5 = vsub.f32 %v12363_v23, %v6835_v31 }
 0xa65   : > { %v6832_v34 = vpop.xlane.xlu0 %6831 }
 0xa66   : > { %v6892_v36 = vmul.f32 1.442695, %v6871_v5  ;;  %v6870_v37 = vsub.f32 %v12365_v1, %v6832_v34 }
 0xa68   : > { %10261 = vpow2.f32 %v6892_v36  ;;  %v6890_v41 = vmul.f32 1.442695, %v6870_v37 }
 0xa69   : > { %v6829_v12 = vpop.xlane.xlu0 %6828 }
 0xa6a   : > { %10263 = vpow2.f32 %v6890_v41  ;;  %v6869_v55 = vsub.f32 %v12369_v60, %v6829_v12 }
 0xa6b   : > { %v6847_v3 = vpop.xlane.xlu1 %6846 }
 0xa6c   : > { %v6888_v8 = vmul.f32 1.442695, %v6869_v55  ;;  %v6875_v47 = vsub.f32 %v12375_v59, %v6847_v3 }
 0xa6d   : > { %v12441_v35 = vpop.eup %10257  ;;  %v6826_v44 = vpop.xlane.xlu0 %6825 }
 0xa6e   : > { %10265 = vpow2.f32 %v6888_v8  ;;  %v6900_v15 = vmul.f32 1.442695, %v6875_v47  ;;  %v6868_v23 = vsub.f32 %v12373_v6, %v6826_v44  ;;  %v6917_v1 = vsel %vm1791_vm3, %v12441_v35, 0.0 }
 0xa6f   : > { %v12446_v49 = vpop.eup %10259  ;;  %v6841_v10 = vpop.xlane.xlu1 %6840  ;;  %6918 = vadd.xlane.f32.xlu1 %v6917_v1 }
 0xa70   : > { %10267 = vpow2.f32 %v6900_v15  ;;  %v6886_v60 = vmul.f32 1.442695, %v6868_v23  ;;  %v6873_v63 = vsub.f32 %v12379_v54, %v6841_v10  ;;  %v6914_v59 = vsel %vm1791_vm3, %v12446_v49, 0.0 }
 0xa71   : > { %6915 = vadd.xlane.f32.xlu0 %v6914_v59  ;;  %v6844_v42 = vpop.xlane.xlu0 %6843 }
 0xa72   : > { %10269 = vpow2.f32 %v6886_v60  ;;  %v6896_v17 = vmul.f32 1.442695, %v6873_v63  ;;  %v6874_v6 = vsub.f32 %v12383_v19, %v6844_v42 }
 0xa73   : > { %v6859_v32 = vpop.xlane.xlu1 %6858 }
 0xa74   : > { %10271 = vpow2.f32 %v6896_v17  ;;  %v6898_v57 = vmul.f32 1.442695, %v6874_v6  ;;  %v6879_v56 = vsub.f32 %v12391_v58, %v6859_v32 }
 0xa75   : > { %v12453_v7 = vpop.eup %10261  ;;  %v6838_v40 = vpop.xlane.xlu0 %6837 }
 0xa76   : > { %10273 = vpow2.f32 %v6898_v57  ;;  %v6908_v27 = vmul.f32 1.442695, %v6879_v56  ;;  %v6872_v54 = vsub.f32 %v12389_v18, %v6838_v40  ;;  %v6929_v25 = vsel %vm1791_vm3, %v12453_v7, 0.0 }
 0xa77   : > { %v12458_v31 = vpop.eup %10263  ;;  %v6853_v5 = vpop.xlane.xlu1 %6852  ;;  %6930 = vadd.xlane.f32.xlu1 %v6929_v25 }
 0xa78   : > { %10275 = vpow2.f32 %v6908_v27  ;;  %v6894_v19 = vmul.f32 1.442695, %v6872_v54  ;;  %v6877_v34 = vsub.f32 %v12395_v30, %v6853_v5  ;;  %v6926_v58 = vsel %vm1791_vm3, %v12458_v31, 0.0  ;;  %v13283_v27 = vld [vmem:[#allocation12_spill] sm:$0xff] }
 0xa79   : > { %6927 = vadd.xlane.f32.xlu0 %v6926_v58  ;;  %v6856_v36 = vpop.xlane.xlu0 %6855 }
 0xa7a   : > { %10277 = vpow2.f32 %v6894_v19  ;;  %v6904_v37 = vmul.f32 1.442695, %v6877_v34  ;;  %v6878_v18 = vsub.f32 %v12399_v50, %v6856_v36 }
 0xa7b   : > { %v12464_v41 = vpop.eup %10265  ;;  %v12511_v54 = vpop.permute.xlu1 %7431 }
 0xa7c   : > { %10279 = vpow2.f32 %v6904_v37  ;;  %v6906_v12 = vmul.f32 1.442695, %v6878_v18  ;;  %v6923_v55 = vsel %vm1791_vm3, %v12464_v41, 0.0  ;;  %v13285_v37 = vld [vmem:[#allocation18_spill] sm:$0xff] }
 0xa7d   : > { %v12468_v3 = vpop.eup %10267  ;;  %6924 = vadd.xlane.f32.xlu1 %v6923_v55  ;;  %v6850_v30 = vpop.xlane.xlu0 %6849  ;;  %v13290_v55 = vld [vmem:[#allocation14_spill] sm:$0xff] }
 0xa7e   : > { %10281 = vpow2.f32 %v6906_v12  ;;  %v6876_v8 = vsub.f32 %v12405_v13, %v6850_v30  ;;  %v6941_v50 = vsel %vm1791_vm3, %v12468_v3, 0.0  ;;  %v13287_v12 = vld [vmem:[#allocation22_spill] sm:$0xff]  ;;  %v13292_v30 = vld [vmem:[#allocation15_spill] sm:$0xff] }
 0xa7f   : > { %v12471_v47 = vpop.eup %10269 }
 0xa80   : > { %v6902_v44 = vmul.f32 1.442695, %v6876_v8  ;;  %v6920_v15 = vsel %vm1791_vm3, %v12471_v47, 0.0 }
 0xa81   : > { %v12477_v23 = vpop.eup %10271  ;;  %6942 = vadd.xlane.f32.xlu1 %v6941_v50  ;;  %6921 = vadd.xlane.f32.xlu0 %v6920_v15  ;;  %v12516_v19 = vpop.permute.xlu0 %7342  ;;  %v13294_v50 = vld [vmem:[#allocation19_spill] sm:$0xff] }
 0xa82   : > { %10283 = vpow2.f32 %v6902_v44  ;;  %v6935_v10 = vsel %vm1791_vm3, %v12477_v23, 0.0 }
 0xa83   : > { %v12479_v1 = vpop.eup %10273 }
 0xa84   : > { %v6938_v13 = vsel %vm1791_vm3, %v12479_v1, 0.0 }
 0xa85   : > { %v12485_v60 = vpop.eup %10275  ;;  %6936 = vadd.xlane.f32.xlu1 %v6935_v10  ;;  %6939 = vadd.xlane.f32.xlu0 %v6938_v13  ;;  %v13295_v10 = vld [vmem:[#allocation24_spill] sm:$0xff] }
 0xa86   : > { %v6953_v59 = vsel %vm1791_vm3, %v12485_v60, 0.0 }
 0xa87   : > { %v12487_v63 = vpop.eup %10277 }
 0xa88   : > { %v6932_v42 = vsel %vm1791_vm3, %v12487_v63, 0.0 }
 0xa89   : > { %v12493_v17 = vpop.eup %10279  ;;  %6954 = vadd.xlane.f32.xlu1 %v6953_v59  ;;  %6933 = vadd.xlane.f32.xlu0 %v6932_v42 }
 0xa8a   : > { %v6947_v32 = vsel %vm1791_vm3, %v12493_v17, 0.0 }
 0xa8b   : > { %v12495_v6 = vpop.eup %10281 }
 0xa8c   : > { %v6950_v57 = vsel %vm1791_vm3, %v12495_v6, 0.0 }
 0xa8d   : > { %6948 = vadd.xlane.f32.xlu1 %v6947_v32  ;;  %6951 = vadd.xlane.f32.xlu0 %v6950_v57 }
 0xa8f   : > { %v12501_v56 = vpop.eup %10283 }
 0xa90   : > { %v6944_v40 = vsel %vm1791_vm3, %v12501_v56, 0.0 }
 0xa91   : > { %6945 = vadd.xlane.f32.xlu0 %v6944_v40 }
 0xa9e   : > { %7603 = vrot.lane.b32.xlu1 %v10908_v29, %s10435_s16 }
 0xaa2   : > { %4314 = vrot.lane.b32.xlu1 %v11886_v16, %s10436_s17  ;;  %v13284_v16 = vld [vmem:[#allocation13_spill] sm:$0xff] }
 0xaa6   : > { %4318 = vrot.lane.b32.xlu1 %v13283_v27, %s10436_s17  ;;  %v13296_v27 = vld [vmem:[#allocation23_spill] sm:$0xff] }
 0xaaa   : > { %6011 = vrot.lane.b32.xlu1 %v12323_v20, %s10437_s19 }
 0xaac   : > { %v6865_v25 = vpop.xlane.xlu1 %6864 }
 0xaad   : > { %v6881_v5 = vsub.f32 %v12415_v52, %v6865_v25  ;;  %v13286_v52 = vld [vmem:[#allocation17_spill] sm:$0xff] }
 0xaae   : > { %6015 = vrot.lane.b32.xlu1 %v12329_v24, %s10437_s19 }
 0xaaf   : > { %v6912_v29 = vmul.f32 1.442695, %v6881_v5 }
 0xab1   : > { %10285 = vpow2.f32 %v6912_v29 }
 0xab2   : > { %4322 = vrot.lane.b32.xlu1 %v13284_v16, %s10436_s17  ;;  %v6862_v34 = vpop.xlane.xlu0 %6861 }
 0xab3   : > { %v6880_v58 = vsub.f32 %v12419_v9, %v6862_v34 }
 0xab5   : > { %v6910_v36 = vmul.f32 1.442695, %v6880_v58 }
 0xab6   : > { %4326 = vrot.lane.b32.xlu1 %v13285_v37, %s10436_s17  ;;  %v12569_v8 = vpop.permute.xlu0 %7518 }
 0xab7   : > { %10287 = vpow2.f32 %v6910_v36 }
 0xaba   : > { %6019 = vrot.lane.b32.xlu1 %v12327_v39, %s10437_s19  ;;  %v13288_v39 = vld [vmem:[#allocation21_spill] sm:$0xff] }
 0xabe   : > { %v12527_v20 = vpop.eup %10285  ;;  %6023 = vrot.lane.b32.xlu1 %v12337_v43, %s10437_s19  ;;  %v13289_v43 = vld [vmem:[#allocation25_spill] sm:$0xff] }
 0xabf   : > { %v6959_v24 = vsel %vm1791_vm3, %v12527_v20, 0.0 }
 0xac0   : > { %6960 = vadd.xlane.f32.xlu0 %v6959_v24 }
 0xac2   : > { %4330 = vrot.lane.b32.xlu1 %v13286_v52, %s10436_s17 }
 0xac4   : > { %v12535_v9 = vpop.eup %10287 }
 0xac5   : > { %v6956_v18 = vsel %vm1791_vm3, %v12535_v9, 0.0 }
 0xac6   : > { %4334 = vrot.lane.b32.xlu1 %v13287_v12, %s10436_s17  ;;  %6957 = vadd.xlane.f32.xlu0 %v6956_v18 }
 0xaca   : > { %6027 = vrot.lane.b32.xlu1 %v12335_v33, %s10437_s19  ;;  %v13291_v33 = vld [vmem:[#allocation16_spill] sm:$0xff] }
 0xace   : > { %6031 = vrot.lane.b32.xlu1 %v12345_v21, %s10437_s19  ;;  %v12561_v21 = vpop.permute.xlu1 %7429 }
 0xad2   : > { %4338 = vrot.lane.b32.xlu1 %v13288_v39, %s10436_s17 }
 0xad6   : > { %4342 = vrot.lane.b32.xlu1 %v13289_v43, %s10436_s17 }
 0xada   : > { %6035 = vrot.lane.b32.xlu1 %v12343_v46, %s10437_s19  ;;  %v12565_v46 = vpop.permute.xlu1 %7605 }
 0xadc   : > { %7516 = vrot.lane.b32.xlu0 %v13278_v26, %s10435_s16  ;;  %v13293_v26 = vld [vmem:[#allocation20_spill] sm:$0xff] }
 0xae0   : > { %4312 = vrot.lane.b32.xlu0 %v13290_v55, %s10436_s17 }
 0xae4   : > { %4316 = vrot.lane.b32.xlu0 %v13291_v33, %s10436_s17 }
 0xae8   : > { %6009 = vrot.lane.b32.xlu0 %v12325_v38, %s10437_s19 }
 0xaec   : > { %6013 = vrot.lane.b32.xlu0 %v12333_v14, %s10437_s19 }
 0xaf0   : > { %4320 = vrot.lane.b32.xlu0 %v13292_v30, %s10436_s17 }
 0xaf4   : > { %4324 = vrot.lane.b32.xlu0 %v13293_v26, %s10436_s17 }
 0xaf8   : > { %v6919_v44 = vpop.xlane.xlu1 %6918  ;;  %6017 = vrot.lane.b32.xlu0 %v12331_v22, %s10437_s19 }
 0xaf9   : > { %10289 = vrcp.f32 %v6919_v44 }
 0xafa   : > { %v6916_v38 = vpop.xlane.xlu0 %6915 }
 0xafb   : > { %10291 = vrcp.f32 %v6916_v38 }
 0xafc   : > { %6021 = vrot.lane.b32.xlu0 %v12341_v11, %s10437_s19 }
 0xb00   : > { %v6931_v14 = vpop.xlane.xlu1 %6930  ;;  %4328 = vrot.lane.b32.xlu0 %v13294_v50, %s10436_s17 }
 0xb01   : > { %10293 = vrcp.f32 %v6931_v14 }
 0xb02   : > { %v6928_v15 = vpop.xlane.xlu0 %6927 }
 0xb03   : > { %10295 = vrcp.f32 %v6928_v15 }
 0xb04   : > { %4332 = vrot.lane.b32.xlu0 %v13295_v10, %s10436_s17 }
 0xb06   : > { %v6925_v13 = vpop.xlane.xlu1 %6924  ;;  %v10290_v59 = vpop.eup %10289 }
 0xb07   : > { %v6979_v57 = vmul.f32 %v10290_v59, %v12441_v35  ;;  %10297 = vrcp.f32 %v6925_v13 }
 0xb08   : > { %v10292_v42 = vpop.eup %10291  ;;  %6025 = vrot.lane.b32.xlu0 %v12339_v48, %s10437_s19 }
 0xb09   : > { %v6978_v22 = vmul.f32 %v10292_v42, %v12446_v49 }
 0xb0a   : > { %v6943_v32 = vpop.xlane.xlu1 %6942  ;;  %v6922_v11 = vpop.xlane.xlu0 %6921 }
 0xb0b   : > { %9870 = vmatprep.mubr.msk.f32.mxu0 %vm1791_vm3, %v6978_v22  ;;  %10299 = vrcp.f32 %v6922_v11 }
 0xb0c   : > { %6029 = vrot.lane.b32.xlu0 %v12349_v53, %s10437_s19  ;;  %9871 = vmatmul.mubr.msk.f32.vlgmr.msra.gmra.mxu0 %vm1791_vm3, %v6979_v57  ;;  %10301 = vrcp.f32 %v6943_v32 }
 0xb0d   : > { %9881 = vmatpush3.msra.mxu0 %v12314_v4 }
 0xb0e   : > { %9882 = vmatprep.subr.mxu0 %v12429_v61  ;;  %v6937_v48 = vpop.xlane.xlu1 %6936  ;;  %v6940_v40 = vpop.xlane.xlu0 %6939 }
 0xb0f   : > { %v10294_v49 = vpop.eup %10293  ;;  %9883 = vmatpush3.msra.mxu0 %v12429_v61  ;;  %10303 = vrcp.f32 %v6940_v40  ;;  %v13297_v61 = vld [vmem:[#allocation26_spill] sm:$0xff] }
 0xb10   : > { %v10296_v35 = vpop.eup %10295  ;;  %9894 = vmatprep.subr.mxu0 %v12433_v45  ;;  %4336 = vrot.lane.b32.xlu0 %v13296_v27, %s10436_s17  ;;  %v6983_v5 = vmul.f32 %v10294_v49, %v12453_v7  ;;  %10305 = vrcp.f32 %v6937_v48 }
 0xb11   : > { %v6982_v53 = vmul.f32 %v10296_v35, %v12458_v31 }
 0xb12   : > { %v12594_v25 = vpop.xlane.xlu1 %6954  ;;  %v6934_v4 = vpop.xlane.xlu0 %6933 }
 0xb13   : > { %9884 = vmatprep.mubr.msk.f32.mxu0 %vm1791_vm3, %v6982_v53  ;;  %10307 = vrcp.f32 %v6934_v4 }
 0xb14   : > { %4340 = vrot.lane.b32.xlu0 %v13297_v61, %s10436_s17  ;;  %9885 = vmatmul.mubr.msk.f32.vlgmr.msra.gmra.mxu0 %vm1791_vm3, %v6983_v5  ;;  %v10298_v16 = vpop.eup %10297 }
 0xb15   : > { %9895 = vmatpush3.msra.mxu0 %v12433_v45  ;;  %v6981_v45 = vmul.f32 %v10298_v16, %v12464_v41 }
 0xb16   : > { %9896 = vmatprep.subr.mxu0 %v12516_v19  ;;  %v6949_v29 = vpop.xlane.xlu1 %6948  ;;  %v6952_v31 = vpop.xlane.xlu0 %6951 }
 0xb17   : > { %9897 = vmatpush3.msra.mxu0 %v12516_v19  ;;  %10309 = vrcp.f32 %v6952_v31 }
 0xb18   : > { %9908 = vmatprep.subr.mxu0 %v12569_v8  ;;  %6033 = vrot.lane.b32.xlu0 %v12347_v51, %s10437_s19  ;;  %v10300_v7 = vpop.eup %10299  ;;  %10311 = vrcp.f32 %v6949_v29 }
 0xb19   : > { %v6980_v36 = vmul.f32 %v10300_v7, %v12471_v47  ;;  %v10302_v37 = vpop.eup %10301  ;;  %v10026_v7 = vld [vmem:[%s10546_s26] sm:$0xff]  }
 0xb1a   : > { %v7604_v34 = vpop.permute.xlu1 %7603  ;;  %v6946_v58 = vpop.xlane.xlu0 %6945  ;;  %v6987_v47 = vmul.f32 %v10302_v37, %v12468_v3 }
 0xb1b   : > { %10313 = vrcp.f32 %v6946_v58  ;;  %9877 = vmatprep.mubr.msk.f32.mxu1 %vm1791_vm3, %v6980_v36 }
 0xb1c   : > { %v10304_v19 = vpop.eup %10303  ;;  %9878 = vmatmul.mubr.msk.f32.vlgmr.msra.gmra.mxu1 %vm1791_vm3, %v6981_v45  ;;  %10315 = vrcp.f32 %v12594_v25 }
 0xb1d   : > { %9888 = vmatpush3.msra.mxu1 %v12320_v2  ;;  %v6986_v51 = vmul.f32 %v10304_v19, %v12479_v1  ;;  %v10306_v52 = vpop.eup %10305 }
 0xb1e   : > { %v4315_v24 = vpop.permute.xlu1 %4314  ;;  %9889 = vmatprep.subr.mxu1 %v12431_v28  ;;  %v6985_v18 = vmul.f32 %v10306_v52, %v12477_v23 }
 0xb1f   : > { %4362 = vst.msk [vmem:[#allocation3 + $0x8] sm:$0xff] %vm4360_vm4, %v4315_v24  ;;  %9890 = vmatpush3.msra.mxu1 %v12431_v28  ;;  %9898 = vmatprep.mubr.msk.f32.mxu0 %vm1791_vm3, %v6986_v51 }
 0xb20   : > { %v10308_v41 = vpop.eup %10307  ;;  %9901 = vmatprep.subr.mxu1 %v12511_v54  ;;  %9899 = vmatmul.mubr.msk.f32.vlgmr.msra.gmra.mxu0 %vm1791_vm3, %v6987_v47 }
 0xb21   : > { %9909 = vmatpush3.msra.mxu0 %v12569_v8  ;;  %v6984_v1 = vmul.f32 %v10308_v41, %v12487_v63 }
 0xb22   : > { %v4319_v2 = vpop.permute.xlu1 %4318 }
 0xb23   : > { %4364 = vst.msk [vmem:[#allocation3 + $0x18] sm:$0xff] %vm4360_vm4, %v4319_v2  ;;  %9891 = vmatprep.mubr.msk.f32.mxu1 %vm1791_vm3, %v6984_v1 }
 0xb24   : > { %v10310_v28 = vpop.eup %10309  ;;  %9892 = vmatmul.mubr.msk.f32.vlgmr.msra.gmra.mxu1 %vm1791_vm3, %v6985_v18 }
 0xb25   : > { %9902 = vmatpush3.msra.mxu1 %v12511_v54  ;;  %v6990_v12 = vmul.f32 %v10310_v28, %v12495_v6  ;;  %v10312_v39 = vpop.eup %10311 }
 0xb26   : > { %v6012_v3 = vpop.permute.xlu1 %6011  ;;  %9903 = vmatprep.subr.mxu1 %v12561_v21  ;;  %v6989_v54 = vmul.f32 %v10312_v39, %v12493_v17 }
 0xb27   : > { %6059 = vst.msk [vmem:[#allocation3 + $0x8] sm:$0xff] %vm6057_vm5, %v6012_v3  ;;  %9904 = vmatpush3.msra.mxu1 %v12561_v21  ;;  %9912 = vmatprep.mubr.msk.f32.mxu0 %vm1791_vm3, %v6990_v12 }
 0xb28   : > { %v10314_v63 = vpop.eup %10313  ;;  %9915 = vmatprep.subr.mxu1 %v12565_v46 }
 0xb29   : > { %v6988_v23 = vmul.f32 %v10314_v63, %v12501_v56  ;;  %v10316_v38 = vpop.eup %10315 }
 0xb2a   : > { %v6016_v43 = vpop.permute.xlu1 %6015  ;;  %v6991_v15 = vmul.f32 %v10316_v38, %v12485_v60 }
 0xb2b   : > { %6061 = vst.msk [vmem:[#allocation3 + $0x18] sm:$0xff] %vm6057_vm5, %v6016_v43  ;;  %9905 = vmatprep.mubr.msk.f32.mxu1 %vm1791_vm3, %v6988_v23 }
 0xb2c   : > { %9906 = vmatmul.mubr.msk.f32.vlgmr.msra.gmra.mxu1 %vm1791_vm3, %v6989_v54 }
 0xb2d   : > { %9916 = vmatpush3.msra.mxu1 %v12565_v46 }
 0xb2e   : > { %9917 = vmatprep.subr.mxu1 %v7604_v34  ;;  %v4323_v6 = vpop.permute.xlu1 %4322 }
 0xb2f   : > { %4366 = vst.msk [vmem:[#allocation3 + $0x28] sm:$0xff] %vm4360_vm4, %v4323_v6  ;;  %9918 = vmatpush3.msra.mxu1 %v7604_v34 }
 0xb30   : > { %9984 = vmatprep.subr.bf16.mxu1 %v10026_v7 }
 0xb32   : > { %v4327_v55 = vpop.permute.xlu1 %4326 }
 0xb33   : > { %4368 = vst.msk [vmem:[#allocation3 + $0x38] sm:$0xff] %vm4360_vm4, %v4327_v55 }
 0xb36   : > { %v6020_v56 = vpop.permute.xlu1 %6019 }
 0xb37   : > { %6063 = vst.msk [vmem:[#allocation3 + $0x28] sm:$0xff] %vm6057_vm5, %v6020_v56 }
 0xb3a   : > { %v6024_v17 = vpop.permute.xlu1 %6023 }
 0xb3b   : > { %6065 = vst.msk [vmem:[#allocation3 + $0x38] sm:$0xff] %vm6057_vm5, %v6024_v17 }
 0xb3e   : > { %v4331_v33 = vpop.permute.xlu1 %4330 }
 0xb3f   : > { %4370 = vst.msk [vmem:[#allocation3 + $0x48] sm:$0xff] %vm4360_vm4, %v4331_v33 }
 0xb42   : > { %v4335_v21 = vpop.permute.xlu1 %4334 }
 0xb43   : > { %4372 = vst.msk [vmem:[#allocation3 + $0x58] sm:$0xff] %vm4360_vm4, %v4335_v21 }
 0xb46   : > { %v6028_v30 = vpop.permute.xlu1 %6027 }
 0xb47   : > { %6067 = vst.msk [vmem:[#allocation3 + $0x48] sm:$0xff] %vm6057_vm5, %v6028_v30 }
 0xb49   : > { %v6961_v26 = vpop.xlane.xlu0 %6960 }
 0xb4a   : > { %v6032_v46 = vpop.permute.xlu1 %6031  ;;  %10317 = vrcp.f32 %v6961_v26 }
 0xb4b   : > { %6069 = vst.msk [vmem:[#allocation3 + $0x58] sm:$0xff] %vm6057_vm5, %v6032_v46 }
 0xb4e   : > { %v4339_v8 = vpop.permute.xlu1 %4338 }
 0xb4f   : > { %4374 = vst.msk [vmem:[#allocation3 + $0x68] sm:$0xff] %vm4360_vm4, %v4339_v8  ;;  %v6958_v44 = vpop.xlane.xlu0 %6957 }
 0xb50   : > { %10319 = vrcp.f32 %v6958_v44 }
 0xb52   : > { %v4343_v14 = vpop.permute.xlu1 %4342 }
 0xb53   : > { %4376 = vst.msk [vmem:[#allocation3 + $0x78] sm:$0xff] %vm4360_vm4, %v4343_v14  ;;  %v7517_v50 = vpop.permute.xlu0 %7516 }
 0xb54   : > { %9910 = vmatprep.subr.mxu0 %v7517_v50 }
 0xb55   : > { %9911 = vmatpush3.msra.mxu0 %v7517_v50 }
 0xb56   : > { %v6036_v10 = vpop.permute.xlu1 %6035  ;;  %9913 = vmatmul.mubr.msk.f32.vlgmr.msra.gmra.mxu0 %vm1791_vm3, %v6991_v15  ;;  %9922 = vmatprep.subr.bf16.mxu0 %v10026_v7 }
 0xb57   : > { %6071 = vst.msk [vmem:[#allocation3 + $0x68] sm:$0xff] %vm6057_vm5, %v6036_v10  ;;  %v4313_v13 = vpop.permute.xlu0 %4312  ;;  %v10318_v42 = vpop.eup %10317  ;;  %9923 = vmatpush3.bf16.msra.mxu0 %v10026_v7 }
 0xb58   : > { %4361 = vst.msk [vmem:[#allocation3] sm:$0xff] %vm4360_vm4, %v4313_v13  ;;  %v6993_v57 = vmul.f32 %v10318_v42, %v12527_v20 }
 0xb5b   : > { %v4317_v59 = vpop.permute.xlu0 %4316 }
 0xb5c   : > { %4363 = vst.msk [vmem:[#allocation3 + $0x10] sm:$0xff] %vm4360_vm4, %v4317_v59 }
 0xb5d   : > { %v10320_v22 = vpop.eup %10319 }
 0xb5e   : > { %v6992_v32 = vmul.f32 %v10320_v22, %v12535_v9 }
 0xb5f   : > { %v6010_v11 = vpop.permute.xlu0 %6009 }
 0xb60   : > { %6058 = vst.msk [vmem:[#allocation3] sm:$0xff] %vm6057_vm5, %v6010_v11  ;;  %9919 = vmatprep.mubr.msk.f32.mxu1 %vm1791_vm3, %v6992_v32 }
 0xb61   : > { %9920 = vmatmul.mubr.msk.f32.vlgmr.msra.gmra.mxu1 %vm1791_vm3, %v6993_v57 }
 0xb62   : > { %9985 = vmatpush3.bf16.msra.mxu1 %v10026_v7  ;;  %v10386_v7 = vld [vmem:[#allocation2 + $0x10] sm:$0xff] }
 0xb63   : > { %v6014_v60 = vpop.permute.xlu0 %6013 }
 0xb64   : > { %6060 = vst.msk [vmem:[#allocation3 + $0x10] sm:$0xff] %vm6057_vm5, %v6014_v60 }
 0xb67   : > { %v4321_v48 = vpop.permute.xlu0 %4320 }
 0xb68   : > { %4365 = vst.msk [vmem:[#allocation3 + $0x20] sm:$0xff] %vm4360_vm4, %v4321_v48 }
 0xb6b   : > { %v4325_v40 = vpop.permute.xlu0 %4324 }
 0xb6c   : > { %4367 = vst.msk [vmem:[#allocation3 + $0x30] sm:$0xff] %vm4360_vm4, %v4325_v40 }
 0xb6f   : > { %v6018_v49 = vpop.permute.xlu0 %6017 }
 0xb70   : > { %6062 = vst.msk [vmem:[#allocation3 + $0x20] sm:$0xff] %vm6057_vm5, %v6018_v49 }
 0xb73   : > { %v6022_v9 = vpop.permute.xlu0 %6021 }
 0xb74   : > { %6064 = vst.msk [vmem:[#allocation3 + $0x30] sm:$0xff] %vm6057_vm5, %v6022_v9 }
 0xb77   : > { %v4329_v20 = vpop.permute.xlu0 %4328 }
 0xb78   : > { %4369 = vst.msk [vmem:[#allocation3 + $0x40] sm:$0xff] %vm4360_vm4, %v4329_v20 }
 0xb7b   : > { %v4333_v35 = vpop.permute.xlu0 %4332 }
 0xb7c   : > { %4371 = vst.msk [vmem:[#allocation3 + $0x50] sm:$0xff] %vm4360_vm4, %v4333_v35 }
 0xb7f   : > { %v6026_v27 = vpop.permute.xlu0 %6025 }
 0xb80   : > { %6066 = vst.msk [vmem:[#allocation3 + $0x40] sm:$0xff] %vm6057_vm5, %v6026_v27 }
 0xb83   : > { %v6030_v53 = vpop.permute.xlu0 %6029 }
 0xb84   : > { %6068 = vst.msk [vmem:[#allocation3 + $0x50] sm:$0xff] %vm6057_vm5, %v6030_v53  ;;  %v12724_v53 = vld [vmem:[%s13298_s24] ss:$0 sm:$0xff] }
 0xb87   : > { %v4337_v25 = vpop.permute.xlu0 %4336 }
 0xb88   : > { %4373 = vst.msk [vmem:[#allocation3 + $0x60] sm:$0xff] %vm4360_vm4, %v4337_v25 }
 0xb8b   : > { %v4341_v4 = vpop.permute.xlu0 %4340 }
 0xb8c   : > { %4375 = vst.msk [vmem:[#allocation3 + $0x70] sm:$0xff] %vm4360_vm4, %v4341_v4 }
 0xb8f   : > { %v6034_v5 = vpop.permute.xlu0 %6033 }
 0xb90   : > { %6070 = vst.msk [vmem:[#allocation3 + $0x60] sm:$0xff] %vm6057_vm5, %v6034_v5 }
 0xbcc   : > { %v9872_v61 = vpop.f32.mrf.mxu0 }
 0xbcd   : > { %7708 = vrot.lane.b32.xlu1 %v9872_v61, %s10438_s15 }
 0xbce   : > { %v7072_v29 = vpop.f32.mrf.mxu0 }
 0xbcf   : > { %7706 = vrot.lane.b32.xlu0 %v7072_v29, %s10438_s15  ;;  %v10385_v29 = vld [vmem:[#allocation2] sm:$0xff] }
 0xbd4   : > { %v9886_v31 = vpop.f32.mrf.mxu0 }
 0xbd5   : > { %7716 = vrot.lane.b32.xlu1 %v9886_v31, %s10438_s15 }
 0xbd6   : > { %v7246_v16 = vpop.f32.mrf.mxu0 }
 0xbd7   : > { %7714 = vrot.lane.b32.xlu0 %v7246_v16, %s10438_s15 }
 0xbdc   : > { %v9879_v34 = vpop.f32.mrf.mxu1 }
 0xbdd   : > { %7712 = vrot.lane.b32.xlu1 %v9879_v34, %s10438_s15 }
 0xbde   : > { %v7159_v58 = vpop.f32.mrf.mxu1 }
 0xbdf   : > { %7710 = vrot.lane.b32.xlu0 %v7159_v58, %s10438_s15 }
 0xbe0   : > { %v9900_v36 = vpop.f32.mrf.mxu0 }
 0xbe1   : > { %7724 = vrot.lane.b32.xlu1 %v9900_v36, %s10438_s15 }
 0xbe2   : > { %v7420_v45 = vpop.f32.mrf.mxu0 }
 0xbe3   : > { %7722 = vrot.lane.b32.xlu0 %v7420_v45, %s10438_s15 }
 0xbe4   : > { %v9893_v37 = vpop.f32.mrf.mxu1 }
 0xbe5   : > { %7720 = vrot.lane.b32.xlu1 %v9893_v37, %s10438_s15 }
 0xbe6   : > { %v7333_v19 = vpop.f32.mrf.mxu1 }
 0xbe7   : > { %7718 = vrot.lane.b32.xlu0 %v7333_v19, %s10438_s15  ;;  %v10387_v19 = vld [vmem:[#allocation2 + $0x8] sm:$0xff] }
 0xbe9   : > { %6039 = vrot.lane.b32.xlu1 %v12357_v62, %s10437_s19 }
 0xbeb   : > { %6037 = vrot.lane.b32.xlu0 %v12361_v0, %s10437_s19 }
 0xbec   : > { %v9907_v24 = vpop.f32.mrf.mxu1 }
 0xbed   : > { %7728 = vrot.lane.b32.xlu1 %v9907_v24, %s10438_s15 }
 0xbee   : > { %v7507_v51 = vpop.f32.mrf.mxu1 }
 0xbef   : > { %7726 = vrot.lane.b32.xlu0 %v7507_v51, %s10438_s15 }
 0xc16   : > { %v9914_v47 = vpop.f32.mrf.mxu0 }
 0xc17   : > { %7732 = vrot.lane.b32.xlu1 %v9914_v47, %s10438_s15  ;;  %v10388_v47 = vld [vmem:[#allocation2 + $0x18] sm:$0xff] }
 0xc18   : > { %v7594_v52 = vpop.f32.mrf.mxu0 }
 0xc19   : > { %7730 = vrot.lane.b32.xlu0 %v7594_v52, %s10438_s15 }
 0xc21   : > { %v9921_v41 = vpop.f32.mrf.mxu1 }
 0xc22   : > { %7736 = vrot.lane.b32.xlu1 %v9921_v41, %s10438_s15 }
 0xc23   : > { %v7681_v2 = vpop.f32.mrf.mxu1 }
 0xc24   : > { %7734 = vrot.lane.b32.xlu0 %v7681_v2, %s10438_s15 }
 0xc3f   : > { %v7709_v62 = vpop.permute.xlu1 %7708 }
 0xc40   : > { %7756 = vst.msk [vmem:[#allocation3 + $0x8] sm:$0xff] %vm7754_vm6, %v7709_v62 }
 0xc41   : > { %v7707_v0 = vpop.permute.xlu0 %7706 }
 0xc42   : > { %7755 = vst.msk [vmem:[#allocation3] sm:$0xff] %vm7754_vm6, %v7707_v0 }
 0xc47   : > { %v7717_v1 = vpop.permute.xlu1 %7716  ;;  %v7772_v3 = vld [vmem:[#allocation3 + $0x8] sm:$0xff] }
 0xc48   : > { %7760 = vst.msk [vmem:[#allocation3 + $0x28] sm:$0xff] %vm7754_vm6, %v7717_v1 }
 0xc49   : > { %v7715_v18 = vpop.permute.xlu0 %7714  ;;  %v7771_v28 = vld [vmem:[#allocation3] sm:$0xff] }
 0xc4a   : > { %7759 = vst.msk [vmem:[#allocation3 + $0x20] sm:$0xff] %vm7754_vm6, %v7715_v18  ;;  %v7787_v12 = vpack.c.bf16 %v7772_v3, %v7771_v28  ;;  %v10389_v28 = vld [vmem:[#allocation2 + $0x20] sm:$0xff] }
 0xc4c   : > { %9924 = vmatprep.mubr.msk.bf16.mxu0 %vm1791_vm3, %v7787_v12 }
 0xc4f   : > { %v7713_v39 = vpop.permute.xlu1 %7712  ;;  %v7776_v21 = vld [vmem:[#allocation3 + $0x28] sm:$0xff] }
 0xc50   : > { %7758 = vst.msk [vmem:[#allocation3 + $0x18] sm:$0xff] %vm7754_vm6, %v7713_v39 }
 0xc51   : > { %v7711_v63 = vpop.permute.xlu0 %7710  ;;  %v7775_v6 = vld [vmem:[#allocation3 + $0x20] sm:$0xff] }
 0xc52   : > { %7757 = vst.msk [vmem:[#allocation3 + $0x10] sm:$0xff] %vm7754_vm6, %v7711_v63  ;;  %v7789_v46 = vpack.c.bf16 %v7776_v21, %v7775_v6  ;;  %v10391_v6 = vld [vmem:[#allocation2 + $0x30] sm:$0xff] }
 0xc53   : > { %v7725_v23 = vpop.permute.xlu1 %7724 }
 0xc54   : > { %7764 = vst.msk [vmem:[#allocation3 + $0x48] sm:$0xff] %vm7754_vm6, %v7725_v23 }
 0xc55   : > { %v7723_v43 = vpop.permute.xlu0 %7722 }
 0xc56   : > { %7763 = vst.msk [vmem:[#allocation3 + $0x40] sm:$0xff] %vm7754_vm6, %v7723_v43  ;;  %v10390_v43 = vld [vmem:[#allocation2 + $0x28] sm:$0xff] }
 0xc57   : > { %v7721_v54 = vpop.permute.xlu1 %7720  ;;  %v7774_v17 = vld [vmem:[#allocation3 + $0x18] sm:$0xff] }
 0xc58   : > { %7762 = vst.msk [vmem:[#allocation3 + $0x38] sm:$0xff] %vm7754_vm6, %v7721_v54 }
 0xc59   : > { %v7719_v55 = vpop.permute.xlu0 %7718  ;;  %v7773_v56 = vld [vmem:[#allocation3 + $0x10] sm:$0xff] }
 0xc5a   : > { %7761 = vst.msk [vmem:[#allocation3 + $0x30] sm:$0xff] %vm7754_vm6, %v7719_v55  ;;  %v7788_v33 = vpack.c.bf16 %v7774_v17, %v7773_v56  ;;  %v10392_v17 = vld [vmem:[#allocation2 + $0x38] sm:$0xff] }
 0xc5b   : > { %v6040_v30 = vpop.permute.xlu1 %6039  ;;  %v7780_v44 = vld [vmem:[#allocation3 + $0x48] sm:$0xff] }
 0xc5c   : > { %6073 = vst.msk [vmem:[#allocation3 + $0x78] sm:$0xff] %vm6057_vm5, %v6040_v30  ;;  %9925 = vmatmul.mubr.msk.bf16.vlgmr.msra.gmra.mxu0 %vm1791_vm3, %v7788_v33 }
 0xc5d   : > { %9928 = vmatprep.mubr.msk.bf16.mxu0 %vm1791_vm3, %v7789_v46  ;;  %v6038_v26 = vpop.permute.xlu0 %6037  ;;  %v7779_v8 = vld [vmem:[#allocation3 + $0x40] sm:$0xff] }
 0xc5e   : > { %6072 = vst.msk [vmem:[#allocation3 + $0x70] sm:$0xff] %vm6057_vm5, %v6038_v26  ;;  %v7791_v38 = vpack.c.bf16 %v7780_v44, %v7779_v8 }
 0xc5f   : > { %v7729_v14 = vpop.permute.xlu1 %7728  ;;  %v7778_v10 = vld [vmem:[#allocation3 + $0x38] sm:$0xff] }
 0xc60   : > { %7766 = vst.msk [vmem:[#allocation3 + $0x58] sm:$0xff] %vm7754_vm6, %v7729_v14  ;;  %9932 = vmatprep.mubr.msk.bf16.mxu1 %vm1791_vm3, %v7791_v38  ;;  %v10393_v14 = vld [vmem:[#allocation2 + $0x40] sm:$0xff] }
 0xc61   : > { %v7727_v50 = vpop.permute.xlu0 %7726  ;;  %v7777_v15 = vld [vmem:[#allocation3 + $0x30] sm:$0xff] }
 0xc62   : > { %7765 = vst.msk [vmem:[#allocation3 + $0x50] sm:$0xff] %vm7754_vm6, %v7727_v50  ;;  %v7790_v13 = vpack.c.bf16 %v7778_v10, %v7777_v15 }
 0xc64   : > { %9929 = vmatmul.mubr.msk.bf16.gmra.mxu0 %vm1791_vm3, %v7790_v13 }
 0xc67   : > { %v7782_v42 = vld [vmem:[#allocation3 + $0x58] sm:$0xff] }
 0xc69   : > { %v7781_v59 = vld [vmem:[#allocation3 + $0x50] sm:$0xff] }
 0xc6a   : > { %v7792_v22 = vpack.c.bf16 %v7782_v42, %v7781_v59  ;;  %v10394_v59 = vld [vmem:[#allocation2 + $0x48] sm:$0xff] }
 0xc6c   : > { %9933 = vmatmul.mubr.msk.bf16.vlgmr.msra.gmra.mxu1 %vm1791_vm3, %v7792_v22  ;;  %v10395_v22 = vld [vmem:[#allocation2 + $0x50] sm:$0xff] }
 0xc89   : > { %v7733_v32 = vpop.permute.xlu1 %7732 }
 0xc8a   : > { %7768 = vst.msk [vmem:[#allocation3 + $0x68] sm:$0xff] %vm7754_vm6, %v7733_v32 }
 0xc8b   : > { %v7731_v11 = vpop.permute.xlu0 %7730 }
 0xc8c   : > { %7767 = vst.msk [vmem:[#allocation3 + $0x60] sm:$0xff] %vm7754_vm6, %v7731_v11  ;;  %v10396_v11 = vld [vmem:[#allocation2 + $0x58] sm:$0xff] }
 0xc91   : > { %v7784_v60 = vld [vmem:[#allocation3 + $0x68] sm:$0xff] }
 0xc93   : > { %v7783_v57 = vld [vmem:[#allocation3 + $0x60] sm:$0xff] }
 0xc94   : > { %v7737_v48 = vpop.permute.xlu1 %7736  ;;  %v7793_v40 = vpack.c.bf16 %v7784_v60, %v7783_v57 }
 0xc95   : > { %7770 = vst.msk [vmem:[#allocation3 + $0x78] sm:$0xff] %vm7754_vm6, %v7737_v48 }
 0xc96   : > { %9936 = vmatprep.mubr.msk.bf16.mxu1 %vm1791_vm3, %v7793_v40  ;;  %v7735_v49 = vpop.permute.xlu0 %7734 }
 0xc97   : > { %7769 = vst.msk [vmem:[#allocation3 + $0x70] sm:$0xff] %vm7754_vm6, %v7735_v49 }
 0xc9c   : > { %v7786_v20 = vld [vmem:[#allocation3 + $0x78] sm:$0xff] }
 0xc9e   : > { %v7785_v9 = vld [vmem:[#allocation3 + $0x70] sm:$0xff] }
 0xc9f   : > { %v7794_v35 = vpack.c.bf16 %v7786_v20, %v7785_v9 }
 0xca1   : > { %9937 = vmatmul.mubr.msk.bf16.gmra.mxu1 %vm1791_vm3, %v7794_v35 }
 0xd1c   : > { %v9926_v27 = vpop.f32.mrf.mxu0 }
 0xd1d   : > { %v7877_v4 = vadd.f32 %v9926_v27, %v12724_v53 }
 0xd1e   : > { %v7868_v25 = vpop.f32.mrf.mxu0 }
 0xd1f   : > { %v7869_v5 = vadd.f32 %v12724_v53, %v7868_v25  ;;  %v12730_v34 = vadd.f32 %v10386_v7, %v7877_v4  ;;  %v10397_v4 = vld [vmem:[#allocation2 + $0x60] sm:$0xff] }
 0xd20   : > { %v9927_v61 = vpop.f32.mrf.mxu0 }
 0xd21   : > { %v12728_v31 = vadd.f32 %v10385_v29, %v7869_v5  ;;  %v7880_v58 = vadd.f32 %v9927_v61, %v12724_v53  ;;  %v7955_v62 = vsel %vm663_vm1, %v12730_v34, 0.0  ;;  %v10398_v29 = vld [vmem:[#allocation2 + $0x70] sm:$0xff] }
 0xd22   : > { %v7871_v16 = vpop.f32.mrf.mxu0 }
 0xd23   : > { %v7872_v36 = vadd.f32 %v12724_v53, %v7871_v16  ;;  %v7949_v45 = vsel %vm663_vm1, %v12728_v31, 0.0  ;;  %v12738_v52 = vadd.f32 %v10388_v47, %v7880_v58 }
 0xd24   : > { %7950 = vadd.xlane.f32.xlu0 %v7949_v45  ;;  %v9930_v37 = vpop.f32.mrf.mxu0  ;;  %v10399_v45 = vld [vmem:[#allocation2 + $0x68] sm:$0xff] }
 0xd25   : > { %v12736_v24 = vadd.f32 %v10387_v19, %v7872_v36  ;;  %v7893_v1 = vadd.f32 %v9930_v37, %v12724_v53  ;;  %v7958_v63 = vsel %vm663_vm1, %v12738_v52, 0.0  ;;  %v10400_v19 = vld [vmem:[#allocation2 + $0x78] sm:$0xff] }
 0xd26   : > { %v7884_v51 = vpop.f32.mrf.mxu0 }
 0xd27   : > { %v7885_v41 = vadd.f32 %v12724_v53, %v7884_v51  ;;  %v7952_v2 = vsel %vm663_vm1, %v12736_v24, 0.0  ;;  %v12754_v55 = vadd.f32 %v10391_v6, %v7893_v1 }
 0xd28   : > { %7953 = vadd.xlane.f32.xlu1 %v7952_v2  ;;  %7956 = vadd.xlane.f32.xlu0 %v7955_v62  ;;  %v9931_v0 = vpop.f32.mrf.mxu0 }
 0xd29   : > { %v12746_v3 = vadd.f32 %v10389_v28, %v7885_v41  ;;  %v7896_v12 = vadd.f32 %v9931_v0, %v12724_v53  ;;  %v7967_v38 = vsel %vm663_vm1, %v12754_v55, 0.0 }
 0xd2a   : > { %v7887_v18 = vpop.f32.mrf.mxu0 }
 0xd2b   : > { %v7888_v39 = vadd.f32 %v12724_v53, %v7887_v18  ;;  %v12756_v33 = vadd.f32 %v10392_v17, %v7896_v12  ;;  %v7961_v46 = vsel %vm663_vm1, %v12746_v3, 0.0 }
 0xd2c   : > { %7959 = vadd.xlane.f32.xlu0 %v7958_v63  ;;  %v9934_v23 = vpop.f32.mrf.mxu1 }
 0xd2d   : > { %v12752_v54 = vadd.f32 %v10390_v43, %v7888_v39  ;;  %v7909_v8 = vadd.f32 %v9934_v23, %v12724_v53  ;;  %v7970_v13 = vsel %vm663_vm1, %v12756_v33, 0.0 }
 0xd2e   : > { %v7900_v56 = vpop.f32.mrf.mxu1 }
 0xd2f   : > { %v7901_v21 = vadd.f32 %v12724_v53, %v7900_v56  ;;  %v7964_v30 = vsel %vm663_vm1, %v12752_v54, 0.0  ;;  %v12774_v32 = vadd.f32 %v10395_v22, %v7909_v8 }
 0xd30   : > { %7965 = vadd.xlane.f32.xlu1 %v7964_v30  ;;  %7962 = vadd.xlane.f32.xlu0 %v7961_v46  ;;  %v9935_v26 = vpop.f32.mrf.mxu1 }
 0xd31   : > { %v12766_v50 = vadd.f32 %v10393_v14, %v7901_v21  ;;  %v7912_v15 = vadd.f32 %v9935_v26, %v12724_v53  ;;  %v7979_v49 = vsel %vm663_vm1, %v12774_v32, 0.0 }
 0xd32   : > { %v7903_v44 = vpop.f32.mrf.mxu1 }
 0xd33   : > { %v7904_v10 = vadd.f32 %v12724_v53, %v7903_v44  ;;  %v12776_v57 = vadd.f32 %v10396_v11, %v7912_v15  ;;  %v7973_v48 = vsel %vm663_vm1, %v12766_v50, 0.0 }
 0xd34   : > { %7971 = vadd.xlane.f32.xlu1 %v7970_v13  ;;  %7968 = vadd.xlane.f32.xlu0 %v7967_v38 }
 0xd35   : > { %v12772_v42 = vadd.f32 %v10394_v59, %v7904_v10  ;;  %v7982_v40 = vsel %vm663_vm1, %v12776_v57, 0.0 }
 0xd37   : > { %v7976_v60 = vsel %vm663_vm1, %v12772_v42, 0.0 }
 0xd38   : > { %7977 = vadd.xlane.f32.xlu1 %v7976_v60  ;;  %7974 = vadd.xlane.f32.xlu0 %v7973_v48 }
 0xd3c   : > { %7983 = vadd.xlane.f32.xlu1 %v7982_v40  ;;  %7980 = vadd.xlane.f32.xlu0 %v7979_v49 }
 0xd61   : > { %v9938_v9 = vpop.f32.mrf.mxu1 }
 0xd62   : > { %v7925_v35 = vadd.f32 %v9938_v9, %v12724_v53 }
 0xd63   : > { %v7916_v20 = vpop.f32.mrf.mxu1 }
 0xd64   : > { %v7917_v27 = vadd.f32 %v12724_v53, %v7916_v20  ;;  %v12790_v16 = vadd.f32 %v10398_v29, %v7925_v35 }
 0xd65   : > { %v9939_v25 = vpop.f32.mrf.mxu1 }
 0xd66   : > { %v12788_v5 = vadd.f32 %v10397_v4, %v7917_v27  ;;  %v7928_v7 = vadd.f32 %v9939_v25, %v12724_v53  ;;  %v7991_v41 = vsel %vm663_vm1, %v12790_v16, 0.0 }
 0xd67   : > { %v7919_v61 = vpop.f32.mrf.mxu1 }
 0xd68   : > { %v7920_v58 = vadd.f32 %v12724_v53, %v7919_v61  ;;  %v7985_v36 = vsel %vm663_vm1, %v12788_v5, 0.0  ;;  %v12798_v51 = vadd.f32 %v10400_v19, %v7928_v7 }
 0xd69   : > { %7986 = vadd.xlane.f32.xlu0 %v7985_v36 }
 0xd6a   : > { %v12796_v37 = vadd.f32 %v10399_v45, %v7920_v58  ;;  %v7994_v53 = vsel %vm663_vm1, %v12798_v51, 0.0 }
 0xd6c   : > { %v7988_v47 = vsel %vm663_vm1, %v12796_v37, 0.0 }
 0xd6d   : > { %7989 = vadd.xlane.f32.xlu1 %v7988_v47  ;;  %7992 = vadd.xlane.f32.xlu0 %v7991_v41 }
 0xd71   : > { %7995 = vadd.xlane.f32.xlu1 %v7994_v53 }
 0xdad   : > { %v7951_v2 = vpop.xlane.xlu0 %7950 }
 0xdae   : > { %v7997_v62 = vmul.f32 0.03125, %v7951_v2 }
 0xdb0   : > { %v12807_v0 = vsub.f32 %v12728_v31, %v7997_v62 }
 0xdb1   : > { %v7954_v1 = vpop.xlane.xlu1 %7953  ;;  %v7957_v18 = vpop.xlane.xlu0 %7956 }
 0xdb2   : > { %v7998_v28 = vmul.f32 0.03125, %v7954_v1  ;;  %v7999_v12 = vmul.f32 0.03125, %v7957_v18  ;;  %v8029_v39 = vmul.f32 %v12807_v0, %v12807_v0 }
 0xdb4   : > { %v12812_v63 = vsub.f32 %v12736_v24, %v7998_v28  ;;  %v12815_v23 = vsub.f32 %v12730_v34, %v7999_v12  ;;  %v8045_v43 = vsel %vm663_vm1, %v8029_v39, 0.0 }
 0xdb5   : > { %8046 = vadd.xlane.f32.xlu0 %v8045_v43  ;;  %v7960_v6 = vpop.xlane.xlu0 %7959 }
 0xdb6   : > { %v8000_v56 = vmul.f32 0.03125, %v7960_v6  ;;  %v8030_v17 = vmul.f32 %v12812_v63, %v12812_v63  ;;  %v8031_v21 = vmul.f32 %v12815_v23, %v12815_v23 }
 0xdb8   : > { %v12823_v30 = vsub.f32 %v12738_v52, %v8000_v56  ;;  %v8048_v46 = vsel %vm663_vm1, %v8030_v17, 0.0  ;;  %v8051_v26 = vsel %vm663_vm1, %v8031_v21, 0.0 }
 0xdb9   : > { %v7966_v8 = vpop.xlane.xlu1 %7965  ;;  %8049 = vadd.xlane.f32.xlu1 %v8048_v46  ;;  %8052 = vadd.xlane.f32.xlu0 %v8051_v26  ;;  %v7963_v44 = vpop.xlane.xlu0 %7962  ;;  %v10027_v46 = vld [vmem:[%s10563_s3 + $0x8] sm:$0xff]   ;;  %v10028_v26 = vld [vmem:[%s10563_s3] sm:$0xff]  }
 0xdba   : > { %v8002_v38 = vmul.f32 0.03125, %v7966_v8  ;;  %v8001_v14 = vmul.f32 0.03125, %v7963_v44  ;;  %v8032_v15 = vmul.f32 %v12823_v30, %v12823_v30  ;;  %9940 = vmatprep.subr.bf16.mxu1 %v10027_v46 }
 0xdbb   : > { %9941 = vmatpush3.bf16.msra.mxu1 %v10027_v46 }
 0xdbc   : > { %v12830_v10 = vsub.f32 %v12752_v54, %v8002_v38  ;;  %v12833_v13 = vsub.f32 %v12746_v3, %v8001_v14  ;;  %v8054_v59 = vsel %vm663_vm1, %v8032_v15, 0.0  ;;  %9942 = vmatprep.subr.bf16.mxu1 %v10028_v26 }
 0xdbd   : > { %v7972_v22 = vpop.xlane.xlu1 %7971  ;;  %8055 = vadd.xlane.f32.xlu1 %v8054_v59  ;;  %v7969_v11 = vpop.xlane.xlu0 %7968 }
 0xdbe   : > { %v8004_v60 = vmul.f32 0.03125, %v7972_v22  ;;  %v8003_v48 = vmul.f32 0.03125, %v7969_v11  ;;  %v8034_v40 = vmul.f32 %v12830_v10, %v12830_v10  ;;  %v8033_v49 = vmul.f32 %v12833_v13, %v12833_v13 }
 0xdbf   : > { %9943 = vmatpush3.bf16.msra.mxu1 %v10028_v26 }
 0xdc0   : > { %v12841_v9 = vsub.f32 %v12756_v33, %v8004_v60  ;;  %v12844_v20 = vsub.f32 %v12754_v55, %v8003_v48  ;;  %v8060_v35 = vsel %vm663_vm1, %v8034_v40, 0.0  ;;  %v8057_v27 = vsel %vm663_vm1, %v8033_v49, 0.0 }
 0xdc1   : > { %v7978_v25 = vpop.xlane.xlu1 %7977  ;;  %8061 = vadd.xlane.f32.xlu1 %v8060_v35  ;;  %8058 = vadd.xlane.f32.xlu0 %v8057_v27  ;;  %v7975_v4 = vpop.xlane.xlu0 %7974 }
 0xdc2   : > { %v8006_v61 = vmul.f32 0.03125, %v7978_v25  ;;  %v8005_v29 = vmul.f32 0.03125, %v7975_v4  ;;  %v8036_v7 = vmul.f32 %v12841_v9, %v12841_v9  ;;  %v8035_v58 = vmul.f32 %v12844_v20, %v12844_v20 }
 0xdc4   : > { %v12853_v36 = vsub.f32 %v12772_v42, %v8006_v61  ;;  %v12856_v45 = vsub.f32 %v12766_v50, %v8005_v29  ;;  %v8066_v19 = vsel %vm663_vm1, %v8036_v7, 0.0  ;;  %v8063_v47 = vsel %vm663_vm1, %v8035_v58, 0.0 }
 0xdc5   : > { %v7984_v41 = vpop.xlane.xlu1 %7983  ;;  %8067 = vadd.xlane.f32.xlu1 %v8066_v19  ;;  %8064 = vadd.xlane.f32.xlu0 %v8063_v47  ;;  %v7981_v53 = vpop.xlane.xlu0 %7980 }
 0xdc6   : > { %v8008_v2 = vmul.f32 0.03125, %v7984_v41  ;;  %v8007_v62 = vmul.f32 0.03125, %v7981_v53  ;;  %v8038_v1 = vmul.f32 %v12853_v36, %v12853_v36  ;;  %v8037_v18 = vmul.f32 %v12856_v45, %v12856_v45 }
 0xdc8   : > { %v12865_v28 = vsub.f32 %v12776_v57, %v8008_v2  ;;  %v12868_v12 = vsub.f32 %v12774_v32, %v8007_v62  ;;  %v8072_v39 = vsel %vm663_vm1, %v8038_v1, 0.0  ;;  %v8069_v43 = vsel %vm663_vm1, %v8037_v18, 0.0 }
 0xdc9   : > { %8073 = vadd.xlane.f32.xlu1 %v8072_v39  ;;  %8070 = vadd.xlane.f32.xlu0 %v8069_v43 }
 0xdca   : > { %v8040_v6 = vmul.f32 %v12865_v28, %v12865_v28  ;;  %v8039_v56 = vmul.f32 %v12868_v12, %v12868_v12 }
 0xdcc   : > { %v8078_v17 = vsel %vm663_vm1, %v8040_v6, 0.0  ;;  %v8075_v21 = vsel %vm663_vm1, %v8039_v56, 0.0 }
 0xdcd   : > { %8079 = vadd.xlane.f32.xlu1 %v8078_v17  ;;  %8076 = vadd.xlane.f32.xlu0 %v8075_v21 }
 0xdf2   : > { %v7987_v8 = vpop.xlane.xlu0 %7986 }
 0xdf3   : > { %v8009_v44 = vmul.f32 0.03125, %v7987_v8 }
 0xdf5   : > { %v12881_v38 = vsub.f32 %v12788_v5, %v8009_v44 }
 0xdf6   : > { %v7990_v14 = vpop.xlane.xlu1 %7989  ;;  %v7993_v15 = vpop.xlane.xlu0 %7992 }
 0xdf7   : > { %v8010_v59 = vmul.f32 0.03125, %v7990_v14  ;;  %v8011_v22 = vmul.f32 0.03125, %v7993_v15  ;;  %v8041_v11 = vmul.f32 %v12881_v38, %v12881_v38 }
 0xdf9   : > { %v12886_v60 = vsub.f32 %v12796_v37, %v8010_v59  ;;  %v12889_v48 = vsub.f32 %v12790_v16, %v8011_v22  ;;  %v8081_v40 = vsel %vm663_vm1, %v8041_v11, 0.0 }
 0xdfa   : > { %v7996_v49 = vpop.xlane.xlu1 %7995  ;;  %8082 = vadd.xlane.f32.xlu0 %v8081_v40  ;;  %v12909_v40 = vld [vmem:[%s581_s29] ss:$0 sm:$0xff] }
 0xdfb   : > { %v8012_v35 = vmul.f32 0.03125, %v7996_v49  ;;  %v8042_v27 = vmul.f32 %v12886_v60, %v12886_v60  ;;  %v8043_v25 = vmul.f32 %v12889_v48, %v12889_v48 }
 0xdfd   : > { %v12897_v4 = vsub.f32 %v12798_v51, %v8012_v35  ;;  %v8084_v61 = vsel %vm663_vm1, %v8042_v27, 0.0  ;;  %v8087_v29 = vsel %vm663_vm1, %v8043_v25, 0.0 }
 0xdfe   : > { %8085 = vadd.xlane.f32.xlu1 %v8084_v61  ;;  %8088 = vadd.xlane.f32.xlu0 %v8087_v29 }
 0xdff   : > { %v8044_v7 = vmul.f32 %v12897_v4, %v12897_v4 }
 0xe01   : > { %v8090_v58 = vsel %vm663_vm1, %v8044_v7, 0.0 }
 0xe02   : > { %8091 = vadd.xlane.f32.xlu1 %v8090_v58 }
 0xe3e   : > { %v8047_v19 = vpop.xlane.xlu0 %8046 }
 0xe3f   : > { %v8093_v47 = vmul.f32 0.03125, %v8047_v19 }
 0xe41   : > { %v8109_v41 = vadd.f32 1e-05, %v8093_v47 }
 0xe42   : > { %v8050_v53 = vpop.xlane.xlu1 %8049  ;;  %v8053_v2 = vpop.xlane.xlu0 %8052 }
 0xe43   : > { %10321 = vrsqrt.f32 %v8109_v41  ;;  %v8094_v62 = vmul.f32 0.03125, %v8050_v53  ;;  %v8095_v1 = vmul.f32 0.03125, %v8053_v2  ;;  %v12918_v2 = vld [vmem:[%s584_s12] ss:$0 sm:$0xff] }
 0xe45   : > { %v8110_v18 = vadd.f32 1e-05, %v8094_v62  ;;  %v8111_v39 = vadd.f32 1e-05, %v8095_v1 }
 0xe46   : > { %v8056_v43 = vpop.xlane.xlu1 %8055 }
 0xe47   : > { %10323 = vrsqrt.f32 %v8110_v18  ;;  %v8096_v6 = vmul.f32 0.03125, %v8056_v43 }
 0xe48   : > { %10325 = vrsqrt.f32 %v8111_v39 }
 0xe49   : > { %v8112_v56 = vadd.f32 1e-05, %v8096_v6 }
 0xe4a   : > { %v8062_v17 = vpop.xlane.xlu1 %8061  ;;  %v8059_v21 = vpop.xlane.xlu0 %8058 }
 0xe4b   : > { %10327 = vrsqrt.f32 %v8112_v56  ;;  %v8098_v46 = vmul.f32 0.03125, %v8062_v17  ;;  %v8097_v26 = vmul.f32 0.03125, %v8059_v21 }
 0xe4d   : > { %v8114_v8 = vadd.f32 1e-05, %v8098_v46  ;;  %v8113_v44 = vadd.f32 1e-05, %v8097_v26 }
 0xe4e   : > { %v8068_v14 = vpop.xlane.xlu1 %8067  ;;  %v8065_v15 = vpop.xlane.xlu0 %8064 }
 0xe4f   : > { %10329 = vrsqrt.f32 %v8114_v8  ;;  %v8100_v59 = vmul.f32 0.03125, %v8068_v14  ;;  %v8099_v22 = vmul.f32 0.03125, %v8065_v15 }
 0xe50   : > { %v10322_v11 = vpop.eup %10321  ;;  %10331 = vrsqrt.f32 %v8113_v44 }
 0xe51   : > { %v8116_v49 = vadd.f32 1e-05, %v8100_v59  ;;  %v8115_v35 = vadd.f32 1e-05, %v8099_v22  ;;  %v8141_v27 = vmul.f32 %v10322_v11, %v12807_v0 }
 0xe52   : > { %v8074_v25 = vpop.xlane.xlu1 %8073  ;;  %v8071_v61 = vpop.xlane.xlu0 %8070 }
 0xe53   : > { %10333 = vrsqrt.f32 %v8116_v49  ;;  %v8102_v29 = vmul.f32 0.03125, %v8074_v25  ;;  %v8101_v7 = vmul.f32 0.03125, %v8071_v61  ;;  %v8163_v19 = vmul.f32 %v12909_v40, %v8141_v27 }
 0xe54   : > { %v10324_v58 = vpop.eup %10323  ;;  %10335 = vrsqrt.f32 %v8115_v35 }
 0xe55   : > { %v10326_v47 = vpop.eup %10325  ;;  %v8118_v41 = vadd.f32 1e-05, %v8102_v29  ;;  %v8117_v53 = vadd.f32 1e-05, %v8101_v7  ;;  %v8142_v0 = vmul.f32 %v10324_v58, %v12812_v63  ;;  %v8185_v21 = vadd.f32 %v12918_v2, %v8163_v19 }
 0xe56   : > { %v8143_v62 = vmul.f32 %v10326_v47, %v12815_v23  ;;  %v8080_v1 = vpop.xlane.xlu1 %8079  ;;  %v8077_v18 = vpop.xlane.xlu0 %8076 }
 0xe57   : > { %10337 = vrsqrt.f32 %v8118_v41  ;;  %v8104_v39 = vmul.f32 0.03125, %v8080_v1  ;;  %v8103_v43 = vmul.f32 0.03125, %v8077_v18  ;;  %v8164_v6 = vmul.f32 %v12909_v40, %v8142_v0 }
 0xe58   : > { %v10328_v56 = vpop.eup %10327  ;;  %v8165_v17 = vmul.f32 %v12909_v40, %v8143_v62  ;;  %10339 = vrsqrt.f32 %v8117_v53 }
 0xe59   : > { %v8144_v46 = vmul.f32 %v10328_v56, %v12823_v30  ;;  %v8120_v26 = vadd.f32 1e-05, %v8104_v39  ;;  %v8119_v8 = vadd.f32 1e-05, %v8103_v43  ;;  %v8186_v63 = vadd.f32 %v12918_v2, %v8164_v6 }
 0xe5a   : > { %v8187_v59 = vadd.f32 %v12918_v2, %v8165_v17 }
 0xe5b   : > { %v8166_v23 = vmul.f32 %v12909_v40, %v8144_v46  ;;  %10341 = vrsqrt.f32 %v8120_v26  ;;  %v8201_v44 = vpack.c.bf16 %v8186_v63, %v8185_v21 }
 0xe5c   : > { %v10330_v14 = vpop.eup %10329  ;;  %10343 = vrsqrt.f32 %v8119_v8 }
 0xe5d   : > { %v10332_v15 = vpop.eup %10331  ;;  %9944 = vmatprep.mubr.msk.bf16.mxu1 %vm663_vm1, %v8201_v44  ;;  %v8188_v22 = vadd.f32 %v12918_v2, %v8166_v23  ;;  %v8146_v11 = vmul.f32 %v10330_v14, %v12830_v10 }
 0xe5e   : > { %v8145_v30 = vmul.f32 %v10332_v15, %v12833_v13 }
 0xe5f   : > { %v8202_v49 = vpack.c.bf16 %v8188_v22, %v8187_v59  ;;  %v8168_v35 = vmul.f32 %v12909_v40, %v8146_v11 }
 0xe60   : > { %v10334_v27 = vpop.eup %10333  ;;  %v8167_v25 = vmul.f32 %v12909_v40, %v8145_v30 }
 0xe61   : > { %v10336_v61 = vpop.eup %10335  ;;  %9945 = vmatmul.mubr.msk.bf16.vlgmr.msra.gmra.mxu1 %vm663_vm1, %v8202_v49  ;;  %v8190_v29 = vadd.f32 %v12918_v2, %v8168_v35  ;;  %v8148_v7 = vmul.f32 %v10334_v27, %v12841_v9 }
 0xe62   : > { %v8189_v58 = vadd.f32 %v12918_v2, %v8167_v25  ;;  %v8147_v19 = vmul.f32 %v10336_v61, %v12844_v20 }
 0xe63   : > { %v8170_v10 = vmul.f32 %v12909_v40, %v8148_v7 }
 0xe64   : > { %v10338_v13 = vpop.eup %10337  ;;  %v8203_v47 = vpack.c.bf16 %v8190_v29, %v8189_v58  ;;  %v8169_v41 = vmul.f32 %v12909_v40, %v8147_v19 }
 0xe65   : > { %v10340_v53 = vpop.eup %10339  ;;  %v8192_v0 = vadd.f32 %v12918_v2, %v8170_v10  ;;  %v8150_v62 = vmul.f32 %v10338_v13, %v12853_v36 }
 0xe66   : > { %9948 = vmatprep.mubr.msk.bf16.mxu1 %vm663_vm1, %v8203_v47  ;;  %v8191_v1 = vadd.f32 %v12918_v2, %v8169_v41  ;;  %v8149_v9 = vmul.f32 %v10340_v53, %v12856_v45 }
 0xe67   : > { %v8172_v18 = vmul.f32 %v12909_v40, %v8150_v62 }
 0xe68   : > { %v10342_v20 = vpop.eup %10341  ;;  %v8204_v39 = vpack.c.bf16 %v8192_v0, %v8191_v1  ;;  %v8171_v43 = vmul.f32 %v12909_v40, %v8149_v9 }
 0xe69   : > { %v10344_v6 = vpop.eup %10343  ;;  %v8194_v56 = vadd.f32 %v12918_v2, %v8172_v18  ;;  %v8152_v17 = vmul.f32 %v10342_v20, %v12865_v28  ;;  %v10029_v18 = vld [vmem:[%s10573_s28 + $0x18] sm:$0xff]   ;;  %v10031_v20 = vld [vmem:[%s10573_s28 + $0x8] sm:$0xff]  }
 0xe6a   : > { %9949 = vmatmul.mubr.msk.bf16.gmra.mxu1 %vm663_vm1, %v8204_v39  ;;  %v8193_v36 = vadd.f32 %v12918_v2, %v8171_v43  ;;  %v8151_v21 = vmul.f32 %v10344_v6, %v12868_v12  ;;  %9960 = vmatprep.subr.bf16.mxu0 %v10029_v18 }
 0xe6b   : > { %v8174_v46 = vmul.f32 %v12909_v40, %v8152_v17  ;;  %9961 = vmatpush3.bf16.msra.mxu0 %v10029_v18 }
 0xe6c   : > { %v8205_v45 = vpack.c.bf16 %v8194_v56, %v8193_v36  ;;  %v8173_v26 = vmul.f32 %v12909_v40, %v8151_v21 }
 0xe6d   : > { %v8196_v8 = vadd.f32 %v12918_v2, %v8174_v46 }
 0xe6e   : > { %9952 = vmatprep.mubr.msk.bf16.mxu1 %vm663_vm1, %v8205_v45  ;;  %v8195_v63 = vadd.f32 %v12918_v2, %v8173_v26 }
 0xe70   : > { %v8206_v23 = vpack.c.bf16 %v8196_v8, %v8195_v63 }
 0xe72   : > { %9953 = vmatmul.mubr.msk.bf16.gmra.mxu1 %vm663_vm1, %v8206_v23 }
 0xe83   : > { %v8083_v28 = vpop.xlane.xlu0 %8082 }
 0xe84   : > { %v8105_v44 = vmul.f32 0.03125, %v8083_v28 }
 0xe86   : > { %v8121_v14 = vadd.f32 1e-05, %v8105_v44 }
 0xe87   : > { %v8086_v15 = vpop.xlane.xlu1 %8085  ;;  %v8089_v59 = vpop.xlane.xlu0 %8088 }
 0xe88   : > { %10345 = vrsqrt.f32 %v8121_v14  ;;  %v8106_v12 = vmul.f32 0.03125, %v8086_v15  ;;  %v8107_v22 = vmul.f32 0.03125, %v8089_v59 }
 0xe8a   : > { %v8122_v11 = vadd.f32 1e-05, %v8106_v12  ;;  %v8123_v30 = vadd.f32 1e-05, %v8107_v22 }
 0xe8b   : > { %v8092_v49 = vpop.xlane.xlu1 %8091 }
 0xe8c   : > { %10347 = vrsqrt.f32 %v8122_v11  ;;  %v8108_v35 = vmul.f32 0.03125, %v8092_v49 }
 0xe8d   : > { %10349 = vrsqrt.f32 %v8123_v30 }
 0xe8e   : > { %v8124_v27 = vadd.f32 1e-05, %v8108_v35 }
 0xe90   : > { %10351 = vrsqrt.f32 %v8124_v27 }
 0xe95   : > { %v10346_v25 = vpop.eup %10345 }
 0xe96   : > { %v8153_v61 = vmul.f32 %v10346_v25, %v12881_v38 }
 0xe98   : > { %v8175_v19 = vmul.f32 %v12909_v40, %v8153_v61 }
 0xe99   : > { %v10348_v29 = vpop.eup %10347 }
 0xe9a   : > { %v10350_v7 = vpop.eup %10349  ;;  %v8154_v58 = vmul.f32 %v10348_v29, %v12886_v60  ;;  %v8197_v41 = vadd.f32 %v12918_v2, %v8175_v19 }
 0xe9b   : > { %v8155_v10 = vmul.f32 %v10350_v7, %v12889_v48 }
 0xe9c   : > { %v8176_v13 = vmul.f32 %v12909_v40, %v8154_v58 }
 0xe9d   : > { %v10352_v47 = vpop.eup %10351  ;;  %v8177_v0 = vmul.f32 %v12909_v40, %v8155_v10 }
 0xe9e   : > { %v8198_v53 = vadd.f32 %v12918_v2, %v8176_v13  ;;  %v8156_v38 = vmul.f32 %v10352_v47, %v12897_v4  ;;  %v10030_v4 = vld [vmem:[%s10573_s28 + $0x10] sm:$0xff]  }
 0xe9f   : > { %v8199_v48 = vadd.f32 %v12918_v2, %v8177_v0  ;;  %9962 = vmatprep.subr.bf16.mxu0 %v10030_v4 }
 0xea0   : > { %v8207_v62 = vpack.c.bf16 %v8198_v53, %v8197_v41  ;;  %v8178_v60 = vmul.f32 %v12909_v40, %v8156_v38  ;;  %9963 = vmatpush3.bf16.msra.mxu0 %v10030_v4  ;;  %v10032_v40 = vld [vmem:[%s10573_s28] sm:$0xff]  }
 0xea1   : > { %9964 = vmatprep.subr.bf16.mxu0 %v10031_v20 }
 0xea2   : > { %9956 = vmatprep.mubr.msk.bf16.mxu1 %vm663_vm1, %v8207_v62  ;;  %v8200_v1 = vadd.f32 %v12918_v2, %v8178_v60  ;;  %v12983_v2 = vld [vmem:[%s592_s20] ss:$0 sm:$0xff] }
 0xea4   : > { %v8208_v9 = vpack.c.bf16 %v8200_v1, %v8199_v48  ;;  %9965 = vmatpush3.bf16.msra.mxu0 %v10031_v20 }
 0xea5   : > { %9966 = vmatprep.subr.bf16.mxu0 %v10032_v40 }
 0xea6   : > { %9957 = vmatmul.mubr.msk.bf16.gmra.mxu1 %vm663_vm1, %v8208_v9 }
 0xea8   : > { %9967 = vmatpush3.bf16.msra.mxu0 %v10032_v40 }
 0xf21   : > { %v9946_v39 = vpop.f32.mrf.mxu1 }
 0xf22   : > { %v12986_v43 = vadd.f32 %v9946_v39, %v12983_v2 }
 0xf23   : > { %v8290_v6 = vpop.f32.mrf.mxu1 }
 0xf24   : > { %v8371_v56 = vmul.f32 0.044715, %v12986_v43  ;;  %v12990_v17 = vadd.f32 %v12983_v2, %v8290_v6 }
 0xf25   : > { %v9947_v36 = vpop.f32.mrf.mxu1 }
 0xf26   : > { %v8387_v21 = vmul.f32 %v8371_v56, %v12986_v43  ;;  %v8369_v46 = vmul.f32 0.044715, %v12990_v17  ;;  %v12995_v45 = vadd.f32 %v9947_v36, %v12983_v2 }
 0xf27   : > { %v8293_v26 = vpop.f32.mrf.mxu1 }
 0xf28   : > { %v8403_v8 = vmul.f32 %v8387_v21, %v12986_v43  ;;  %v8385_v63 = vmul.f32 %v8369_v46, %v12990_v17  ;;  %v8372_v23 = vmul.f32 0.044715, %v12995_v45  ;;  %v13001_v28 = vadd.f32 %v12983_v2, %v8293_v26 }
 0xf2a   : > { %v8419_v44 = vadd.f32 %v8403_v8, %v12986_v43  ;;  %v8401_v14 = vmul.f32 %v8385_v63, %v12990_v17  ;;  %v8388_v15 = vmul.f32 %v8372_v23, %v12995_v45  ;;  %v9950_v59 = vpop.f32.mrf.mxu1  ;;  %v8370_v12 = vmul.f32 0.044715, %v13001_v28 }
 0xf2b   : > { %v13008_v22 = vadd.f32 %v9950_v59, %v12983_v2 }
 0xf2c   : > { %v8435_v11 = vmul.f32 0.7978846, %v8419_v44  ;;  %v8417_v30 = vadd.f32 %v8401_v14, %v12990_v17  ;;  %v8404_v49 = vmul.f32 %v8388_v15, %v12995_v45  ;;  %v8306_v35 = vpop.f32.mrf.mxu1  ;;  %v8386_v27 = vmul.f32 %v8370_v12, %v13001_v28 }
 0xf2d   : > { %v8375_v25 = vmul.f32 0.044715, %v13008_v22  ;;  %v13015_v61 = vadd.f32 %v12983_v2, %v8306_v35 }
 0xf2e   : > { %10353 = vtanh.f32 %v8435_v11  ;;  %v8433_v29 = vmul.f32 0.7978846, %v8417_v30  ;;  %v8420_v7 = vadd.f32 %v8404_v49, %v12995_v45  ;;  %v9951_v58 = vpop.f32.mrf.mxu1  ;;  %v8402_v19 = vmul.f32 %v8386_v27, %v13001_v28 }
 0xf2f   : > { %v8391_v10 = vmul.f32 %v8375_v25, %v13008_v22  ;;  %v8373_v13 = vmul.f32 0.044715, %v13015_v61  ;;  %v13022_v47 = vadd.f32 %v9951_v58, %v12983_v2 }
 0xf30   : > { %10355 = vtanh.f32 %v8433_v29  ;;  %v8436_v41 = vmul.f32 0.7978846, %v8420_v7  ;;  %v8309_v53 = vpop.f32.mrf.mxu1  ;;  %v8418_v38 = vadd.f32 %v8402_v19, %v13001_v28 }
 0xf31   : > { %v8407_v0 = vmul.f32 %v8391_v10, %v13008_v22  ;;  %v8389_v62 = vmul.f32 %v8373_v13, %v13015_v61  ;;  %v8376_v60 = vmul.f32 0.044715, %v13022_v47  ;;  %v13029_v48 = vadd.f32 %v12983_v2, %v8309_v53 }
 0xf32   : > { %10357 = vtanh.f32 %v8436_v41  ;;  %v9954_v1 = vpop.f32.mrf.mxu1  ;;  %v8434_v9 = vmul.f32 0.7978846, %v8418_v38 }
 0xf33   : > { %v8423_v18 = vadd.f32 %v8407_v0, %v13008_v22  ;;  %v8405_v4 = vmul.f32 %v8389_v62, %v13015_v61  ;;  %v8392_v20 = vmul.f32 %v8376_v60, %v13022_v47  ;;  %v8374_v40 = vmul.f32 0.044715, %v13029_v48 }
 0xf34   : > { %v13036_v39 = vadd.f32 %v9954_v1, %v12983_v2  ;;  %v8322_v6 = vpop.f32.mrf.mxu1  ;;  %10359 = vtanh.f32 %v8434_v9 }
 0xf35   : > { %v8439_v56 = vmul.f32 0.7978846, %v8423_v18  ;;  %v8421_v36 = vadd.f32 %v8405_v4, %v13015_v61  ;;  %v8408_v21 = vmul.f32 %v8392_v20, %v13022_v47  ;;  %v8390_v46 = vmul.f32 %v8374_v40, %v13029_v48 }
 0xf36   : > { %v8379_v26 = vmul.f32 0.044715, %v13036_v39  ;;  %v13043_v8 = vadd.f32 %v12983_v2, %v8322_v6  ;;  %v9955_v63 = vpop.f32.mrf.mxu1 }
 0xf37   : > { %v8437_v23 = vmul.f32 0.7978846, %v8421_v36  ;;  %v8424_v44 = vadd.f32 %v8408_v21, %v13022_v47  ;;  %v13047_v14 = vadd.f32 %v9955_v63, %v12983_v2  ;;  %v8406_v15 = vmul.f32 %v8390_v46, %v13029_v48 }
 0xf38   : > { %v8395_v59 = vmul.f32 %v8379_v26, %v13036_v39  ;;  %v8377_v12 = vmul.f32 0.044715, %v13043_v8  ;;  %v8325_v11 = vpop.f32.mrf.mxu1  ;;  %10361 = vtanh.f32 %v8439_v56  ;;  %v8356_v46 = vmul.f32 0.5, %v12995_v45 }
 0xf39   : > { %v8440_v30 = vmul.f32 0.7978846, %v8424_v44  ;;  %v8380_v49 = vmul.f32 0.044715, %v13047_v14  ;;  %v13054_v35 = vadd.f32 %v12983_v2, %v8325_v11  ;;  %10363 = vtanh.f32 %v8437_v23 }
 0xf3a   : > { %v8422_v27 = vadd.f32 %v8406_v15, %v13029_v48  ;;  %v8411_v25 = vmul.f32 %v8395_v59, %v13036_v39  ;;  %v8393_v29 = vmul.f32 %v8377_v12, %v13043_v8  ;;  %v8353_v26 = vmul.f32 0.5, %v12990_v17 }
 0xf3b   : > { %v10354_v7 = vpop.eup %10353  ;;  %10365 = vtanh.f32 %v8440_v30  ;;  %v8396_v58 = vmul.f32 %v8380_v49, %v13047_v14  ;;  %v8378_v19 = vmul.f32 0.044715, %v13054_v35  ;;  %v8354_v23 = vmul.f32 0.5, %v13001_v28 }
 0xf3c   : > { %v8438_v10 = vmul.f32 0.7978846, %v8422_v27  ;;  %v8427_v13 = vadd.f32 %v8411_v25, %v13036_v39  ;;  %v8409_v41 = vmul.f32 %v8393_v29, %v13043_v8  ;;  %v8467_v21 = vadd.f32 1.0, %v10354_v7 }
 0xf3d   : > { %v10356_v53 = vpop.eup %10355  ;;  %v8412_v38 = vmul.f32 %v8396_v58, %v13047_v14  ;;  %v8394_v0 = vmul.f32 %v8378_v19, %v13054_v35  ;;  %v8355_v15 = vmul.f32 0.5, %v12986_v43  ;;  %v8360_v43 = vmul.f32 0.5, %v13022_v47 }
 0xf3e   : > { %10367 = vtanh.f32 %v8438_v10  ;;  %v8443_v62 = vmul.f32 0.7978846, %v8427_v13  ;;  %v8425_v60 = vadd.f32 %v8409_v41, %v13043_v8  ;;  %v8465_v56 = vadd.f32 1.0, %v10356_v53 }
 0xf3f   : > { %v10358_v1 = vpop.eup %10357  ;;  %v8428_v9 = vadd.f32 %v8412_v38, %v13047_v14  ;;  %v8410_v18 = vmul.f32 %v8394_v0, %v13054_v35  ;;  %v8483_v49 = vmul.f32 %v8467_v21, %v8355_v15  ;;  %v8357_v19 = vmul.f32 0.5, %v13015_v61 }
 0xf40   : > { %v8468_v4 = vadd.f32 1.0, %v10358_v1  ;;  %v8441_v20 = vmul.f32 0.7978846, %v8425_v60  ;;  %10369 = vtanh.f32 %v8443_v62  ;;  %v8481_v12 = vmul.f32 %v8465_v56, %v8353_v26 }
 0xf41   : > { %v8444_v40 = vmul.f32 0.7978846, %v8428_v9  ;;  %v8426_v6 = vadd.f32 %v8410_v18, %v13054_v35  ;;  %v10360_v36 = vpop.eup %10359  ;;  %v8358_v10 = vmul.f32 0.5, %v13029_v48  ;;  %v8359_v41 = vmul.f32 0.5, %v13008_v22 }
 0xf42   : > { %10371 = vtanh.f32 %v8441_v20  ;;  %v8466_v44 = vadd.f32 1.0, %v10360_v36  ;;  %v8484_v59 = vmul.f32 %v8468_v4, %v8356_v46  ;;  %v8361_v61 = vmul.f32 0.5, %v13043_v8 }
 0xf43   : > { %10373 = vtanh.f32 %v8444_v40  ;;  %v8442_v63 = vmul.f32 0.7978846, %v8426_v6  ;;  %v8362_v22 = vmul.f32 0.5, %v13054_v35  ;;  %v8364_v6 = vmul.f32 0.5, %v13047_v14 }
 0xf44   : > { %v8482_v11 = vmul.f32 %v8466_v44, %v8354_v23  ;;  %v8498_v29 = vpack.c.bf16 %v8484_v59, %v8483_v49  ;;  %v8363_v46 = vmul.f32 0.5, %v13036_v39 }
 0xf45   : > { %10375 = vtanh.f32 %v8442_v63  ;;  %v10362_v30 = vpop.eup %10361 }
 0xf46   : > { %v10364_v27 = vpop.eup %10363  ;;  %v8497_v25 = vpack.c.bf16 %v8482_v11, %v8481_v12  ;;  %v8471_v58 = vadd.f32 1.0, %v10362_v30 }
 0xf47   : > { %v8469_v28 = vadd.f32 1.0, %v10364_v27 }
 0xf48   : > { %v10366_v45 = vpop.eup %10365  ;;  %9968 = vmatprep.mubr.msk.bf16.mxu0 %vm8544_vm7, %v8497_v25  ;;  %v8487_v1 = vmul.f32 %v8471_v58, %v8359_v41 }
 0xf49   : > { %v8472_v17 = vadd.f32 1.0, %v10366_v45  ;;  %9969 = vmatmul.mubr.msk.bf16.vlgmr.msra.gmra.mxu0 %vm8544_vm7, %v8498_v29  ;;  %v8485_v0 = vmul.f32 %v8469_v28, %v8357_v19 }
 0xf4b   : > { %v10368_v7 = vpop.eup %10367  ;;  %v8488_v53 = vmul.f32 %v8472_v17, %v8360_v43 }
 0xf4c   : > { %v8470_v13 = vadd.f32 1.0, %v10368_v7 }
 0xf4d   : > { %v10370_v38 = vpop.eup %10369  ;;  %v8500_v4 = vpack.c.bf16 %v8488_v53, %v8487_v1 }
 0xf4e   : > { %v8486_v62 = vmul.f32 %v8470_v13, %v8358_v10  ;;  %v8475_v56 = vadd.f32 1.0, %v10370_v38 }
 0xf4f   : > { %v10372_v60 = vpop.eup %10371 }
 0xf50   : > { %v10374_v9 = vpop.eup %10373  ;;  %v8499_v18 = vpack.c.bf16 %v8486_v62, %v8485_v0  ;;  %v8473_v20 = vadd.f32 1.0, %v10372_v60  ;;  %v8491_v23 = vmul.f32 %v8475_v56, %v8363_v46 }
 0xf51   : > { %v8476_v40 = vadd.f32 1.0, %v10374_v9 }
 0xf52   : > { %v10376_v47 = vpop.eup %10375  ;;  %9972 = vmatprep.mubr.msk.bf16.mxu0 %vm8544_vm7, %v8499_v18  ;;  %v8489_v36 = vmul.f32 %v8473_v20, %v8361_v61 }
 0xf53   : > { %9973 = vmatmul.mubr.msk.bf16.gmra.mxu0 %vm8544_vm7, %v8500_v4  ;;  %v8474_v48 = vadd.f32 1.0, %v10376_v47  ;;  %v8492_v26 = vmul.f32 %v8476_v40, %v8364_v6 }
 0xf55   : > { %v8490_v21 = vmul.f32 %v8474_v48, %v8362_v22  ;;  %v8502_v44 = vpack.c.bf16 %v8492_v26, %v8491_v23  ;;  %v9135_v23 = vld [vmem:[%s600_s13] ss:$0 sm:$0xff] }
 0xf57   : > { %v8501_v63 = vpack.c.bf16 %v8490_v21, %v8489_v36 }
 0xf59   : > { %9976 = vmatprep.mubr.msk.bf16.mxu0 %vm8544_vm7, %v8501_v63 }
 0xf5b   : > { %9977 = vmatmul.mubr.msk.bf16.gmra.mxu0 %vm8544_vm7, %v8502_v44 }
 0xf66   : > { %v9958_v8 = vpop.f32.mrf.mxu1 }
 0xf67   : > { %v8347_v15 = vadd.f32 %v9958_v8, %v12983_v2 }
 0xf68   : > { %v8338_v35 = vpop.f32.mrf.mxu1 }
 0xf69   : > { %v8383_v59 = vmul.f32 0.044715, %v8347_v15  ;;  %v8339_v14 = vadd.f32 %v12983_v2, %v8338_v35  ;;  %v8367_v6 = vmul.f32 0.5, %v8347_v15 }
 0xf6a   : > { %v9959_v12 = vpop.f32.mrf.mxu1 }
 0xf6b   : > { %v8399_v11 = vmul.f32 %v8383_v59, %v8347_v15  ;;  %v8381_v30 = vmul.f32 0.044715, %v8339_v14  ;;  %v8350_v39 = vadd.f32 %v9959_v12, %v12983_v2  ;;  %v8365_v61 = vmul.f32 0.5, %v8339_v14 }
 0xf6c   : > { %v8341_v49 = vpop.f32.mrf.mxu1 }
 0xf6d   : > { %v8415_v27 = vmul.f32 %v8399_v11, %v8347_v15  ;;  %v8397_v25 = vmul.f32 %v8381_v30, %v8339_v14  ;;  %v8384_v45 = vmul.f32 0.044715, %v8350_v39  ;;  %v8342_v29 = vadd.f32 %v12983_v2, %v8341_v49 }
 0xf6e   : > { %v8368_v40 = vmul.f32 0.5, %v8350_v39 }
 0xf6f   : > { %v8431_v17 = vadd.f32 %v8415_v27, %v8347_v15  ;;  %v8413_v28 = vmul.f32 %v8397_v25, %v8339_v14  ;;  %v8400_v7 = vmul.f32 %v8384_v45, %v8350_v39  ;;  %v8382_v43 = vmul.f32 0.044715, %v8342_v29 }
 0xf70   : > { %v8366_v22 = vmul.f32 0.5, %v8342_v29 }
 0xf71   : > { %v8429_v58 = vadd.f32 %v8413_v28, %v8339_v14  ;;  %v8416_v19 = vmul.f32 %v8400_v7, %v8350_v39  ;;  %v8398_v10 = vmul.f32 %v8382_v43, %v8342_v29  ;;  %v8447_v13 = vmul.f32 0.7978846, %v8431_v17 }
 0xf73   : > { %v8445_v41 = vmul.f32 0.7978846, %v8429_v58  ;;  %v8432_v53 = vadd.f32 %v8416_v19, %v8350_v39  ;;  %v8414_v38 = vmul.f32 %v8398_v10, %v8342_v29 }
 0xf75   : > { %10377 = vtanh.f32 %v8445_v41  ;;  %v8448_v0 = vmul.f32 0.7978846, %v8432_v53  ;;  %v8430_v62 = vadd.f32 %v8414_v38, %v8342_v29 }
 0xf76   : > { %10379 = vtanh.f32 %v8447_v13 }
 0xf77   : > { %10381 = vtanh.f32 %v8448_v0  ;;  %v8446_v60 = vmul.f32 0.7978846, %v8430_v62 }
 0xf79   : > { %10383 = vtanh.f32 %v8446_v60 }
 0xf82   : > { %v10378_v1 = vpop.eup %10377 }
 0xf83   : > { %v10380_v2 = vpop.eup %10379  ;;  %v8477_v18 = vadd.f32 1.0, %v10378_v1 }
 0xf84   : > { %v10382_v9 = vpop.eup %10381  ;;  %v8479_v47 = vadd.f32 1.0, %v10380_v2 }
 0xf85   : > { %v8480_v4 = vadd.f32 1.0, %v10382_v9  ;;  %v8493_v36 = vmul.f32 %v8477_v18, %v8365_v61 }
 0xf86   : > { %v10384_v20 = vpop.eup %10383  ;;  %v8495_v46 = vmul.f32 %v8479_v47, %v8367_v6 }
 0xf87   : > { %v8478_v48 = vadd.f32 1.0, %v10384_v20  ;;  %v8496_v56 = vmul.f32 %v8480_v4, %v8368_v40 }
 0xf89   : > { %v8494_v21 = vmul.f32 %v8478_v48, %v8366_v22  ;;  %v8504_v63 = vpack.c.bf16 %v8496_v56, %v8495_v46 }
 0xf8b   : > { %v8503_v26 = vpack.c.bf16 %v8494_v21, %v8493_v36 }
 0xf8d   : > { %9980 = vmatprep.mubr.msk.bf16.mxu0 %vm8544_vm7, %v8503_v26 }
 0xf8e   : > { %9981 = vmatmul.mubr.msk.bf16.gmra.mxu0 %vm8544_vm7, %v8504_v63 }
0x1009   : > { %v9970_v44 = vpop.f32.mrf.mxu0 }
0x100a   : > { %v8612_v8 = vadd.f32 %v9970_v44, %v9135_v23 }
0x100b   : > { %v8603_v35 = vpop.f32.mrf.mxu0 }
0x100c   : > { %v13099_v15 = vadd.f32 %v8612_v8, %v12730_v34  ;;  %v8604_v59 = vadd.f32 %v9135_v23, %v8603_v35 }
0x100d   : > { %v9971_v14 = vpop.f32.mrf.mxu0 }
0x100e   : > { %8684 = vst.msk [vmem:[#allocation2 + $0x10] sm:$0xff] %vm663_vm1, %v13099_v15  ;;  %v8666_v12 = vadd.f32 %v8604_v59, %v12728_v31  ;;  %v8615_v11 = vadd.f32 %v9971_v14, %v9135_v23 }
0x100f   : > { %v8606_v30 = vpop.f32.mrf.mxu0 }
0x1010   : > { %8682 = vst.msk [vmem:[#allocation2] sm:$0xff] %vm663_vm1, %v8666_v12  ;;  %v8669_v39 = vadd.f32 %v8615_v11, %v12738_v52  ;;  %v8607_v49 = vadd.f32 %v9135_v23, %v8606_v30 }
0x1012   : > { %8685 = vst.msk [vmem:[#allocation2 + $0x18] sm:$0xff] %vm663_vm1, %v8669_v39  ;;  %v8667_v27 = vadd.f32 %v8607_v49, %v12736_v24 }
0x1013   : > { %v9974_v34 = vpop.f32.mrf.mxu0 }
0x1014   : > { %v8628_v25 = vadd.f32 %v9974_v34, %v9135_v23  ;;  %8683 = vst.msk [vmem:[#allocation2 + $0x8] sm:$0xff] %vm663_vm1, %v8667_v27 }
0x1015   : > { %v8619_v45 = vpop.f32.mrf.mxu0 }
0x1016   : > { %v8672_v29 = vadd.f32 %v8628_v25, %v12754_v55  ;;  %v8620_v17 = vadd.f32 %v9135_v23, %v8619_v45 }
0x1017   : > { %v9975_v31 = vpop.f32.mrf.mxu0 }
0x1018   : > { %8688 = vst.msk [vmem:[#allocation2 + $0x30] sm:$0xff] %vm663_vm1, %v8672_v29  ;;  %v8670_v28 = vadd.f32 %v8620_v17, %v12746_v3  ;;  %v8631_v7 = vadd.f32 %v9975_v31, %v9135_v23 }
0x1019   : > { %v8622_v52 = vpop.f32.mrf.mxu0 }
0x101a   : > { %8686 = vst.msk [vmem:[#allocation2 + $0x20] sm:$0xff] %vm663_vm1, %v8670_v28  ;;  %v8673_v43 = vadd.f32 %v8631_v7, %v12756_v33  ;;  %v8623_v24 = vadd.f32 %v9135_v23, %v8622_v52 }
0x101b   : > { %v9978_v58 = vpop.f32.mrf.mxu0 }
0x101c   : > { %8689 = vst.msk [vmem:[#allocation2 + $0x38] sm:$0xff] %vm663_vm1, %v8673_v43  ;;  %v8671_v19 = vadd.f32 %v8623_v24, %v12752_v54  ;;  %v8644_v10 = vadd.f32 %v9978_v58, %v9135_v23 }
0x101d   : > { %v8635_v55 = vpop.f32.mrf.mxu0 }
0x101e   : > { %8687 = vst.msk [vmem:[#allocation2 + $0x28] sm:$0xff] %vm663_vm1, %v8671_v19  ;;  %v8676_v13 = vadd.f32 %v8644_v10, %v12774_v32  ;;  %v8636_v41 = vadd.f32 %v9135_v23, %v8635_v55 }
0x101f   : > { %v9979_v3 = vpop.f32.mrf.mxu0 }
0x1020   : > { %8692 = vst.msk [vmem:[#allocation2 + $0x50] sm:$0xff] %vm663_vm1, %v8676_v13  ;;  %v8674_v53 = vadd.f32 %v8636_v41, %v12766_v50  ;;  %v8647_v38 = vadd.f32 %v9979_v3, %v9135_v23 }
0x1021   : > { %v8638_v33 = vpop.f32.mrf.mxu0 }
0x1022   : > { %8690 = vst.msk [vmem:[#allocation2 + $0x40] sm:$0xff] %vm663_vm1, %v8674_v53  ;;  %v8677_v0 = vadd.f32 %v8647_v38, %v12776_v57  ;;  %v8639_v62 = vadd.f32 %v9135_v23, %v8638_v33 }
0x1024   : > { %8693 = vst.msk [vmem:[#allocation2 + $0x58] sm:$0xff] %vm663_vm1, %v8677_v0  ;;  %v8675_v54 = vadd.f32 %v8639_v62, %v12772_v42 }
0x1026   : > { %8691 = vst.msk [vmem:[#allocation2 + $0x48] sm:$0xff] %vm663_vm1, %v8675_v54 }
0x104e   : > { %v9982_v32 = vpop.f32.mrf.mxu0 }
0x104f   : > { %v8660_v60 = vadd.f32 %v9982_v32, %v9135_v23 }
0x1050   : > { %v8651_v1 = vpop.f32.mrf.mxu0 }
0x1051   : > { %v8680_v2 = vadd.f32 %v8660_v60, %v12790_v16  ;;  %v8652_v9 = vadd.f32 %v9135_v23, %v8651_v1 }
0x1052   : > { %v9983_v50 = vpop.f32.mrf.mxu0 }
0x1053   : > { %8696 = vst.msk [vmem:[#allocation2 + $0x70] sm:$0xff] %vm663_vm1, %v8680_v2  ;;  %v8678_v18 = vadd.f32 %v8652_v9, %v12788_v5  ;;  %v8663_v4 = vadd.f32 %v9983_v50, %v9135_v23 }
0x1054   : > { %v8654_v57 = vpop.f32.mrf.mxu0 }
0x1055   : > { %8694 = vst.msk [vmem:[#allocation2 + $0x60] sm:$0xff] %vm663_vm1, %v8678_v18  ;;  %v8681_v20 = vadd.f32 %v8663_v4, %v12798_v51  ;;  %v8655_v42 = vadd.f32 %v9135_v23, %v8654_v57  ;;  %8701 = sbr.rel (%p9148_p6) target bundleno = 4195 (0x1063), region = 76 }
0x1057   : > { %8697 = vst.msk [vmem:[#allocation2 + $0x78] sm:$0xff] %vm663_vm1, %v8681_v20  ;;  %v8679_v40 = vadd.f32 %v8655_v42, %v12796_v37 }
0x1059   : > { %8695 = vst.msk [vmem:[#allocation2 + $0x68] sm:$0xff] %vm663_vm1, %v8679_v40 }
0x105a   : > { %8702 = vst.msk [vmem:[%s13299_s23] sm:$0xff] %vm663_vm1, %v8666_v12 }
0x105b   : > { %8703 = vst.msk [vmem:[%s13300_s30 + $0x8] sm:$0xff] %vm663_vm1, %v8667_v27  ;;  %8704 = vst.msk [vmem:[%s13300_s30 + $0x10] sm:$0xff] %vm663_vm1, %v13099_v15 }
0x105c   : > { %8705 = vst.msk [vmem:[%s13300_s30 + $0x18] sm:$0xff] %vm663_vm1, %v8669_v39  ;;  %8706 = vst.msk [vmem:[%s13300_s30 + $0x20] sm:$0xff] %vm663_vm1, %v8670_v28 }
0x105d   : > { %8707 = vst.msk [vmem:[%s13300_s30 + $0x28] sm:$0xff] %vm663_vm1, %v8671_v19  ;;  %8708 = vst.msk [vmem:[%s13300_s30 + $0x30] sm:$0xff] %vm663_vm1, %v8672_v29 }
0x105e   : > { %8709 = vst.msk [vmem:[%s13300_s30 + $0x38] sm:$0xff] %vm663_vm1, %v8673_v43  ;;  %8710 = vst.msk [vmem:[%s13300_s30 + $0x40] sm:$0xff] %vm663_vm1, %v8674_v53 }
0x105f   : > { %8711 = vst.msk [vmem:[%s13300_s30 + $0x48] sm:$0xff] %vm663_vm1, %v8675_v54  ;;  %8712 = vst.msk [vmem:[%s13300_s30 + $0x50] sm:$0xff] %vm663_vm1, %v8676_v13 }
0x1060   : > { %8713 = vst.msk [vmem:[%s13300_s30 + $0x58] sm:$0xff] %vm663_vm1, %v8677_v0  ;;  %8714 = vst.msk [vmem:[%s13300_s30 + $0x60] sm:$0xff] %vm663_vm1, %v8678_v18 }
0x1061   : > { %8715 = vst.msk [vmem:[%s13300_s30 + $0x68] sm:$0xff] %vm663_vm1, %v8679_v40  ;;  %8716 = vst.msk [vmem:[%s13300_s30 + $0x70] sm:$0xff] %vm663_vm1, %v8680_v2 }
0x1062   : > { %8717 = vst.msk [vmem:[%s13300_s30 + $0x78] sm:$0xff] %vm663_vm1, %v8681_v20 }
0x1063 PF: > { %s13301_s27 = sld [smem:[#allocation5_spill]] }
0x1064   : > { %s13302_s21 = sld [smem:[#allocation4_spill]] }
0x1065   : > { %s13303_s22 = sld [smem:[#allocation6_spill]] }
0x1069   : > { %s22_s23 = sadd.s32 1, %s13301_s27  }
0x106a   : > { %p19_p7 = scmp.ge.s32.totalorder %s22_s23, 4  }
0x106c   :  { %21 = sbr.rel (!%p19_p7) target bundleno = 4 (0x4), region = 139 }

</bundles_post_ra>
